<compile_context>
chip_gen: v7x
topology: tpu7x:2x2x1
jax: 0.10.0
libtpu: 0.0.40
codegen_flags: <defaults>
</compile_context>

<pallas_src>
import numpy as np
import jax
import jax.numpy as jnp
from jax.experimental import pallas as pl
from jax.experimental.pallas import tpu as pltpu


# ----------------------------- host-side (numpy) per-axis operators -----------------------------

def _gauss1d_smoothing(size, sigma):
    """Normalized 1-D factor of the canonical GaussianSmoothing kernel."""
    mean = (size - 1) / 2.0
    x = np.arange(size, dtype=np.float64)
    k = np.exp(-((x - mean) ** 2) / (2.0 * sigma ** 2)) / (sigma * np.sqrt(2.0 * np.pi))
    return k / k.sum()


def _gauss1d_ssim(size, sigma=1.5):
    """Normalized 1-D factor of the canonical SSIM gaussian window."""
    x = np.arange(size, dtype=np.float64)
    g = np.exp(-((x - size // 2) ** 2) / (2.0 * sigma ** 2))
    return g / g.sum()


def _conv1d_matrix(size_in, weights, pad, stride):
    """M with (M @ x)[o] = sum_k w[k] * x_zeropad[o*stride - pad + k]  (cross-correlation)."""
    K = len(weights)
    size_out = (size_in + 2 * pad - K) // stride + 1
    M = np.zeros((size_out, size_in), np.float64)
    for o in range(size_out):
        for k in range(K):
            i = o * stride - pad + k
            if 0 <= i < size_in:
                M[o, i] += weights[k]
    return M


def _upsample_nearest_matrix(size_out, size_in):
    """torch F.interpolate(mode='nearest'): src = floor(dst * in / out)."""
    M = np.zeros((size_out, size_in), np.float64)
    for o in range(size_out):
        M[o, (o * size_in) // size_out] = 1.0
    return M


def _ssim_axis_matrices(D, H, W):
    g3, g7 = _gauss1d_ssim(3), _gauss1d_ssim(7)
    sd = _conv1d_matrix(D, g3, 1, 1)       # (D, D)  same-pad conv
    sh = _conv1d_matrix(H, g7, 3, 1)       # (H, H)
    sw = _conv1d_matrix(W, g7, 3, 1)       # (W, W)
    return sd.astype(np.float32), sh.astype(np.float32), sw.astype(np.float32)


def _smooth_axis_matrices(D, H, W):
    """Composite per-axis operator:  upsmooth ∘ nearest-upsample ∘ strided-downsample."""
    gd = _gauss1d_smoothing(3, 1.0)
    gh = _gauss1d_smoothing(5, 8.0)
    gw = _gauss1d_smoothing(5, 8.0)

    def comp(size, g, pad):
        down = _conv1d_matrix(size, g, pad, 2)                 # stride-2 depthwise conv
        up = _upsample_nearest_matrix(size, down.shape[0])     # nearest upsample back
        smooth = _conv1d_matrix(size, g, pad, 1)               # same-size smoothing conv
        return (smooth @ up @ down).astype(np.float32)         # (size, size)

    return comp(D, gd, 1), comp(H, gh, 2), comp(W, gw, 2)


def _vmem_budget(est_bytes):
    """Scoped-VMEM limit: cover the fused working set, stay under v7x's 64 MiB physical."""
    return int(min(max(est_bytes, 32 * 1024 * 1024), 60 * 1024 * 1024))


# ----------------------------- in-kernel separable-conv helpers -----------------------------

def _wpass(v, wmat_t):
    """Apply a W-axis operator (transposed, (W, W)) to a (D, H, W) volume: one MXU matmul."""
    D, H, W = v.shape
    y = jnp.dot(v.reshape(D * H, W), wmat_t, preferred_element_type=jnp.float32)
    return y.reshape(D, H, W)


def _dtap(yw, taps_row):
    """Static banded D-axis combination: sum_i taps_row[i] * yw[i]  -> (H, W)  (VPU only)."""
    acc = None
    for i in range(yw.shape[0]):
        t = float(taps_row[i])
        if t == 0.0:
            continue
        term = yw[i] * t
        acc = term if acc is None else acc + term
    if acc is None:
        acc = jnp.zeros(yw.shape[1:], jnp.float32)
    return acc


def _sum2d(v):
    return jnp.sum(v.reshape(-1, v.shape[-1]))


def _lane_scatter(vals):
    """Place a short list of scalars into lanes 0..len(vals)-1 of a (1, 128) row."""
    lane = jax.lax.broadcasted_iota(jnp.int32, (1, 128), 1)
    acc = jnp.zeros((1, 128), jnp.float32)
    for i, s in enumerate(vals):
        acc = acc + jnp.where(lane == i, s, 0.0)
    return acc


# ----------------------------- Pallas kernels -----------------------------

def _make_l1_smooth_kernel(md_np):
    """Fused masked-L1 + smoothness kernel (reads the prediction block exactly once)."""

    def kernel(p_ref, t_ref, mh_ref, mwt_ref, o_ref):
        # p_ref: (1, 3, D, H, W) prediction; t_ref: (1, 4, D, H, W) = (flow_x, flow_y, flow_z, mask)
        mh = mh_ref[...]
        mwt = mwt_ref[...]
        msk = (t_ref[0, 3] > 0.0).astype(jnp.float32)            # (D, H, W)
        count = _sum2d(msk)
        D = msk.shape[0]
        l1 = []
        smooth_total = jnp.zeros((), jnp.float32)
        for c in range(3):
            pc = p_ref[0, c]                                     # (D, H, W)
            tc = t_ref[0, c]
            l1.append(_sum2d(jnp.abs(pc - tc) * msk))
            # |pred - upsmooth(nearest_up(downsample(pred)))| via composed per-axis operators:
            # W pass = one MXU matmul, then per output d-row: D taps (VPU) + H pass (MXU matmul).
            yw = _wpass(pc, mwt)
            for o in range(D):
                row = jnp.dot(mh, _dtap(yw, md_np[o]),
                              preferred_element_type=jnp.float32)
                smooth_total = smooth_total + jnp.sum(jnp.abs(pc[o] - row))
        # lanes: 0..2 = per-channel masked |pred-flow| sums, 3 = mask count, 4 = smooth |.| sum
        o_ref[0] = _lane_scatter(l1 + [count, smooth_total])

    return kernel


def _make_ssim_kernel(sd_np):
    C1 = 0.01 ** 2
    C2 = 0.03 ** 2

    def kernel(i1_ref, i2_ref, sh_ref, swt_ref, o_ref):
        i1 = i1_ref[0, 0]                                        # (D, H, W)
        i2 = i2_ref[0, 0]
        sh = sh_ref[...]
        swt = swt_ref[...]
        D = i1.shape[0]
        # W-axis pass for the five windowed statistics (5 live volumes; no 5-channel concat).
        yws = [_wpass(v, swt) for v in (i1, i2, i1 * i1, i2 * i2, i1 * i2)]
        total = jnp.zeros((), jnp.float32)
        for o in range(D):
            mu1, mu2, e11, e22, e12 = [
                jnp.dot(sh, _dtap(yw, sd_np[o]), preferred_element_type=jnp.float32)
                for yw in yws]                                   # (H, W) windowed-stat rows
            mu1_sq = mu1 * mu1
            mu2_sq = mu2 * mu2
            mu12 = mu1 * mu2
            s1 = e11 - mu1_sq
            s2 = e22 - mu2_sq
            s12 = e12 - mu12
            num = (2.0 * mu12 + C1) * (2.0 * s12 + C2)
            den = (mu1_sq + mu2_sq + C1) * (s1 + s2 + C2)
            total = total + jnp.sum(num * pl.reciprocal(den, approx=True))
        o_ref[0] = jnp.zeros((1, 128), jnp.float32) + total

    return kernel


# ----------------------------- pallas_call wrappers -----------------------------

def l1_smooth_sums(prediction, target, md_np, mh, mwt):
    """(5,) f32: per-channel sum(|pred_c - flow_c| * (mask>0)), mask count, smoothness |.| sum."""
    N, _, D, H, W = prediction.shape
    vol = D * H * W * 4
    est = (2 * 3 * vol + 2 * 4 * vol                # double-buffered prediction / target blocks
           + 2 * (H * H + W * W) * 4                # operator matrices
           + 6 * vol                                # live working volumes inside the kernel
           + 2 * 128 * 4)                           # output block
    out = pl.pallas_call(
        _make_l1_smooth_kernel(md_np),
        out_shape=jax.ShapeDtypeStruct((N, 1, 128), jnp.float32),
        grid=(N,),
        in_specs=[
            pl.BlockSpec((1, 3, D, H, W), lambda n: (n, 0, 0, 0, 0)),
            # block covers target channels 0..3 (flow_x, flow_y, flow_z, mask); only block 0 used.
            pl.BlockSpec((1, 4, D, H, W), lambda n: (n, 0, 0, 0, 0)),
            pl.BlockSpec((H, H), lambda n: (0, 0)),               # composite H-axis operator
            pl.BlockSpec((W, W), lambda n: (0, 0)),               # composite W-axis operator^T
        ],
        out_specs=pl.BlockSpec((1, 1, 128), lambda n: (n, 0, 0)),
        compiler_params=pltpu.CompilerParams(
            dimension_semantics=("parallel",),
            vmem_limit_bytes=_vmem_budget(est)),
    )(prediction, target, mh, mwt)
    return jnp.sum(out[:, 0, :5], axis=0)


def ssim_mean_fused(target, warp, sd_np, sh, swt):
    """Mean SSIM between target channel 4 (t0) and warp, fully fused (conv + map + reduce)."""
    N, _, D, H, W = warp.shape
    vol = D * H * W * 4
    est = (2 * 2 * vol                              # double-buffered img1/img2 blocks
           + 2 * (H * H + W * W) * 4                # SSIM window operators
           + 9 * vol                                # 5 W-passed stats + working volumes
           + 2 * 128 * 4)
    out = pl.pallas_call(
        _make_ssim_kernel(sd_np),
        out_shape=jax.ShapeDtypeStruct((N, 1, 128), jnp.float32),
        grid=(N,),
        in_specs=[
            pl.BlockSpec((1, 1, D, H, W), lambda n: (n, 4, 0, 0, 0)),   # img1 = target[:, 4:5]
            pl.BlockSpec((1, 1, D, H, W), lambda n: (n, 0, 0, 0, 0)),   # img2 = warp
            pl.BlockSpec((H, H), lambda n: (0, 0)),                     # H-axis window operator
            pl.BlockSpec((W, W), lambda n: (0, 0)),                     # W-axis window operator^T
        ],
        out_specs=pl.BlockSpec((1, 1, 128), lambda n: (n, 0, 0)),
        compiler_params=pltpu.CompilerParams(
            dimension_semantics=("parallel",),
            vmem_limit_bytes=_vmem_budget(est)),
    )(target, warp, sh, swt)
    return jnp.sum(out[:, 0, 0]) / float(N * D * H * W)


# ----------------------------- plain-JAX glue -----------------------------

def grid_sample_trilinear_zeros(vol, grid):
    """torch.nn.functional.grid_sample (5D, trilinear, align_corners=True, zeros padding)."""
    # TODO(synk): data-dependent trilinear gather kept in plain JAX (no clean Pallas fit).
    N, _, D, H, W = vol.shape
    v = vol[:, 0]
    gx, gy, gz = grid[..., 0], grid[..., 1], grid[..., 2]
    ix = (gx + 1.0) * 0.5 * (W - 1)
    iy = (gy + 1.0) * 0.5 * (H - 1)
    iz = (gz + 1.0) * 0.5 * (D - 1)
    ix0 = jnp.floor(ix).astype(jnp.int32)
    iy0 = jnp.floor(iy).astype(jnp.int32)
    iz0 = jnp.floor(iz).astype(jnp.int32)
    nidx = jnp.arange(N).reshape(N, 1, 1, 1)
    out = jnp.zeros_like(ix)
    for dz in (0, 1):
        zz = iz0 + dz
        wz = 1.0 - jnp.abs(iz - zz.astype(iz.dtype))
        for dy in (0, 1):
            yy = iy0 + dy
            wy = 1.0 - jnp.abs(iy - yy.astype(iy.dtype))
            for dx in (0, 1):
                xx = ix0 + dx
                wx = 1.0 - jnp.abs(ix - xx.astype(ix.dtype))
                valid = ((xx >= 0) & (xx < W) & (yy >= 0) & (yy < H) & (zz >= 0) & (zz < D))
                val = v[nidx, jnp.clip(zz, 0, D - 1), jnp.clip(yy, 0, H - 1), jnp.clip(xx, 0, W - 1)]
                out = out + wx * wy * wz * jnp.where(valid, val, 0.0)
    return out[:, None]


# ----------------------------- FlowLoss forward -----------------------------

def flow_loss_forward(prediction, target,
                      flow_norm_factor=(80.0, 80.0, 10.0),
                      dim_weights=(1.0 / 3, 1.0 / 3, 1.0 / 3)):
    """is_oldloss=False path of FlowLoss.forward."""
    prediction = prediction.astype(jnp.float32)
    target = target.astype(jnp.float32)
    N, C, D, H, W = prediction.shape
    assert C == 3 and target.shape == (N, 6, D, H, W)

    wsum = sum(dim_weights)
    dim_weights = tuple(w / wsum for w in dim_weights)

    # ---- fused masked-L1 (instance loss) + smoothness partial sums ----
    md, mh, mw = _smooth_axis_matrices(D, H, W)
    sums = l1_smooth_sums(prediction, target, md, jnp.asarray(mh), jnp.asarray(mw.T))
    count = sums[3]                                   # NaN if mask empty, matching torch .mean()
    instance_loss = (dim_weights[0] * sums[0] + dim_weights[1] * sums[1]
                     + dim_weights[2] * sums[2]) / count
    smooth_loss = sums[4] / float(N * 3 * D * H * W)

    # ---- warp target t1 with the predicted flow, compare to t0 via SSIM ----
    flow = jnp.moveaxis(prediction, 1, -1)            # (N, D, H, W, 3), channels = (x, y, z)
    scale = jnp.array([flow_norm_factor[0] / (W / 2.0),
                       flow_norm_factor[1] / (H / 2.0),
                       flow_norm_factor[2] / (D / 2.0)], jnp.float32)
    flow = flow * scale
    gx = jnp.linspace(-1.0, 1.0, W).astype(jnp.float32)
    gy = jnp.linspace(-1.0, 1.0, H).astype(jnp.float32)
    gz = jnp.linspace(-1.0, 1.0, D).astype(jnp.float32)
    base_grid = jnp.stack(jnp.broadcast_arrays(gx[None, None, None, :],
                                               gy[None, None, :, None],
                                               gz[None, :, None, None]), axis=-1)  # (1,D,H,W,3)
    warp = grid_sample_trilinear_zeros(target[:, 5:6], base_grid - flow)

    sd, sh, sw = _ssim_axis_matrices(D, H, W)
    ssim_val = ssim_mean_fused(target, warp, sd, jnp.asarray(sh), jnp.asarray(sw.T))
    ssim_loss = 1.0 - ssim_val

    return instance_loss + ssim_loss * 0.01 + smooth_loss * 0.01


if __name__ == "__main__":
    key = jax.random.PRNGKey(0)
    N, D, H, W = 2, 4, 16, 16
    k1, k2, k3, k4 = jax.random.split(key, 4)
    prediction = jax.random.normal(k1, (N, 3, D, H, W), jnp.float32) * 0.1
    flow_t = jax.random.normal(k2, (N, 3, D, H, W), jnp.float32) * 0.1
    mask = (jax.random.uniform(k3, (N, 1, D, H, W)) > 0.5).astype(jnp.float32)
    imgs = jax.random.uniform(k4, (N, 2, D, H, W), jnp.float32)
    target = jnp.concatenate([flow_t, mask, imgs], axis=1)  # (flow_x, flow_y, flow_z, mask, t0, t1)

    loss = jax.jit(flow_loss_forward)(prediction, target)
    loss = jax.block_until_ready(loss)
    assert loss.shape == () and bool(jnp.isfinite(loss))
    print("KERNEL_OK")
</pallas_src>

<mosaic_0001>
module attributes {stable_mosaic.version = 11 : i64} {
  func.func private @main(%arg0: i32) attributes {dimension_semantics = [#tpu.dimension_semantics<core_parallel>], iteration_bounds = array<i64: 2>, tpu.core_type = #tpu.core_type<sc_scalar_subcore>, window_params = []} {
    return
  }
}

module attributes {stable_mosaic.version = 11 : i64} {
  func.func private @main(%arg0: i32) attributes {dimension_semantics = [#tpu.dimension_semantics<core_parallel>], iteration_bounds = array<i64: 2>, tpu.core_type = #tpu.core_type<sc_scalar_subcore>, window_params = []} {
    return
  }
}

module attributes {stable_mosaic.version = 11 : i64} {
  func.func @kernel(%arg0: i32, %arg1: memref<1x3x4x16x16xf32, #tpu.memory_space<vmem>>, %arg2: memref<1x4x4x16x16xf32, #tpu.memory_space<vmem>>, %arg3: memref<16x16xf32, #tpu.memory_space<vmem>>, %arg4: memref<16x16xf32, #tpu.memory_space<vmem>>, %arg5: memref<1x1x128xf32, #tpu.memory_space<vmem>>) attributes {dimension_semantics = [#tpu.dimension_semantics<parallel>], iteration_bounds = array<i64: 2>, scalar_prefetch = 0 : i64, scratch_operands = 0 : i64, tpu.core_type = #tpu.core_type<tc>, window_params = [{transform_indices = @transform_0, window_bounds = array<i64: 1, 3, 4, 16, 16>}, {transform_indices = @transform_1, window_bounds = array<i64: 1, 4, 4, 16, 16>}, {pipeline_mode = #tpu.pipeline_mode<synchronous>, transform_indices = @transform_2, window_bounds = array<i64: 16, 16>}, {pipeline_mode = #tpu.pipeline_mode<synchronous>, transform_indices = @transform_3, window_bounds = array<i64: 16, 16>}, {transform_indices = @transform_4, window_bounds = array<i64: 1, 1, 128>}]} {
    %c0 = arith.constant 0 : index
    %c0_0 = arith.constant 0 : index
    %0 = vector.load %arg3[%c0, %c0_0] : memref<16x16xf32, #tpu.memory_space<vmem>>, vector<16x16xf32>
    %c0_1 = arith.constant 0 : index
    %c0_2 = arith.constant 0 : index
    %1 = vector.load %arg4[%c0_1, %c0_2] : memref<16x16xf32, #tpu.memory_space<vmem>>, vector<16x16xf32>
    %c0_3 = arith.constant 0 : index
    %c3 = arith.constant 3 : index
    %c0_4 = arith.constant 0 : index
    %c0_5 = arith.constant 0 : index
    %c0_6 = arith.constant 0 : index
    %2 = vector.load %arg2[%c0_3, %c3, %c0_4, %c0_5, %c0_6] : memref<1x4x4x16x16xf32, #tpu.memory_space<vmem>>, vector<1x1x4x16x16xf32>
    %3 = vector.shape_cast %2 : vector<1x1x4x16x16xf32> to vector<4x16x16xf32>
    %cst = arith.constant 0.000000e+00 : f32
    %4 = vector.broadcast %cst : f32 to vector<4x16x16xf32>
    %5 = arith.cmpf ogt, %3, %4 : vector<4x16x16xf32>
    %6 = arith.extui %5 : vector<4x16x16xi1> to vector<4x16x16xi32>
    %7 = arith.sitofp %6 : vector<4x16x16xi32> to vector<4x16x16xf32>
    %8 = vector.shape_cast %7 : vector<4x16x16xf32> to vector<64x16xf32>
    %9 = vector.shape_cast %8 : vector<64x16xf32> to vector<1x64x16xf32>
    %cst_7 = arith.constant dense<0.000000e+00> : vector<1xf32>
    %10 = vector.multi_reduction <add>, %9, %cst_7 [1, 2] : vector<1x64x16xf32> to vector<1xf32>
    %11 = vector.shape_cast %10 : vector<1xf32> to vector<1x1x1xf32>
    %12 = vector.extract %11[0, 0, 0] : f32 from vector<1x1x1xf32>
    %c0_8 = arith.constant 0 : index
    %c0_9 = arith.constant 0 : index
    %c0_10 = arith.constant 0 : index
    %c0_11 = arith.constant 0 : index
    %c0_12 = arith.constant 0 : index
    %13 = vector.load %arg1[%c0_8, %c0_9, %c0_10, %c0_11, %c0_12] : memref<1x3x4x16x16xf32, #tpu.memory_space<vmem>>, vector<1x1x4x16x16xf32>
    %14 = vector.shape_cast %13 : vector<1x1x4x16x16xf32> to vector<4x16x16xf32>
    %c0_13 = arith.constant 0 : index
    %c0_14 = arith.constant 0 : index
    %c0_15 = arith.constant 0 : index
    %c0_16 = arith.constant 0 : index
    %c0_17 = arith.constant 0 : index
    %15 = vector.load %arg2[%c0_13, %c0_14, %c0_15, %c0_16, %c0_17] : memref<1x4x4x16x16xf32, #tpu.memory_space<vmem>>, vector<1x1x4x16x16xf32>
    %16 = vector.shape_cast %15 : vector<1x1x4x16x16xf32> to vector<4x16x16xf32>
    %17 = arith.subf %14, %16 : vector<4x16x16xf32>
    %18 = math.absf %17 : vector<4x16x16xf32>
    %19 = arith.mulf %18, %7 : vector<4x16x16xf32>
    %20 = vector.shape_cast %19 : vector<4x16x16xf32> to vector<64x16xf32>
    %21 = vector.shape_cast %20 : vector<64x16xf32> to vector<1x64x16xf32>
    %cst_18 = arith.constant dense<0.000000e+00> : vector<1xf32>
    %22 = vector.multi_reduction <add>, %21, %cst_18 [1, 2] : vector<1x64x16xf32> to vector<1xf32>
    %23 = vector.shape_cast %22 : vector<1xf32> to vector<1x1x1xf32>
    %24 = vector.extract %23[0, 0, 0] : f32 from vector<1x1x1xf32>
    %25 = vector.shape_cast %14 : vector<4x16x16xf32> to vector<64x16xf32>
    %cst_19 = arith.constant dense<0.000000e+00> : vector<64x16xf32>
    %26 = tpu.matmul %25, %1, %cst_19 {dimension_numbers = #tpu.dot_dimension_numbers<[1], [0], [0], [1], [0, 0, 1, 1], [], []>} : vector<64x16xf32>, vector<16x16xf32>, vector<64x16xf32> -> vector<64x16xf32>
    %27 = vector.shape_cast %26 : vector<64x16xf32> to vector<4x16x16xf32>
    %28 = vector.extract_strided_slice %27 {offsets = [0, 0, 0], sizes = [1, 16, 16], strides = [1, 1, 1]} : vector<4x16x16xf32> to vector<1x16x16xf32>
    %29 = vector.shape_cast %28 : vector<1x16x16xf32> to vector<16x16xf32>
    %cst_20 = arith.constant 0.328021348 : f32
    %30 = vector.broadcast %cst_20 : f32 to vector<16x16xf32>
    %31 = arith.mulf %29, %30 : vector<16x16xf32>
    %32 = vector.extract_strided_slice %27 {offsets = [1, 0, 0], sizes = [1, 16, 16], strides = [1, 1, 1]} : vector<4x16x16xf32> to vector<1x16x16xf32>
    %33 = vector.shape_cast %32 : vector<1x16x16xf32> to vector<16x16xf32>
    %cst_21 = arith.constant 0.198955014 : f32
    %34 = vector.broadcast %cst_21 : f32 to vector<16x16xf32>
    %35 = arith.mulf %33, %34 : vector<16x16xf32>
    %36 = arith.addf %31, %35 : vector<16x16xf32>
    %cst_22 = arith.constant dense<0.000000e+00> : vector<16x16xf32>
    %37 = tpu.matmul %0, %36, %cst_22 {dimension_numbers = #tpu.dot_dimension_numbers<[1], [0], [0], [1], [0, 0, 1, 1], [], []>} : vector<16x16xf32>, vector<16x16xf32>, vector<16x16xf32> -> vector<16x16xf32>
    %38 = vector.extract_strided_slice %14 {offsets = [0, 0, 0], sizes = [1, 16, 16], strides = [1, 1, 1]} : vector<4x16x16xf32> to vector<1x16x16xf32>
    %39 = vector.shape_cast %38 : vector<1x16x16xf32> to vector<16x16xf32>
    %40 = arith.subf %39, %37 : vector<16x16xf32>
    %41 = math.absf %40 : vector<16x16xf32>
    %42 = vector.shape_cast %41 : vector<16x16xf32> to vector<1x16x16xf32>
    %cst_23 = arith.constant dense<0.000000e+00> : vector<1xf32>
    %43 = vector.multi_reduction <add>, %42, %cst_23 [1, 2] : vector<1x16x16xf32> to vector<1xf32>
    %44 = vector.shape_cast %43 : vector<1xf32> to vector<1x1x1xf32>
    %45 = vector.extract %44[0, 0, 0] : f32 from vector<1x1x1xf32>
    %cst_24 = arith.constant 0.000000e+00 : f32
    %46 = arith.addf %cst_24, %45 : f32
    %47 = vector.extract_strided_slice %27 {offsets = [0, 0, 0], sizes = [1, 16, 16], strides = [1, 1, 1]} : vector<4x16x16xf32> to vector<1x16x16xf32>
    %48 = vector.shape_cast %47 : vector<1x16x16xf32> to vector<16x16xf32>
    %cst_25 = arith.constant 0.328021348 : f32
    %49 = vector.broadcast %cst_25 : f32 to vector<16x16xf32>
    %50 = arith.mulf %48, %49 : vector<16x16xf32>
    %51 = vector.extract_strided_slice %27 {offsets = [1, 0, 0], sizes = [1, 16, 16], strides = [1, 1, 1]} : vector<4x16x16xf32> to vector<1x16x16xf32>
    %52 = vector.shape_cast %51 : vector<1x16x16xf32> to vector<16x16xf32>
    %cst_26 = arith.constant 0.274068624 : f32
    %53 = vector.broadcast %cst_26 : f32 to vector<16x16xf32>
    %54 = arith.mulf %52, %53 : vector<16x16xf32>
    %55 = arith.addf %50, %54 : vector<16x16xf32>
    %56 = vector.extract_strided_slice %27 {offsets = [2, 0, 0], sizes = [1, 16, 16], strides = [1, 1, 1]} : vector<4x16x16xf32> to vector<1x16x16xf32>
    %57 = vector.shape_cast %56 : vector<1x16x16xf32> to vector<16x16xf32>
    %cst_27 = arith.constant 0.123841405 : f32
    %58 = vector.broadcast %cst_27 : f32 to vector<16x16xf32>
    %59 = arith.mulf %57, %58 : vector<16x16xf32>
    %60 = arith.addf %55, %59 : vector<16x16xf32>
    %61 = vector.extract_strided_slice %27 {offsets = [3, 0, 0], sizes = [1, 16, 16], strides = [1, 1, 1]} : vector<4x16x16xf32> to vector<1x16x16xf32>
    %62 = vector.shape_cast %61 : vector<1x16x16xf32> to vector<16x16xf32>
    %cst_28 = arith.constant 0.0751136094 : f32
    %63 = vector.broadcast %cst_28 : f32 to vector<16x16xf32>
    %64 = arith.mulf %62, %63 : vector<16x16xf32>
    %65 = arith.addf %60, %64 : vector<16x16xf32>
    %cst_29 = arith.constant dense<0.000000e+00> : vector<16x16xf32>
    %66 = tpu.matmul %0, %65, %cst_29 {dimension_numbers = #tpu.dot_dimension_numbers<[1], [0], [0], [1], [0, 0, 1, 1], [], []>} : vector<16x16xf32>, vector<16x16xf32>, vector<16x16xf32> -> vector<16x16xf32>
    %67 = vector.extract_strided_slice %14 {offsets = [1, 0, 0], sizes = [1, 16, 16], strides = [1, 1, 1]} : vector<4x16x16xf32> to vector<1x16x16xf32>
    %68 = vector.shape_cast %67 : vector<1x16x16xf32> to vector<16x16xf32>
    %69 = arith.subf %68, %66 : vector<16x16xf32>
    %70 = math.absf %69 : vector<16x16xf32>
    %71 = vector.shape_cast %70 : vector<16x16xf32> to vector<1x16x16xf32>
    %cst_30 = arith.constant dense<0.000000e+00> : vector<1xf32>
    %72 = vector.multi_reduction <add>, %71, %cst_30 [1, 2] : vector<1x16x16xf32> to vector<1xf32>
    %73 = vector.shape_cast %72 : vector<1xf32> to vector<1x1x1xf32>
    %74 = vector.extract %73[0, 0, 0] : f32 from vector<1x1x1xf32>
    %75 = arith.addf %46, %74 : f32
    %76 = vector.extract_strided_slice %27 {offsets = [0, 0, 0], sizes = [1, 16, 16], strides = [1, 1, 1]} : vector<4x16x16xf32> to vector<1x16x16xf32>
    %77 = vector.shape_cast %76 : vector<1x16x16xf32> to vector<16x16xf32>
    %cst_31 = arith.constant 0.123841405 : f32
    %78 = vector.broadcast %cst_31 : f32 to vector<16x16xf32>
    %79 = arith.mulf %77, %78 : vector<16x16xf32>
    %80 = vector.extract_strided_slice %27 {offsets = [1, 0, 0], sizes = [1, 16, 16], strides = [1, 1, 1]} : vector<4x16x16xf32> to vector<1x16x16xf32>
    %81 = vector.shape_cast %80 : vector<1x16x16xf32> to vector<16x16xf32>
    %cst_32 = arith.constant 0.274068624 : f32
    %82 = vector.broadcast %cst_32 : f32 to vector<16x16xf32>
    %83 = arith.mulf %81, %82 : vector<16x16xf32>
    %84 = arith.addf %79, %83 : vector<16x16xf32>
    %85 = vector.extract_strided_slice %27 {offsets = [2, 0, 0], sizes = [1, 16, 16], strides = [1, 1, 1]} : vector<4x16x16xf32> to vector<1x16x16xf32>
    %86 = vector.shape_cast %85 : vector<1x16x16xf32> to vector<16x16xf32>
    %cst_33 = arith.constant 0.328021348 : f32
    %87 = vector.broadcast %cst_33 : f32 to vector<16x16xf32>
    %88 = arith.mulf %86, %87 : vector<16x16xf32>
    %89 = arith.addf %84, %88 : vector<16x16xf32>
    %90 = vector.extract_strided_slice %27 {offsets = [3, 0, 0], sizes = [1, 16, 16], strides = [1, 1, 1]} : vector<4x16x16xf32> to vector<1x16x16xf32>
    %91 = vector.shape_cast %90 : vector<1x16x16xf32> to vector<16x16xf32>
    %cst_34 = arith.constant 0.198955014 : f32
    %92 = vector.broadcast %cst_34 : f32 to vector<16x16xf32>
    %93 = arith.mulf %91, %92 : vector<16x16xf32>
    %94 = arith.addf %89, %93 : vector<16x16xf32>
    %cst_35 = arith.constant dense<0.000000e+00> : vector<16x16xf32>
    %95 = tpu.matmul %0, %94, %cst_35 {dimension_numbers = #tpu.dot_dimension_numbers<[1], [0], [0], [1], [0, 0, 1, 1], [], []>} : vector<16x16xf32>, vector<16x16xf32>, vector<16x16xf32> -> vector<16x16xf32>
    %96 = vector.extract_strided_slice %14 {offsets = [2, 0, 0], sizes = [1, 16, 16], strides = [1, 1, 1]} : vector<4x16x16xf32> to vector<1x16x16xf32>
    %97 = vector.shape_cast %96 : vector<1x16x16xf32> to vector<16x16xf32>
    %98 = arith.subf %97, %95 : vector<16x16xf32>
    %99 = math.absf %98 : vector<16x16xf32>
    %100 = vector.shape_cast %99 : vector<16x16xf32> to vector<1x16x16xf32>
    %cst_36 = arith.constant dense<0.000000e+00> : vector<1xf32>
    %101 = vector.multi_reduction <add>, %100, %cst_36 [1, 2] : vector<1x16x16xf32> to vector<1xf32>
    %102 = vector.shape_cast %101 : vector<1xf32> to vector<1x1x1xf32>
    %103 = vector.extract %102[0, 0, 0] : f32 from vector<1x1x1xf32>
    %104 = arith.addf %75, %103 : f32
    %105 = vector.extract_strided_slice %27 {offsets = [1, 0, 0], sizes = [1, 16, 16], strides = [1, 1, 1]} : vector<4x16x16xf32> to vector<1x16x16xf32>
    %106 = vector.shape_cast %105 : vector<1x16x16xf32> to vector<16x16xf32>
    %cst_37 = arith.constant 0.198955014 : f32
    %107 = vector.broadcast %cst_37 : f32 to vector<16x16xf32>
    %108 = arith.mulf %106, %107 : vector<16x16xf32>
    %109 = vector.extract_strided_slice %27 {offsets = [2, 0, 0], sizes = [1, 16, 16], strides = [1, 1, 1]} : vector<4x16x16xf32> to vector<1x16x16xf32>
    %110 = vector.shape_cast %109 : vector<1x16x16xf32> to vector<16x16xf32>
    %cst_38 = arith.constant 0.328021348 : f32
    %111 = vector.broadcast %cst_38 : f32 to vector<16x16xf32>
    %112 = arith.mulf %110, %111 : vector<16x16xf32>
    %113 = arith.addf %108, %112 : vector<16x16xf32>
    %114 = vector.extract_strided_slice %27 {offsets = [3, 0, 0], sizes = [1, 16, 16], strides = [1, 1, 1]} : vector<4x16x16xf32> to vector<1x16x16xf32>
    %115 = vector.shape_cast %114 : vector<1x16x16xf32> to vector<16x16xf32>
    %cst_39 = arith.constant 0.198955014 : f32
    %116 = vector.broadcast %cst_39 : f32 to vector<16x16xf32>
    %117 = arith.mulf %115, %116 : vector<16x16xf32>
    %118 = arith.addf %113, %117 : vector<16x16xf32>
    %cst_40 = arith.constant dense<0.000000e+00> : vector<16x16xf32>
    %119 = tpu.matmul %0, %118, %cst_40 {dimension_numbers = #tpu.dot_dimension_numbers<[1], [0], [0], [1], [0, 0, 1, 1], [], []>} : vector<16x16xf32>, vector<16x16xf32>, vector<16x16xf32> -> vector<16x16xf32>
    %120 = vector.extract_strided_slice %14 {offsets = [3, 0, 0], sizes = [1, 16, 16], strides = [1, 1, 1]} : vector<4x16x16xf32> to vector<1x16x16xf32>
    %121 = vector.shape_cast %120 : vector<1x16x16xf32> to vector<16x16xf32>
    %122 = arith.subf %121, %119 : vector<16x16xf32>
    %123 = math.absf %122 : vector<16x16xf32>
    %124 = vector.shape_cast %123 : vector<16x16xf32> to vector<1x16x16xf32>
    %cst_41 = arith.constant dense<0.000000e+00> : vector<1xf32>
    %125 = vector.multi_reduction <add>, %124, %cst_41 [1, 2] : vector<1x16x16xf32> to vector<1xf32>
    %126 = vector.shape_cast %125 : vector<1xf32> to vector<1x1x1xf32>
    %127 = vector.extract %126[0, 0, 0] : f32 from vector<1x1x1xf32>
    %128 = arith.addf %104, %127 : f32
    %c0_42 = arith.constant 0 : index
    %c1 = arith.constant 1 : index
    %c0_43 = arith.constant 0 : index
    %c0_44 = arith.constant 0 : index
    %c0_45 = arith.constant 0 : index
    %129 = vector.load %arg1[%c0_42, %c1, %c0_43, %c0_44, %c0_45] : memref<1x3x4x16x16xf32, #tpu.memory_space<vmem>>, vector<1x1x4x16x16xf32>
    %130 = vector.shape_cast %129 : vector<1x1x4x16x16xf32> to vector<4x16x16xf32>
    %c0_46 = arith.constant 0 : index
    %c1_47 = arith.constant 1 : index
    %c0_48 = arith.constant 0 : index
    %c0_49 = arith.constant 0 : index
    %c0_50 = arith.constant 0 : index
    %131 = vector.load %arg2[%c0_46, %c1_47, %c0_48, %c0_49, %c0_50] : memref<1x4x4x16x16xf32, #tpu.memory_space<vmem>>, vector<1x1x4x16x16xf32>
    %132 = vector.shape_cast %131 : vector<1x1x4x16x16xf32> to vector<4x16x16xf32>
    %133 = arith.subf %130, %132 : vector<4x16x16xf32>
    %134 = math.absf %133 : vector<4x16x16xf32>
    %135 = arith.mulf %134, %7 : vector<4x16x16xf32>
    %136 = vector.shape_cast %135 : vector<4x16x16xf32> to vector<64x16xf32>
    %137 = vector.shape_cast %136 : vector<64x16xf32> to vector<1x64x16xf32>
    %cst_51 = arith.constant dense<0.000000e+00> : vector<1xf32>
    %138 = vector.multi_reduction <add>, %137, %cst_51 [1, 2] : vector<1x64x16xf32> to vector<1xf32>
    %139 = vector.shape_cast %138 : vector<1xf32> to vector<1x1x1xf32>
    %140 = vector.extract %139[0, 0, 0] : f32 from vector<1x1x1xf32>
    %141 = vector.shape_cast %130 : vector<4x16x16xf32> to vector<64x16xf32>
    %cst_52 = arith.constant dense<0.000000e+00> : vector<64x16xf32>
    %142 = tpu.matmul %141, %1, %cst_52 {dimension_numbers = #tpu.dot_dimension_numbers<[1], [0], [0], [1], [0, 0, 1, 1], [], []>} : vector<64x16xf32>, vector<16x16xf32>, vector<64x16xf32> -> vector<64x16xf32>
    %143 = vector.shape_cast %142 : vector<64x16xf32> to vector<4x16x16xf32>
    %144 = vector.extract_strided_slice %143 {offsets = [0, 0, 0], sizes = [1, 16, 16], strides = [1, 1, 1]} : vector<4x16x16xf32> to vector<1x16x16xf32>
    %145 = vector.shape_cast %144 : vector<1x16x16xf32> to vector<16x16xf32>
    %cst_53 = arith.constant 0.328021348 : f32
    %146 = vector.broadcast %cst_53 : f32 to vector<16x16xf32>
    %147 = arith.mulf %145, %146 : vector<16x16xf32>
    %148 = vector.extract_strided_slice %143 {offsets = [1, 0, 0], sizes = [1, 16, 16], strides = [1, 1, 1]} : vector<4x16x16xf32> to vector<1x16x16xf32>
    %149 = vector.shape_cast %148 : vector<1x16x16xf32> to vector<16x16xf32>
    %cst_54 = arith.constant 0.198955014 : f32
    %150 = vector.broadcast %cst_54 : f32 to vector<16x16xf32>
    %151 = arith.mulf %149, %150 : vector<16x16xf32>
    %152 = arith.addf %147, %151 : vector<16x16xf32>
    %cst_55 = arith.constant dense<0.000000e+00> : vector<16x16xf32>
    %153 = tpu.matmul %0, %152, %cst_55 {dimension_numbers = #tpu.dot_dimension_numbers<[1], [0], [0], [1], [0, 0, 1, 1], [], []>} : vector<16x16xf32>, vector<16x16xf32>, vector<16x16xf32> -> vector<16x16xf32>
    %154 = vector.extract_strided_slice %130 {offsets = [0, 0, 0], sizes = [1, 16, 16], strides = [1, 1, 1]} : vector<4x16x16xf32> to vector<1x16x16xf32>
    %155 = vector.shape_cast %154 : vector<1x16x16xf32> to vector<16x16xf32>
    %156 = arith.subf %155, %153 : vector<16x16xf32>
    %157 = math.absf %156 : vector<16x16xf32>
    %158 = vector.shape_cast %157 : vector<16x16xf32> to vector<1x16x16xf32>
    %cst_56 = arith.constant dense<0.000000e+00> : vector<1xf32>
    %159 = vector.multi_reduction <add>, %158, %cst_56 [1, 2] : vector<1x16x16xf32> to vector<1xf32>
    %160 = vector.shape_cast %159 : vector<1xf32> to vector<1x1x1xf32>
    %161 = vector.extract %160[0, 0, 0] : f32 from vector<1x1x1xf32>
    %162 = arith.addf %128, %161 : f32
    %163 = vector.extract_strided_slice %143 {offsets = [0, 0, 0], sizes = [1, 16, 16], strides = [1, 1, 1]} : vector<4x16x16xf32> to vector<1x16x16xf32>
    %164 = vector.shape_cast %163 : vector<1x16x16xf32> to vector<16x16xf32>
    %cst_57 = arith.constant 0.328021348 : f32
    %165 = vector.broadcast %cst_57 : f32 to vector<16x16xf32>
    %166 = arith.mulf %164, %165 : vector<16x16xf32>
    %167 = vector.extract_strided_slice %143 {offsets = [1, 0, 0], sizes = [1, 16, 16], strides = [1, 1, 1]} : vector<4x16x16xf32> to vector<1x16x16xf32>
    %168 = vector.shape_cast %167 : vector<1x16x16xf32> to vector<16x16xf32>
    %cst_58 = arith.constant 0.274068624 : f32
    %169 = vector.broadcast %cst_58 : f32 to vector<16x16xf32>
    %170 = arith.mulf %168, %169 : vector<16x16xf32>
    %171 = arith.addf %166, %170 : vector<16x16xf32>
    %172 = vector.extract_strided_slice %143 {offsets = [2, 0, 0], sizes = [1, 16, 16], strides = [1, 1, 1]} : vector<4x16x16xf32> to vector<1x16x16xf32>
    %173 = vector.shape_cast %172 : vector<1x16x16xf32> to vector<16x16xf32>
    %cst_59 = arith.constant 0.123841405 : f32
    %174 = vector.broadcast %cst_59 : f32 to vector<16x16xf32>
    %175 = arith.mulf %173, %174 : vector<16x16xf32>
    %176 = arith.addf %171, %175 : vector<16x16xf32>
    %177 = vector.extract_strided_slice %143 {offsets = [3, 0, 0], sizes = [1, 16, 16], strides = [1, 1, 1]} : vector<4x16x16xf32> to vector<1x16x16xf32>
    %178 = vector.shape_cast %177 : vector<1x16x16xf32> to vector<16x16xf32>
    %cst_60 = arith.constant 0.0751136094 : f32
    %179 = vector.broadcast %cst_60 : f32 to vector<16x16xf32>
    %180 = arith.mulf %178, %179 : vector<16x16xf32>
    %181 = arith.addf %176, %180 : vector<16x16xf32>
    %cst_61 = arith.constant dense<0.000000e+00> : vector<16x16xf32>
    %182 = tpu.matmul %0, %181, %cst_61 {dimension_numbers = #tpu.dot_dimension_numbers<[1], [0], [0], [1], [0, 0, 1, 1], [], []>} : vector<16x16xf32>, vector<16x16xf32>, vector<16x16xf32> -> vector<16x16xf32>
    %183 = vector.extract_strided_slice %130 {offsets = [1, 0, 0], sizes = [1, 16, 16], strides = [1, 1, 1]} : vector<4x16x16xf32> to vector<1x16x16xf32>
    %184 = vector.shape_cast %183 : vector<1x16x16xf32> to vector<16x16xf32>
    %185 = arith.subf %184, %182 : vector<16x16xf32>
    %186 = math.absf %185 : vector<16x16xf32>
    %187 = vector.shape_cast %186 : vector<16x16xf32> to vector<1x16x16xf32>
    %cst_62 = arith.constant dense<0.000000e+00> : vector<1xf32>
    %188 = vector.multi_reduction <add>, %187, %cst_62 [1, 2] : vector<1x16x16xf32> to vector<1xf32>
    %189 = vector.shape_cast %188 : vector<1xf32> to vector<1x1x1xf32>
    %190 = vector.extract %189[0, 0, 0] : f32 from vector<1x1x1xf32>
    %191 = arith.addf %162, %190 : f32
    %192 = vector.extract_strided_slice %143 {offsets = [0, 0, 0], sizes = [1, 16, 16], strides = [1, 1, 1]} : vector<4x16x16xf32> to vector<1x16x16xf32>
    %193 = vector.shape_cast %192 : vector<1x16x16xf32> to vector<16x16xf32>
    %cst_63 = arith.constant 0.123841405 : f32
    %194 = vector.broadcast %cst_63 : f32 to vector<16x16xf32>
    %195 = arith.mulf %193, %194 : vector<16x16xf32>
    %196 = vector.extract_strided_slice %143 {offsets = [1, 0, 0], sizes = [1, 16, 16], strides = [1, 1, 1]} : vector<4x16x16xf32> to vector<1x16x16xf32>
    %197 = vector.shape_cast %196 : vector<1x16x16xf32> to vector<16x16xf32>
    %cst_64 = arith.constant 0.274068624 : f32
    %198 = vector.broadcast %cst_64 : f32 to vector<16x16xf32>
    %199 = arith.mulf %197, %198 : vector<16x16xf32>
    %200 = arith.addf %195, %199 : vector<16x16xf32>
    %201 = vector.extract_strided_slice %143 {offsets = [2, 0, 0], sizes = [1, 16, 16], strides = [1, 1, 1]} : vector<4x16x16xf32> to vector<1x16x16xf32>
    %202 = vector.shape_cast %201 : vector<1x16x16xf32> to vector<16x16xf32>
    %cst_65 = arith.constant 0.328021348 : f32
    %203 = vector.broadcast %cst_65 : f32 to vector<16x16xf32>
    %204 = arith.mulf %202, %203 : vector<16x16xf32>
    %205 = arith.addf %200, %204 : vector<16x16xf32>
    %206 = vector.extract_strided_slice %143 {offsets = [3, 0, 0], sizes = [1, 16, 16], strides = [1, 1, 1]} : vector<4x16x16xf32> to vector<1x16x16xf32>
    %207 = vector.shape_cast %206 : vector<1x16x16xf32> to vector<16x16xf32>
    %cst_66 = arith.constant 0.198955014 : f32
    %208 = vector.broadcast %cst_66 : f32 to vector<16x16xf32>
    %209 = arith.mulf %207, %208 : vector<16x16xf32>
    %210 = arith.addf %205, %209 : vector<16x16xf32>
    %cst_67 = arith.constant dense<0.000000e+00> : vector<16x16xf32>
    %211 = tpu.matmul %0, %210, %cst_67 {dimension_numbers = #tpu.dot_dimension_numbers<[1], [0], [0], [1], [0, 0, 1, 1], [], []>} : vector<16x16xf32>, vector<16x16xf32>, vector<16x16xf32> -> vector<16x16xf32>
    %212 = vector.extract_strided_slice %130 {offsets = [2, 0, 0], sizes = [1, 16, 16], strides = [1, 1, 1]} : vector<4x16x16xf32> to vector<1x16x16xf32>
    %213 = vector.shape_cast %212 : vector<1x16x16xf32> to vector<16x16xf32>
    %214 = arith.subf %213, %211 : vector<16x16xf32>
    %215 = math.absf %214 : vector<16x16xf32>
    %216 = vector.shape_cast %215 : vector<16x16xf32> to vector<1x16x16xf32>
    %cst_68 = arith.constant dense<0.000000e+00> : vector<1xf32>
    %217 = vector.multi_reduction <add>, %216, %cst_68 [1, 2] : vector<1x16x16xf32> to vector<1xf32>
    %218 = vector.shape_cast %217 : vector<1xf32> to vector<1x1x1xf32>
    %219 = vector.extract %218[0, 0, 0] : f32 from vector<1x1x1xf32>
    %220 = arith.addf %191, %219 : f32
    %221 = vector.extract_strided_slice %143 {offsets = [1, 0, 0], sizes = [1, 16, 16], strides = [1, 1, 1]} : vector<4x16x16xf32> to vector<1x16x16xf32>
    %222 = vector.shape_cast %221 : vector<1x16x16xf32> to vector<16x16xf32>
    %cst_69 = arith.constant 0.198955014 : f32
    %223 = vector.broadcast %cst_69 : f32 to vector<16x16xf32>
    %224 = arith.mulf %222, %223 : vector<16x16xf32>
    %225 = vector.extract_strided_slice %143 {offsets = [2, 0, 0], sizes = [1, 16, 16], strides = [1, 1, 1]} : vector<4x16x16xf32> to vector<1x16x16xf32>
    %226 = vector.shape_cast %225 : vector<1x16x16xf32> to vector<16x16xf32>
    %cst_70 = arith.constant 0.328021348 : f32
    %227 = vector.broadcast %cst_70 : f32 to vector<16x16xf32>
    %228 = arith.mulf %226, %227 : vector<16x16xf32>
    %229 = arith.addf %224, %228 : vector<16x16xf32>
    %230 = vector.extract_strided_slice %143 {offsets = [3, 0, 0], sizes = [1, 16, 16], strides = [1, 1, 1]} : vector<4x16x16xf32> to vector<1x16x16xf32>
    %231 = vector.shape_cast %230 : vector<1x16x16xf32> to vector<16x16xf32>
    %cst_71 = arith.constant 0.198955014 : f32
    %232 = vector.broadcast %cst_71 : f32 to vector<16x16xf32>
    %233 = arith.mulf %231, %232 : vector<16x16xf32>
    %234 = arith.addf %229, %233 : vector<16x16xf32>
    %cst_72 = arith.constant dense<0.000000e+00> : vector<16x16xf32>
    %235 = tpu.matmul %0, %234, %cst_72 {dimension_numbers = #tpu.dot_dimension_numbers<[1], [0], [0], [1], [0, 0, 1, 1], [], []>} : vector<16x16xf32>, vector<16x16xf32>, vector<16x16xf32> -> vector<16x16xf32>
    %236 = vector.extract_strided_slice %130 {offsets = [3, 0, 0], sizes = [1, 16, 16], strides = [1, 1, 1]} : vector<4x16x16xf32> to vector<1x16x16xf32>
    %237 = vector.shape_cast %236 : vector<1x16x16xf32> to vector<16x16xf32>
    %238 = arith.subf %237, %235 : vector<16x16xf32>
    %239 = math.absf %238 : vector<16x16xf32>
    %240 = vector.shape_cast %239 : vector<16x16xf32> to vector<1x16x16xf32>
    %cst_73 = arith.constant dense<0.000000e+00> : vector<1xf32>
    %241 = vector.multi_reduction <add>, %240, %cst_73 [1, 2] : vector<1x16x16xf32> to vector<1xf32>
    %242 = vector.shape_cast %241 : vector<1xf32> to vector<1x1x1xf32>
    %243 = vector.extract %242[0, 0, 0] : f32 from vector<1x1x1xf32>
    %244 = arith.addf %220, %243 : f32
    %c0_74 = arith.constant 0 : index
    %c2 = arith.constant 2 : index
    %c0_75 = arith.constant 0 : index
    %c0_76 = arith.constant 0 : index
    %c0_77 = arith.constant 0 : index
    %245 = vector.load %arg1[%c0_74, %c2, %c0_75, %c0_76, %c0_77] : memref<1x3x4x16x16xf32, #tpu.memory_space<vmem>>, vector<1x1x4x16x16xf32>
    %246 = vector.shape_cast %245 : vector<1x1x4x16x16xf32> to vector<4x16x16xf32>
    %c0_78 = arith.constant 0 : index
    %c2_79 = arith.constant 2 : index
    %c0_80 = arith.constant 0 : index
    %c0_81 = arith.constant 0 : index
    %c0_82 = arith.constant 0 : index
    %247 = vector.load %arg2[%c0_78, %c2_79, %c0_80, %c0_81, %c0_82] : memref<1x4x4x16x16xf32, #tpu.memory_space<vmem>>, vector<1x1x4x16x16xf32>
    %248 = vector.shape_cast %247 : vector<1x1x4x16x16xf32> to vector<4x16x16xf32>
    %249 = arith.subf %246, %248 : vector<4x16x16xf32>
    %250 = math.absf %249 : vector<4x16x16xf32>
    %251 = arith.mulf %250, %7 : vector<4x16x16xf32>
    %252 = vector.shape_cast %251 : vector<4x16x16xf32> to vector<64x16xf32>
    %253 = vector.shape_cast %252 : vector<64x16xf32> to vector<1x64x16xf32>
    %cst_83 = arith.constant dense<0.000000e+00> : vector<1xf32>
    %254 = vector.multi_reduction <add>, %253, %cst_83 [1, 2] : vector<1x64x16xf32> to vector<1xf32>
    %255 = vector.shape_cast %254 : vector<1xf32> to vector<1x1x1xf32>
    %256 = vector.extract %255[0, 0, 0] : f32 from vector<1x1x1xf32>
    %257 = vector.shape_cast %246 : vector<4x16x16xf32> to vector<64x16xf32>
    %cst_84 = arith.constant dense<0.000000e+00> : vector<64x16xf32>
    %258 = tpu.matmul %257, %1, %cst_84 {dimension_numbers = #tpu.dot_dimension_numbers<[1], [0], [0], [1], [0, 0, 1, 1], [], []>} : vector<64x16xf32>, vector<16x16xf32>, vector<64x16xf32> -> vector<64x16xf32>
    %259 = vector.shape_cast %258 : vector<64x16xf32> to vector<4x16x16xf32>
    %260 = vector.extract_strided_slice %259 {offsets = [0, 0, 0], sizes = [1, 16, 16], strides = [1, 1, 1]} : vector<4x16x16xf32> to vector<1x16x16xf32>
    %261 = vector.shape_cast %260 : vector<1x16x16xf32> to vector<16x16xf32>
    %cst_85 = arith.constant 0.328021348 : f32
    %262 = vector.broadcast %cst_85 : f32 to vector<16x16xf32>
    %263 = arith.mulf %261, %262 : vector<16x16xf32>
    %264 = vector.extract_strided_slice %259 {offsets = [1, 0, 0], sizes = [1, 16, 16], strides = [1, 1, 1]} : vector<4x16x16xf32> to vector<1x16x16xf32>
    %265 = vector.shape_cast %264 : vector<1x16x16xf32> to vector<16x16xf32>
    %cst_86 = arith.constant 0.198955014 : f32
    %266 = vector.broadcast %cst_86 : f32 to vector<16x16xf32>
    %267 = arith.mulf %265, %266 : vector<16x16xf32>
    %268 = arith.addf %263, %267 : vector<16x16xf32>
    %cst_87 = arith.constant dense<0.000000e+00> : vector<16x16xf32>
    %269 = tpu.matmul %0, %268, %cst_87 {dimension_numbers = #tpu.dot_dimension_numbers<[1], [0], [0], [1], [0, 0, 1, 1], [], []>} : vector<16x16xf32>, vector<16x16xf32>, vector<16x16xf32> -> vector<16x16xf32>
    %270 = vector.extract_strided_slice %246 {offsets = [0, 0, 0], sizes = [1, 16, 16], strides = [1, 1, 1]} : vector<4x16x16xf32> to vector<1x16x16xf32>
    %271 = vector.shape_cast %270 : vector<1x16x16xf32> to vector<16x16xf32>
    %272 = arith.subf %271, %269 : vector<16x16xf32>
    %273 = math.absf %272 : vector<16x16xf32>
    %274 = vector.shape_cast %273 : vector<16x16xf32> to vector<1x16x16xf32>
    %cst_88 = arith.constant dense<0.000000e+00> : vector<1xf32>
    %275 = vector.multi_reduction <add>, %274, %cst_88 [1, 2] : vector<1x16x16xf32> to vector<1xf32>
    %276 = vector.shape_cast %275 : vector<1xf32> to vector<1x1x1xf32>
    %277 = vector.extract %276[0, 0, 0] : f32 from vector<1x1x1xf32>
    %278 = arith.addf %244, %277 : f32
    %279 = vector.extract_strided_slice %259 {offsets = [0, 0, 0], sizes = [1, 16, 16], strides = [1, 1, 1]} : vector<4x16x16xf32> to vector<1x16x16xf32>
    %280 = vector.shape_cast %279 : vector<1x16x16xf32> to vector<16x16xf32>
    %cst_89 = arith.constant 0.328021348 : f32
    %281 = vector.broadcast %cst_89 : f32 to vector<16x16xf32>
    %282 = arith.mulf %280, %281 : vector<16x16xf32>
    %283 = vector.extract_strided_slice %259 {offsets = [1, 0, 0], sizes = [1, 16, 16], strides = [1, 1, 1]} : vector<4x16x16xf32> to vector<1x16x16xf32>
    %284 = vector.shape_cast %283 : vector<1x16x16xf32> to vector<16x16xf32>
    %cst_90 = arith.constant 0.274068624 : f32
    %285 = vector.broadcast %cst_90 : f32 to vector<16x16xf32>
    %286 = arith.mulf %284, %285 : vector<16x16xf32>
    %287 = arith.addf %282, %286 : vector<16x16xf32>
    %288 = vector.extract_strided_slice %259 {offsets = [2, 0, 0], sizes = [1, 16, 16], strides = [1, 1, 1]} : vector<4x16x16xf32> to vector<1x16x16xf32>
    %289 = vector.shape_cast %288 : vector<1x16x16xf32> to vector<16x16xf32>
    %cst_91 = arith.constant 0.123841405 : f32
    %290 = vector.broadcast %cst_91 : f32 to vector<16x16xf32>
    %291 = arith.mulf %289, %290 : vector<16x16xf32>
    %292 = arith.addf %287, %291 : vector<16x16xf32>
    %293 = vector.extract_strided_slice %259 {offsets = [3, 0, 0], sizes = [1, 16, 16], strides = [1, 1, 1]} : vector<4x16x16xf32> to vector<1x16x16xf32>
    %294 = vector.shape_cast %293 : vector<1x16x16xf32> to vector<16x16xf32>
    %cst_92 = arith.constant 0.0751136094 : f32
    %295 = vector.broadcast %cst_92 : f32 to vector<16x16xf32>
    %296 = arith.mulf %294, %295 : vector<16x16xf32>
    %297 = arith.addf %292, %296 : vector<16x16xf32>
    %cst_93 = arith.constant dense<0.000000e+00> : vector<16x16xf32>
    %298 = tpu.matmul %0, %297, %cst_93 {dimension_numbers = #tpu.dot_dimension_numbers<[1], [0], [0], [1], [0, 0, 1, 1], [], []>} : vector<16x16xf32>, vector<16x16xf32>, vector<16x16xf32> -> vector<16x16xf32>
    %299 = vector.extract_strided_slice %246 {offsets = [1, 0, 0], sizes = [1, 16, 16], strides = [1, 1, 1]} : vector<4x16x16xf32> to vector<1x16x16xf32>
    %300 = vector.shape_cast %299 : vector<1x16x16xf32> to vector<16x16xf32>
    %301 = arith.subf %300, %298 : vector<16x16xf32>
    %302 = math.absf %301 : vector<16x16xf32>
    %303 = vector.shape_cast %302 : vector<16x16xf32> to vector<1x16x16xf32>
    %cst_94 = arith.constant dense<0.000000e+00> : vector<1xf32>
    %304 = vector.multi_reduction <add>, %303, %cst_94 [1, 2] : vector<1x16x16xf32> to vector<1xf32>
    %305 = vector.shape_cast %304 : vector<1xf32> to vector<1x1x1xf32>
    %306 = vector.extract %305[0, 0, 0] : f32 from vector<1x1x1xf32>
    %307 = arith.addf %278, %306 : f32
    %308 = vector.extract_strided_slice %259 {offsets = [0, 0, 0], sizes = [1, 16, 16], strides = [1, 1, 1]} : vector<4x16x16xf32> to vector<1x16x16xf32>
    %309 = vector.shape_cast %308 : vector<1x16x16xf32> to vector<16x16xf32>
    %cst_95 = arith.constant 0.123841405 : f32
    %310 = vector.broadcast %cst_95 : f32 to vector<16x16xf32>
    %311 = arith.mulf %309, %310 : vector<16x16xf32>
    %312 = vector.extract_strided_slice %259 {offsets = [1, 0, 0], sizes = [1, 16, 16], strides = [1, 1, 1]} : vector<4x16x16xf32> to vector<1x16x16xf32>
    %313 = vector.shape_cast %312 : vector<1x16x16xf32> to vector<16x16xf32>
    %cst_96 = arith.constant 0.274068624 : f32
    %314 = vector.broadcast %cst_96 : f32 to vector<16x16xf32>
    %315 = arith.mulf %313, %314 : vector<16x16xf32>
    %316 = arith.addf %311, %315 : vector<16x16xf32>
    %317 = vector.extract_strided_slice %259 {offsets = [2, 0, 0], sizes = [1, 16, 16], strides = [1, 1, 1]} : vector<4x16x16xf32> to vector<1x16x16xf32>
    %318 = vector.shape_cast %317 : vector<1x16x16xf32> to vector<16x16xf32>
    %cst_97 = arith.constant 0.328021348 : f32
    %319 = vector.broadcast %cst_97 : f32 to vector<16x16xf32>
    %320 = arith.mulf %318, %319 : vector<16x16xf32>
    %321 = arith.addf %316, %320 : vector<16x16xf32>
    %322 = vector.extract_strided_slice %259 {offsets = [3, 0, 0], sizes = [1, 16, 16], strides = [1, 1, 1]} : vector<4x16x16xf32> to vector<1x16x16xf32>
    %323 = vector.shape_cast %322 : vector<1x16x16xf32> to vector<16x16xf32>
    %cst_98 = arith.constant 0.198955014 : f32
    %324 = vector.broadcast %cst_98 : f32 to vector<16x16xf32>
    %325 = arith.mulf %323, %324 : vector<16x16xf32>
    %326 = arith.addf %321, %325 : vector<16x16xf32>
    %cst_99 = arith.constant dense<0.000000e+00> : vector<16x16xf32>
    %327 = tpu.matmul %0, %326, %cst_99 {dimension_numbers = #tpu.dot_dimension_numbers<[1], [0], [0], [1], [0, 0, 1, 1], [], []>} : vector<16x16xf32>, vector<16x16xf32>, vector<16x16xf32> -> vector<16x16xf32>
    %328 = vector.extract_strided_slice %246 {offsets = [2, 0, 0], sizes = [1, 16, 16], strides = [1, 1, 1]} : vector<4x16x16xf32> to vector<1x16x16xf32>
    %329 = vector.shape_cast %328 : vector<1x16x16xf32> to vector<16x16xf32>
    %330 = arith.subf %329, %327 : vector<16x16xf32>
    %331 = math.absf %330 : vector<16x16xf32>
    %332 = vector.shape_cast %331 : vector<16x16xf32> to vector<1x16x16xf32>
    %cst_100 = arith.constant dense<0.000000e+00> : vector<1xf32>
    %333 = vector.multi_reduction <add>, %332, %cst_100 [1, 2] : vector<1x16x16xf32> to vector<1xf32>
    %334 = vector.shape_cast %333 : vector<1xf32> to vector<1x1x1xf32>
    %335 = vector.extract %334[0, 0, 0] : f32 from vector<1x1x1xf32>
    %336 = arith.addf %307, %335 : f32
    %337 = vector.extract_strided_slice %259 {offsets = [1, 0, 0], sizes = [1, 16, 16], strides = [1, 1, 1]} : vector<4x16x16xf32> to vector<1x16x16xf32>
    %338 = vector.shape_cast %337 : vector<1x16x16xf32> to vector<16x16xf32>
    %cst_101 = arith.constant 0.198955014 : f32
    %339 = vector.broadcast %cst_101 : f32 to vector<16x16xf32>
    %340 = arith.mulf %338, %339 : vector<16x16xf32>
    %341 = vector.extract_strided_slice %259 {offsets = [2, 0, 0], sizes = [1, 16, 16], strides = [1, 1, 1]} : vector<4x16x16xf32> to vector<1x16x16xf32>
    %342 = vector.shape_cast %341 : vector<1x16x16xf32> to vector<16x16xf32>
    %cst_102 = arith.constant 0.328021348 : f32
    %343 = vector.broadcast %cst_102 : f32 to vector<16x16xf32>
    %344 = arith.mulf %342, %343 : vector<16x16xf32>
    %345 = arith.addf %340, %344 : vector<16x16xf32>
    %346 = vector.extract_strided_slice %259 {offsets = [3, 0, 0], sizes = [1, 16, 16], strides = [1, 1, 1]} : vector<4x16x16xf32> to vector<1x16x16xf32>
    %347 = vector.shape_cast %346 : vector<1x16x16xf32> to vector<16x16xf32>
    %cst_103 = arith.constant 0.198955014 : f32
    %348 = vector.broadcast %cst_103 : f32 to vector<16x16xf32>
    %349 = arith.mulf %347, %348 : vector<16x16xf32>
    %350 = arith.addf %345, %349 : vector<16x16xf32>
    %cst_104 = arith.constant dense<0.000000e+00> : vector<16x16xf32>
    %351 = tpu.matmul %0, %350, %cst_104 {dimension_numbers = #tpu.dot_dimension_numbers<[1], [0], [0], [1], [0, 0, 1, 1], [], []>} : vector<16x16xf32>, vector<16x16xf32>, vector<16x16xf32> -> vector<16x16xf32>
    %352 = vector.extract_strided_slice %246 {offsets = [3, 0, 0], sizes = [1, 16, 16], strides = [1, 1, 1]} : vector<4x16x16xf32> to vector<1x16x16xf32>
    %353 = vector.shape_cast %352 : vector<1x16x16xf32> to vector<16x16xf32>
    %354 = arith.subf %353, %351 : vector<16x16xf32>
    %355 = math.absf %354 : vector<16x16xf32>
    %356 = vector.shape_cast %355 : vector<16x16xf32> to vector<1x16x16xf32>
    %cst_105 = arith.constant dense<0.000000e+00> : vector<1xf32>
    %357 = vector.multi_reduction <add>, %356, %cst_105 [1, 2] : vector<1x16x16xf32> to vector<1xf32>
    %358 = vector.shape_cast %357 : vector<1xf32> to vector<1x1x1xf32>
    %359 = vector.extract %358[0, 0, 0] : f32 from vector<1x1x1xf32>
    %360 = arith.addf %336, %359 : f32
    %361 = tpu.iota {dimensions = array<i32: 1>} : vector<1x128xi32>
    %cst_106 = arith.constant 0.000000e+00 : f32
    %362 = vector.broadcast %cst_106 : f32 to vector<1x128xf32>
    %c0_i32 = arith.constant 0 : i32
    %363 = vector.broadcast %c0_i32 : i32 to vector<1x128xi32>
    %364 = arith.cmpi eq, %361, %363 : vector<1x128xi32>
    %cst_107 = arith.constant 0.000000e+00 : f32
    %365 = vector.broadcast %24 : f32 to vector<1x128xf32>
    %366 = vector.broadcast %cst_107 : f32 to vector<1x128xf32>
    %367 = arith.select %364, %365, %366 : vector<1x128xi1>, vector<1x128xf32>
    %368 = arith.addf %362, %367 : vector<1x128xf32>
    %c1_i32 = arith.constant 1 : i32
    %369 = vector.broadcast %c1_i32 : i32 to vector<1x128xi32>
    %370 = arith.cmpi eq, %361, %369 : vector<1x128xi32>
    %cst_108 = arith.constant 0.000000e+00 : f32
    %371 = vector.broadcast %140 : f32 to vector<1x128xf32>
    %372 = vector.broadcast %cst_108 : f32 to vector<1x128xf32>
    %373 = arith.select %370, %371, %372 : vector<1x128xi1>, vector<1x128xf32>
    %374 = arith.addf %368, %373 : vector<1x128xf32>
    %c2_i32 = arith.constant 2 : i32
    %375 = vector.broadcast %c2_i32 : i32 to vector<1x128xi32>
    %376 = arith.cmpi eq, %361, %375 : vector<1x128xi32>
    %cst_109 = arith.constant 0.000000e+00 : f32
    %377 = vector.broadcast %256 : f32 to vector<1x128xf32>
    %378 = vector.broadcast %cst_109 : f32 to vector<1x128xf32>
    %379 = arith.select %376, %377, %378 : vector<1x128xi1>, vector<1x128xf32>
    %380 = arith.addf %374, %379 : vector<1x128xf32>
    %c3_i32 = arith.constant 3 : i32
    %381 = vector.broadcast %c3_i32 : i32 to vector<1x128xi32>
    %382 = arith.cmpi eq, %361, %381 : vector<1x128xi32>
    %cst_110 = arith.constant 0.000000e+00 : f32
    %383 = vector.broadcast %12 : f32 to vector<1x128xf32>
    %384 = vector.broadcast %cst_110 : f32 to vector<1x128xf32>
    %385 = arith.select %382, %383, %384 : vector<1x128xi1>, vector<1x128xf32>
    %386 = arith.addf %380, %385 : vector<1x128xf32>
    %c4_i32 = arith.constant 4 : i32
    %387 = vector.broadcast %c4_i32 : i32 to vector<1x128xi32>
    %388 = arith.cmpi eq, %361, %387 : vector<1x128xi32>
    %cst_111 = arith.constant 0.000000e+00 : f32
    %389 = vector.broadcast %360 : f32 to vector<1x128xf32>
    %390 = vector.broadcast %cst_111 : f32 to vector<1x128xf32>
    %391 = arith.select %388, %389, %390 : vector<1x128xi1>, vector<1x128xf32>
    %392 = arith.addf %386, %391 : vector<1x128xf32>
    %c0_112 = arith.constant 0 : index
    %c0_113 = arith.constant 0 : index
    %c0_114 = arith.constant 0 : index
    %393 = vector.load %arg5[%c0_112, %c0_113, %c0_114] : memref<1x1x128xf32, #tpu.memory_space<vmem>>, vector<1x1x128xf32>
    %394 = vector.shape_cast %393 : vector<1x1x128xf32> to vector<1x128xf32>
    %395 = vector.shape_cast %392 : vector<1x128xf32> to vector<1x1x128xf32>
    tpu.vector_store %arg5[%c0_112, %c0_113, %c0_114], %395 {strides = array<i32>} : memref<1x1x128xf32, #tpu.memory_space<vmem>>, vector<1x1x128xf32>,
    return
  }
  func.func @transform_0(%arg0: i32) -> (i32, i32, i32, i32, i32) {
    %c0_i32 = arith.constant 0 : i32
    %c0_i32_0 = arith.constant 0 : i32
    %c0_i32_1 = arith.constant 0 : i32
    %c0_i32_2 = arith.constant 0 : i32
    %c0_i32_3 = arith.constant 0 : i32
    return %arg0, %c0_i32, %c0_i32_0, %c0_i32_1, %c0_i32_2 : i32, i32, i32, i32, i32
  }
  func.func @transform_1(%arg0: i32) -> (i32, i32, i32, i32, i32) {
    %c0_i32 = arith.constant 0 : i32
    %c0_i32_0 = arith.constant 0 : i32
    %c0_i32_1 = arith.constant 0 : i32
    %c0_i32_2 = arith.constant 0 : i32
    %c0_i32_3 = arith.constant 0 : i32
    return %arg0, %c0_i32, %c0_i32_0, %c0_i32_1, %c0_i32_2 : i32, i32, i32, i32, i32
  }
  func.func @transform_2(%arg0: i32) -> (i32, i32) {
    %c0_i32 = arith.constant 0 : i32
    %c0_i32_0 = arith.constant 0 : i32
    %c0_i32_1 = arith.constant 0 : i32
    return %c0_i32, %c0_i32_0 : i32, i32
  }
  func.func @transform_3(%arg0: i32) -> (i32, i32) {
    %c0_i32 = arith.constant 0 : i32
    %c0_i32_0 = arith.constant 0 : i32
    %c0_i32_1 = arith.constant 0 : i32
    return %c0_i32, %c0_i32_0 : i32, i32
  }
  func.func @transform_4(%arg0: i32) -> (i32, i32, i32) {
    %c0_i32 = arith.constant 0 : i32
    %c0_i32_0 = arith.constant 0 : i32
    %c0_i32_1 = arith.constant 0 : i32
    return %arg0, %c0_i32, %c0_i32_0 : i32, i32, i32
  }
}

module attributes {stable_mosaic.version = 11 : i64} {
  func.func @kernel(%arg0: i32, %arg1: memref<1x1x4x16x16xf32, #tpu.memory_space<vmem>>, %arg2: memref<1x1x4x16x16xf32, #tpu.memory_space<vmem>>, %arg3: memref<16x16xf32, #tpu.memory_space<vmem>>, %arg4: memref<16x16xf32, #tpu.memory_space<vmem>>, %arg5: memref<1x1x128xf32, #tpu.memory_space<vmem>>) attributes {dimension_semantics = [#tpu.dimension_semantics<parallel>], iteration_bounds = array<i64: 2>, scalar_prefetch = 0 : i64, scratch_operands = 0 : i64, tpu.core_type = #tpu.core_type<tc>, window_params = [{transform_indices = @transform_0, window_bounds = array<i64: 1, 1, 4, 16, 16>}, {transform_indices = @transform_1, window_bounds = array<i64: 1, 1, 4, 16, 16>}, {pipeline_mode = #tpu.pipeline_mode<synchronous>, transform_indices = @transform_2, window_bounds = array<i64: 16, 16>}, {pipeline_mode = #tpu.pipeline_mode<synchronous>, transform_indices = @transform_3, window_bounds = array<i64: 16, 16>}, {transform_indices = @transform_4, window_bounds = array<i64: 1, 1, 128>}]} {
    %c0 = arith.constant 0 : index
    %c0_0 = arith.constant 0 : index
    %c0_1 = arith.constant 0 : index
    %c0_2 = arith.constant 0 : index
    %c0_3 = arith.constant 0 : index
    %0 = vector.load %arg1[%c0, %c0_0, %c0_1, %c0_2, %c0_3] : memref<1x1x4x16x16xf32, #tpu.memory_space<vmem>>, vector<1x1x4x16x16xf32>
    %1 = vector.shape_cast %0 : vector<1x1x4x16x16xf32> to vector<4x16x16xf32>
    %c0_4 = arith.constant 0 : index
    %c0_5 = arith.constant 0 : index
    %c0_6 = arith.constant 0 : index
    %c0_7 = arith.constant 0 : index
    %c0_8 = arith.constant 0 : index
    %2 = vector.load %arg2[%c0_4, %c0_5, %c0_6, %c0_7, %c0_8] : memref<1x1x4x16x16xf32, #tpu.memory_space<vmem>>, vector<1x1x4x16x16xf32>
    %3 = vector.shape_cast %2 : vector<1x1x4x16x16xf32> to vector<4x16x16xf32>
    %c0_9 = arith.constant 0 : index
    %c0_10 = arith.constant 0 : index
    %4 = vector.load %arg3[%c0_9, %c0_10] : memref<16x16xf32, #tpu.memory_space<vmem>>, vector<16x16xf32>
    %c0_11 = arith.constant 0 : index
    %c0_12 = arith.constant 0 : index
    %5 = vector.load %arg4[%c0_11, %c0_12] : memref<16x16xf32, #tpu.memory_space<vmem>>, vector<16x16xf32>
    %6 = arith.mulf %1, %1 : vector<4x16x16xf32>
    %7 = arith.mulf %3, %3 : vector<4x16x16xf32>
    %8 = arith.mulf %1, %3 : vector<4x16x16xf32>
    %9 = vector.shape_cast %1 : vector<4x16x16xf32> to vector<64x16xf32>
    %cst = arith.constant dense<0.000000e+00> : vector<64x16xf32>
    %10 = tpu.matmul %9, %5, %cst {dimension_numbers = #tpu.dot_dimension_numbers<[1], [0], [0], [1], [0, 0, 1, 1], [], []>} : vector<64x16xf32>, vector<16x16xf32>, vector<64x16xf32> -> vector<64x16xf32>
    %11 = vector.shape_cast %10 : vector<64x16xf32> to vector<4x16x16xf32>
    %12 = vector.shape_cast %3 : vector<4x16x16xf32> to vector<64x16xf32>
    %cst_13 = arith.constant dense<0.000000e+00> : vector<64x16xf32>
    %13 = tpu.matmul %12, %5, %cst_13 {dimension_numbers = #tpu.dot_dimension_numbers<[1], [0], [0], [1], [0, 0, 1, 1], [], []>} : vector<64x16xf32>, vector<16x16xf32>, vector<64x16xf32> -> vector<64x16xf32>
    %14 = vector.shape_cast %13 : vector<64x16xf32> to vector<4x16x16xf32>
    %15 = vector.shape_cast %6 : vector<4x16x16xf32> to vector<64x16xf32>
    %cst_14 = arith.constant dense<0.000000e+00> : vector<64x16xf32>
    %16 = tpu.matmul %15, %5, %cst_14 {dimension_numbers = #tpu.dot_dimension_numbers<[1], [0], [0], [1], [0, 0, 1, 1], [], []>} : vector<64x16xf32>, vector<16x16xf32>, vector<64x16xf32> -> vector<64x16xf32>
    %17 = vector.shape_cast %16 : vector<64x16xf32> to vector<4x16x16xf32>
    %18 = vector.shape_cast %7 : vector<4x16x16xf32> to vector<64x16xf32>
    %cst_15 = arith.constant dense<0.000000e+00> : vector<64x16xf32>
    %19 = tpu.matmul %18, %5, %cst_15 {dimension_numbers = #tpu.dot_dimension_numbers<[1], [0], [0], [1], [0, 0, 1, 1], [], []>} : vector<64x16xf32>, vector<16x16xf32>, vector<64x16xf32> -> vector<64x16xf32>
    %20 = vector.shape_cast %19 : vector<64x16xf32> to vector<4x16x16xf32>
    %21 = vector.shape_cast %8 : vector<4x16x16xf32> to vector<64x16xf32>
    %cst_16 = arith.constant dense<0.000000e+00> : vector<64x16xf32>
    %22 = tpu.matmul %21, %5, %cst_16 {dimension_numbers = #tpu.dot_dimension_numbers<[1], [0], [0], [1], [0, 0, 1, 1], [], []>} : vector<64x16xf32>, vector<16x16xf32>, vector<64x16xf32> -> vector<64x16xf32>
    %23 = vector.shape_cast %22 : vector<64x16xf32> to vector<4x16x16xf32>
    %24 = vector.extract_strided_slice %11 {offsets = [0, 0, 0], sizes = [1, 16, 16], strides = [1, 1, 1]} : vector<4x16x16xf32> to vector<1x16x16xf32>
    %25 = vector.shape_cast %24 : vector<1x16x16xf32> to vector<16x16xf32>
    %cst_17 = arith.constant 0.384397328 : f32
    %26 = vector.broadcast %cst_17 : f32 to vector<16x16xf32>
    %27 = arith.mulf %25, %26 : vector<16x16xf32>
    %28 = vector.extract_strided_slice %11 {offsets = [1, 0, 0], sizes = [1, 16, 16], strides = [1, 1, 1]} : vector<4x16x16xf32> to vector<1x16x16xf32>
    %29 = vector.shape_cast %28 : vector<1x16x16xf32> to vector<16x16xf32>
    %cst_18 = arith.constant 0.307801336 : f32
    %30 = vector.broadcast %cst_18 : f32 to vector<16x16xf32>
    %31 = arith.mulf %29, %30 : vector<16x16xf32>
    %32 = arith.addf %27, %31 : vector<16x16xf32>
    %cst_19 = arith.constant dense<0.000000e+00> : vector<16x16xf32>
    %33 = tpu.matmul %4, %32, %cst_19 {dimension_numbers = #tpu.dot_dimension_numbers<[1], [0], [0], [1], [0, 0, 1, 1], [], []>} : vector<16x16xf32>, vector<16x16xf32>, vector<16x16xf32> -> vector<16x16xf32>
    %34 = vector.extract_strided_slice %14 {offsets = [0, 0, 0], sizes = [1, 16, 16], strides = [1, 1, 1]} : vector<4x16x16xf32> to vector<1x16x16xf32>
    %35 = vector.shape_cast %34 : vector<1x16x16xf32> to vector<16x16xf32>
    %cst_20 = arith.constant 0.384397328 : f32
    %36 = vector.broadcast %cst_20 : f32 to vector<16x16xf32>
    %37 = arith.mulf %35, %36 : vector<16x16xf32>
    %38 = vector.extract_strided_slice %14 {offsets = [1, 0, 0], sizes = [1, 16, 16], strides = [1, 1, 1]} : vector<4x16x16xf32> to vector<1x16x16xf32>
    %39 = vector.shape_cast %38 : vector<1x16x16xf32> to vector<16x16xf32>
    %cst_21 = arith.constant 0.307801336 : f32
    %40 = vector.broadcast %cst_21 : f32 to vector<16x16xf32>
    %41 = arith.mulf %39, %40 : vector<16x16xf32>
    %42 = arith.addf %37, %41 : vector<16x16xf32>
    %cst_22 = arith.constant dense<0.000000e+00> : vector<16x16xf32>
    %43 = tpu.matmul %4, %42, %cst_22 {dimension_numbers = #tpu.dot_dimension_numbers<[1], [0], [0], [1], [0, 0, 1, 1], [], []>} : vector<16x16xf32>, vector<16x16xf32>, vector<16x16xf32> -> vector<16x16xf32>
    %44 = vector.extract_strided_slice %17 {offsets = [0, 0, 0], sizes = [1, 16, 16], strides = [1, 1, 1]} : vector<4x16x16xf32> to vector<1x16x16xf32>
    %45 = vector.shape_cast %44 : vector<1x16x16xf32> to vector<16x16xf32>
    %cst_23 = arith.constant 0.384397328 : f32
    %46 = vector.broadcast %cst_23 : f32 to vector<16x16xf32>
    %47 = arith.mulf %45, %46 : vector<16x16xf32>
    %48 = vector.extract_strided_slice %17 {offsets = [1, 0, 0], sizes = [1, 16, 16], strides = [1, 1, 1]} : vector<4x16x16xf32> to vector<1x16x16xf32>
    %49 = vector.shape_cast %48 : vector<1x16x16xf32> to vector<16x16xf32>
    %cst_24 = arith.constant 0.307801336 : f32
    %50 = vector.broadcast %cst_24 : f32 to vector<16x16xf32>
    %51 = arith.mulf %49, %50 : vector<16x16xf32>
    %52 = arith.addf %47, %51 : vector<16x16xf32>
    %cst_25 = arith.constant dense<0.000000e+00> : vector<16x16xf32>
    %53 = tpu.matmul %4, %52, %cst_25 {dimension_numbers = #tpu.dot_dimension_numbers<[1], [0], [0], [1], [0, 0, 1, 1], [], []>} : vector<16x16xf32>, vector<16x16xf32>, vector<16x16xf32> -> vector<16x16xf32>
    %54 = vector.extract_strided_slice %20 {offsets = [0, 0, 0], sizes = [1, 16, 16], strides = [1, 1, 1]} : vector<4x16x16xf32> to vector<1x16x16xf32>
    %55 = vector.shape_cast %54 : vector<1x16x16xf32> to vector<16x16xf32>
    %cst_26 = arith.constant 0.384397328 : f32
    %56 = vector.broadcast %cst_26 : f32 to vector<16x16xf32>
    %57 = arith.mulf %55, %56 : vector<16x16xf32>
    %58 = vector.extract_strided_slice %20 {offsets = [1, 0, 0], sizes = [1, 16, 16], strides = [1, 1, 1]} : vector<4x16x16xf32> to vector<1x16x16xf32>
    %59 = vector.shape_cast %58 : vector<1x16x16xf32> to vector<16x16xf32>
    %cst_27 = arith.constant 0.307801336 : f32
    %60 = vector.broadcast %cst_27 : f32 to vector<16x16xf32>
    %61 = arith.mulf %59, %60 : vector<16x16xf32>
    %62 = arith.addf %57, %61 : vector<16x16xf32>
    %cst_28 = arith.constant dense<0.000000e+00> : vector<16x16xf32>
    %63 = tpu.matmul %4, %62, %cst_28 {dimension_numbers = #tpu.dot_dimension_numbers<[1], [0], [0], [1], [0, 0, 1, 1], [], []>} : vector<16x16xf32>, vector<16x16xf32>, vector<16x16xf32> -> vector<16x16xf32>
    %64 = vector.extract_strided_slice %23 {offsets = [0, 0, 0], sizes = [1, 16, 16], strides = [1, 1, 1]} : vector<4x16x16xf32> to vector<1x16x16xf32>
    %65 = vector.shape_cast %64 : vector<1x16x16xf32> to vector<16x16xf32>
    %cst_29 = arith.constant 0.384397328 : f32
    %66 = vector.broadcast %cst_29 : f32 to vector<16x16xf32>
    %67 = arith.mulf %65, %66 : vector<16x16xf32>
    %68 = vector.extract_strided_slice %23 {offsets = [1, 0, 0], sizes = [1, 16, 16], strides = [1, 1, 1]} : vector<4x16x16xf32> to vector<1x16x16xf32>
    %69 = vector.shape_cast %68 : vector<1x16x16xf32> to vector<16x16xf32>
    %cst_30 = arith.constant 0.307801336 : f32
    %70 = vector.broadcast %cst_30 : f32 to vector<16x16xf32>
    %71 = arith.mulf %69, %70 : vector<16x16xf32>
    %72 = arith.addf %67, %71 : vector<16x16xf32>
    %cst_31 = arith.constant dense<0.000000e+00> : vector<16x16xf32>
    %73 = tpu.matmul %4, %72, %cst_31 {dimension_numbers = #tpu.dot_dimension_numbers<[1], [0], [0], [1], [0, 0, 1, 1], [], []>} : vector<16x16xf32>, vector<16x16xf32>, vector<16x16xf32> -> vector<16x16xf32>
    %74 = arith.mulf %33, %33 : vector<16x16xf32>
    %75 = arith.mulf %43, %43 : vector<16x16xf32>
    %76 = arith.mulf %33, %43 : vector<16x16xf32>
    %77 = arith.subf %53, %74 : vector<16x16xf32>
    %78 = arith.subf %63, %75 : vector<16x16xf32>
    %79 = arith.subf %73, %76 : vector<16x16xf32>
    %cst_32 = arith.constant 2.000000e+00 : f32
    %80 = vector.broadcast %cst_32 : f32 to vector<16x16xf32>
    %81 = arith.mulf %80, %76 : vector<16x16xf32>
    %cst_33 = arith.constant 9.99999974E-5 : f32
    %82 = vector.broadcast %cst_33 : f32 to vector<16x16xf32>
    %83 = arith.addf %81, %82 : vector<16x16xf32>
    %cst_34 = arith.constant 2.000000e+00 : f32
    %84 = vector.broadcast %cst_34 : f32 to vector<16x16xf32>
    %85 = arith.mulf %84, %79 : vector<16x16xf32>
    %cst_35 = arith.constant 8.99999984E-4 : f32
    %86 = vector.broadcast %cst_35 : f32 to vector<16x16xf32>
    %87 = arith.addf %85, %86 : vector<16x16xf32>
    %88 = arith.mulf %83, %87 : vector<16x16xf32>
    %89 = arith.addf %74, %75 : vector<16x16xf32>
    %cst_36 = arith.constant 9.99999974E-5 : f32
    %90 = vector.broadcast %cst_36 : f32 to vector<16x16xf32>
    %91 = arith.addf %89, %90 : vector<16x16xf32>
    %92 = arith.addf %77, %78 : vector<16x16xf32>
    %cst_37 = arith.constant 8.99999984E-4 : f32
    %93 = vector.broadcast %cst_37 : f32 to vector<16x16xf32>
    %94 = arith.addf %92, %93 : vector<16x16xf32>
    %95 = arith.mulf %91, %94 : vector<16x16xf32>
    %96 = tpu.reciprocal %95 {approx = true} : vector<16x16xf32> -> vector<16x16xf32>
    %97 = arith.mulf %88, %96 : vector<16x16xf32>
    %98 = vector.shape_cast %97 : vector<16x16xf32> to vector<1x16x16xf32>
    %cst_38 = arith.constant dense<0.000000e+00> : vector<1xf32>
    %99 = vector.multi_reduction <add>, %98, %cst_38 [1, 2] : vector<1x16x16xf32> to vector<1xf32>
    %100 = vector.shape_cast %99 : vector<1xf32> to vector<1x1x1xf32>
    %101 = vector.extract %100[0, 0, 0] : f32 from vector<1x1x1xf32>
    %cst_39 = arith.constant 0.000000e+00 : f32
    %102 = arith.addf %cst_39, %101 : f32
    %103 = vector.extract_strided_slice %11 {offsets = [0, 0, 0], sizes = [1, 16, 16], strides = [1, 1, 1]} : vector<4x16x16xf32> to vector<1x16x16xf32>
    %104 = vector.shape_cast %103 : vector<1x16x16xf32> to vector<16x16xf32>
    %cst_40 = arith.constant 0.307801336 : f32
    %105 = vector.broadcast %cst_40 : f32 to vector<16x16xf32>
    %106 = arith.mulf %104, %105 : vector<16x16xf32>
    %107 = vector.extract_strided_slice %11 {offsets = [1, 0, 0], sizes = [1, 16, 16], strides = [1, 1, 1]} : vector<4x16x16xf32> to vector<1x16x16xf32>
    %108 = vector.shape_cast %107 : vector<1x16x16xf32> to vector<16x16xf32>
    %cst_41 = arith.constant 0.384397328 : f32
    %109 = vector.broadcast %cst_41 : f32 to vector<16x16xf32>
    %110 = arith.mulf %108, %109 : vector<16x16xf32>
    %111 = arith.addf %106, %110 : vector<16x16xf32>
    %112 = vector.extract_strided_slice %11 {offsets = [2, 0, 0], sizes = [1, 16, 16], strides = [1, 1, 1]} : vector<4x16x16xf32> to vector<1x16x16xf32>
    %113 = vector.shape_cast %112 : vector<1x16x16xf32> to vector<16x16xf32>
    %cst_42 = arith.constant 0.307801336 : f32
    %114 = vector.broadcast %cst_42 : f32 to vector<16x16xf32>
    %115 = arith.mulf %113, %114 : vector<16x16xf32>
    %116 = arith.addf %111, %115 : vector<16x16xf32>
    %cst_43 = arith.constant dense<0.000000e+00> : vector<16x16xf32>
    %117 = tpu.matmul %4, %116, %cst_43 {dimension_numbers = #tpu.dot_dimension_numbers<[1], [0], [0], [1], [0, 0, 1, 1], [], []>} : vector<16x16xf32>, vector<16x16xf32>, vector<16x16xf32> -> vector<16x16xf32>
    %118 = vector.extract_strided_slice %14 {offsets = [0, 0, 0], sizes = [1, 16, 16], strides = [1, 1, 1]} : vector<4x16x16xf32> to vector<1x16x16xf32>
    %119 = vector.shape_cast %118 : vector<1x16x16xf32> to vector<16x16xf32>
    %cst_44 = arith.constant 0.307801336 : f32
    %120 = vector.broadcast %cst_44 : f32 to vector<16x16xf32>
    %121 = arith.mulf %119, %120 : vector<16x16xf32>
    %122 = vector.extract_strided_slice %14 {offsets = [1, 0, 0], sizes = [1, 16, 16], strides = [1, 1, 1]} : vector<4x16x16xf32> to vector<1x16x16xf32>
    %123 = vector.shape_cast %122 : vector<1x16x16xf32> to vector<16x16xf32>
    %cst_45 = arith.constant 0.384397328 : f32
    %124 = vector.broadcast %cst_45 : f32 to vector<16x16xf32>
    %125 = arith.mulf %123, %124 : vector<16x16xf32>
    %126 = arith.addf %121, %125 : vector<16x16xf32>
    %127 = vector.extract_strided_slice %14 {offsets = [2, 0, 0], sizes = [1, 16, 16], strides = [1, 1, 1]} : vector<4x16x16xf32> to vector<1x16x16xf32>
    %128 = vector.shape_cast %127 : vector<1x16x16xf32> to vector<16x16xf32>
    %cst_46 = arith.constant 0.307801336 : f32
    %129 = vector.broadcast %cst_46 : f32 to vector<16x16xf32>
    %130 = arith.mulf %128, %129 : vector<16x16xf32>
    %131 = arith.addf %126, %130 : vector<16x16xf32>
    %cst_47 = arith.constant dense<0.000000e+00> : vector<16x16xf32>
    %132 = tpu.matmul %4, %131, %cst_47 {dimension_numbers = #tpu.dot_dimension_numbers<[1], [0], [0], [1], [0, 0, 1, 1], [], []>} : vector<16x16xf32>, vector<16x16xf32>, vector<16x16xf32> -> vector<16x16xf32>
    %133 = vector.extract_strided_slice %17 {offsets = [0, 0, 0], sizes = [1, 16, 16], strides = [1, 1, 1]} : vector<4x16x16xf32> to vector<1x16x16xf32>
    %134 = vector.shape_cast %133 : vector<1x16x16xf32> to vector<16x16xf32>
    %cst_48 = arith.constant 0.307801336 : f32
    %135 = vector.broadcast %cst_48 : f32 to vector<16x16xf32>
    %136 = arith.mulf %134, %135 : vector<16x16xf32>
    %137 = vector.extract_strided_slice %17 {offsets = [1, 0, 0], sizes = [1, 16, 16], strides = [1, 1, 1]} : vector<4x16x16xf32> to vector<1x16x16xf32>
    %138 = vector.shape_cast %137 : vector<1x16x16xf32> to vector<16x16xf32>
    %cst_49 = arith.constant 0.384397328 : f32
    %139 = vector.broadcast %cst_49 : f32 to vector<16x16xf32>
    %140 = arith.mulf %138, %139 : vector<16x16xf32>
    %141 = arith.addf %136, %140 : vector<16x16xf32>
    %142 = vector.extract_strided_slice %17 {offsets = [2, 0, 0], sizes = [1, 16, 16], strides = [1, 1, 1]} : vector<4x16x16xf32> to vector<1x16x16xf32>
    %143 = vector.shape_cast %142 : vector<1x16x16xf32> to vector<16x16xf32>
    %cst_50 = arith.constant 0.307801336 : f32
    %144 = vector.broadcast %cst_50 : f32 to vector<16x16xf32>
    %145 = arith.mulf %143, %144 : vector<16x16xf32>
    %146 = arith.addf %141, %145 : vector<16x16xf32>
    %cst_51 = arith.constant dense<0.000000e+00> : vector<16x16xf32>
    %147 = tpu.matmul %4, %146, %cst_51 {dimension_numbers = #tpu.dot_dimension_numbers<[1], [0], [0], [1], [0, 0, 1, 1], [], []>} : vector<16x16xf32>, vector<16x16xf32>, vector<16x16xf32> -> vector<16x16xf32>
    %148 = vector.extract_strided_slice %20 {offsets = [0, 0, 0], sizes = [1, 16, 16], strides = [1, 1, 1]} : vector<4x16x16xf32> to vector<1x16x16xf32>
    %149 = vector.shape_cast %148 : vector<1x16x16xf32> to vector<16x16xf32>
    %cst_52 = arith.constant 0.307801336 : f32
    %150 = vector.broadcast %cst_52 : f32 to vector<16x16xf32>
    %151 = arith.mulf %149, %150 : vector<16x16xf32>
    %152 = vector.extract_strided_slice %20 {offsets = [1, 0, 0], sizes = [1, 16, 16], strides = [1, 1, 1]} : vector<4x16x16xf32> to vector<1x16x16xf32>
    %153 = vector.shape_cast %152 : vector<1x16x16xf32> to vector<16x16xf32>
    %cst_53 = arith.constant 0.384397328 : f32
    %154 = vector.broadcast %cst_53 : f32 to vector<16x16xf32>
    %155 = arith.mulf %153, %154 : vector<16x16xf32>
    %156 = arith.addf %151, %155 : vector<16x16xf32>
    %157 = vector.extract_strided_slice %20 {offsets = [2, 0, 0], sizes = [1, 16, 16], strides = [1, 1, 1]} : vector<4x16x16xf32> to vector<1x16x16xf32>
    %158 = vector.shape_cast %157 : vector<1x16x16xf32> to vector<16x16xf32>
    %cst_54 = arith.constant 0.307801336 : f32
    %159 = vector.broadcast %cst_54 : f32 to vector<16x16xf32>
    %160 = arith.mulf %158, %159 : vector<16x16xf32>
    %161 = arith.addf %156, %160 : vector<16x16xf32>
    %cst_55 = arith.constant dense<0.000000e+00> : vector<16x16xf32>
    %162 = tpu.matmul %4, %161, %cst_55 {dimension_numbers = #tpu.dot_dimension_numbers<[1], [0], [0], [1], [0, 0, 1, 1], [], []>} : vector<16x16xf32>, vector<16x16xf32>, vector<16x16xf32> -> vector<16x16xf32>
    %163 = vector.extract_strided_slice %23 {offsets = [0, 0, 0], sizes = [1, 16, 16], strides = [1, 1, 1]} : vector<4x16x16xf32> to vector<1x16x16xf32>
    %164 = vector.shape_cast %163 : vector<1x16x16xf32> to vector<16x16xf32>
    %cst_56 = arith.constant 0.307801336 : f32
    %165 = vector.broadcast %cst_56 : f32 to vector<16x16xf32>
    %166 = arith.mulf %164, %165 : vector<16x16xf32>
    %167 = vector.extract_strided_slice %23 {offsets = [1, 0, 0], sizes = [1, 16, 16], strides = [1, 1, 1]} : vector<4x16x16xf32> to vector<1x16x16xf32>
    %168 = vector.shape_cast %167 : vector<1x16x16xf32> to vector<16x16xf32>
    %cst_57 = arith.constant 0.384397328 : f32
    %169 = vector.broadcast %cst_57 : f32 to vector<16x16xf32>
    %170 = arith.mulf %168, %169 : vector<16x16xf32>
    %171 = arith.addf %166, %170 : vector<16x16xf32>
    %172 = vector.extract_strided_slice %23 {offsets = [2, 0, 0], sizes = [1, 16, 16], strides = [1, 1, 1]} : vector<4x16x16xf32> to vector<1x16x16xf32>
    %173 = vector.shape_cast %172 : vector<1x16x16xf32> to vector<16x16xf32>
    %cst_58 = arith.constant 0.307801336 : f32
    %174 = vector.broadcast %cst_58 : f32 to vector<16x16xf32>
    %175 = arith.mulf %173, %174 : vector<16x16xf32>
    %176 = arith.addf %171, %175 : vector<16x16xf32>
    %cst_59 = arith.constant dense<0.000000e+00> : vector<16x16xf32>
    %177 = tpu.matmul %4, %176, %cst_59 {dimension_numbers = #tpu.dot_dimension_numbers<[1], [0], [0], [1], [0, 0, 1, 1], [], []>} : vector<16x16xf32>, vector<16x16xf32>, vector<16x16xf32> -> vector<16x16xf32>
    %178 = arith.mulf %117, %117 : vector<16x16xf32>
    %179 = arith.mulf %132, %132 : vector<16x16xf32>
    %180 = arith.mulf %117, %132 : vector<16x16xf32>
    %181 = arith.subf %147, %178 : vector<16x16xf32>
    %182 = arith.subf %162, %179 : vector<16x16xf32>
    %183 = arith.subf %177, %180 : vector<16x16xf32>
    %cst_60 = arith.constant 2.000000e+00 : f32
    %184 = vector.broadcast %cst_60 : f32 to vector<16x16xf32>
    %185 = arith.mulf %184, %180 : vector<16x16xf32>
    %cst_61 = arith.constant 9.99999974E-5 : f32
    %186 = vector.broadcast %cst_61 : f32 to vector<16x16xf32>
    %187 = arith.addf %185, %186 : vector<16x16xf32>
    %cst_62 = arith.constant 2.000000e+00 : f32
    %188 = vector.broadcast %cst_62 : f32 to vector<16x16xf32>
    %189 = arith.mulf %188, %183 : vector<16x16xf32>
    %cst_63 = arith.constant 8.99999984E-4 : f32
    %190 = vector.broadcast %cst_63 : f32 to vector<16x16xf32>
    %191 = arith.addf %189, %190 : vector<16x16xf32>
    %192 = arith.mulf %187, %191 : vector<16x16xf32>
    %193 = arith.addf %178, %179 : vector<16x16xf32>
    %cst_64 = arith.constant 9.99999974E-5 : f32
    %194 = vector.broadcast %cst_64 : f32 to vector<16x16xf32>
    %195 = arith.addf %193, %194 : vector<16x16xf32>
    %196 = arith.addf %181, %182 : vector<16x16xf32>
    %cst_65 = arith.constant 8.99999984E-4 : f32
    %197 = vector.broadcast %cst_65 : f32 to vector<16x16xf32>
    %198 = arith.addf %196, %197 : vector<16x16xf32>
    %199 = arith.mulf %195, %198 : vector<16x16xf32>
    %200 = tpu.reciprocal %199 {approx = true} : vector<16x16xf32> -> vector<16x16xf32>
    %201 = arith.mulf %192, %200 : vector<16x16xf32>
    %202 = vector.shape_cast %201 : vector<16x16xf32> to vector<1x16x16xf32>
    %cst_66 = arith.constant dense<0.000000e+00> : vector<1xf32>
    %203 = vector.multi_reduction <add>, %202, %cst_66 [1, 2] : vector<1x16x16xf32> to vector<1xf32>
    %204 = vector.shape_cast %203 : vector<1xf32> to vector<1x1x1xf32>
    %205 = vector.extract %204[0, 0, 0] : f32 from vector<1x1x1xf32>
    %206 = arith.addf %102, %205 : f32
    %207 = vector.extract_strided_slice %11 {offsets = [1, 0, 0], sizes = [1, 16, 16], strides = [1, 1, 1]} : vector<4x16x16xf32> to vector<1x16x16xf32>
    %208 = vector.shape_cast %207 : vector<1x16x16xf32> to vector<16x16xf32>
    %cst_67 = arith.constant 0.307801336 : f32
    %209 = vector.broadcast %cst_67 : f32 to vector<16x16xf32>
    %210 = arith.mulf %208, %209 : vector<16x16xf32>
    %211 = vector.extract_strided_slice %11 {offsets = [2, 0, 0], sizes = [1, 16, 16], strides = [1, 1, 1]} : vector<4x16x16xf32> to vector<1x16x16xf32>
    %212 = vector.shape_cast %211 : vector<1x16x16xf32> to vector<16x16xf32>
    %cst_68 = arith.constant 0.384397328 : f32
    %213 = vector.broadcast %cst_68 : f32 to vector<16x16xf32>
    %214 = arith.mulf %212, %213 : vector<16x16xf32>
    %215 = arith.addf %210, %214 : vector<16x16xf32>
    %216 = vector.extract_strided_slice %11 {offsets = [3, 0, 0], sizes = [1, 16, 16], strides = [1, 1, 1]} : vector<4x16x16xf32> to vector<1x16x16xf32>
    %217 = vector.shape_cast %216 : vector<1x16x16xf32> to vector<16x16xf32>
    %cst_69 = arith.constant 0.307801336 : f32
    %218 = vector.broadcast %cst_69 : f32 to vector<16x16xf32>
    %219 = arith.mulf %217, %218 : vector<16x16xf32>
    %220 = arith.addf %215, %219 : vector<16x16xf32>
    %cst_70 = arith.constant dense<0.000000e+00> : vector<16x16xf32>
    %221 = tpu.matmul %4, %220, %cst_70 {dimension_numbers = #tpu.dot_dimension_numbers<[1], [0], [0], [1], [0, 0, 1, 1], [], []>} : vector<16x16xf32>, vector<16x16xf32>, vector<16x16xf32> -> vector<16x16xf32>
    %222 = vector.extract_strided_slice %14 {offsets = [1, 0, 0], sizes = [1, 16, 16], strides = [1, 1, 1]} : vector<4x16x16xf32> to vector<1x16x16xf32>
    %223 = vector.shape_cast %222 : vector<1x16x16xf32> to vector<16x16xf32>
    %cst_71 = arith.constant 0.307801336 : f32
    %224 = vector.broadcast %cst_71 : f32 to vector<16x16xf32>
    %225 = arith.mulf %223, %224 : vector<16x16xf32>
    %226 = vector.extract_strided_slice %14 {offsets = [2, 0, 0], sizes = [1, 16, 16], strides = [1, 1, 1]} : vector<4x16x16xf32> to vector<1x16x16xf32>
    %227 = vector.shape_cast %226 : vector<1x16x16xf32> to vector<16x16xf32>
    %cst_72 = arith.constant 0.384397328 : f32
    %228 = vector.broadcast %cst_72 : f32 to vector<16x16xf32>
    %229 = arith.mulf %227, %228 : vector<16x16xf32>
    %230 = arith.addf %225, %229 : vector<16x16xf32>
    %231 = vector.extract_strided_slice %14 {offsets = [3, 0, 0], sizes = [1, 16, 16], strides = [1, 1, 1]} : vector<4x16x16xf32> to vector<1x16x16xf32>
    %232 = vector.shape_cast %231 : vector<1x16x16xf32> to vector<16x16xf32>
    %cst_73 = arith.constant 0.307801336 : f32
    %233 = vector.broadcast %cst_73 : f32 to vector<16x16xf32>
    %234 = arith.mulf %232, %233 : vector<16x16xf32>
    %235 = arith.addf %230, %234 : vector<16x16xf32>
    %cst_74 = arith.constant dense<0.000000e+00> : vector<16x16xf32>
    %236 = tpu.matmul %4, %235, %cst_74 {dimension_numbers = #tpu.dot_dimension_numbers<[1], [0], [0], [1], [0, 0, 1, 1], [], []>} : vector<16x16xf32>, vector<16x16xf32>, vector<16x16xf32> -> vector<16x16xf32>
    %237 = vector.extract_strided_slice %17 {offsets = [1, 0, 0], sizes = [1, 16, 16], strides = [1, 1, 1]} : vector<4x16x16xf32> to vector<1x16x16xf32>
    %238 = vector.shape_cast %237 : vector<1x16x16xf32> to vector<16x16xf32>
    %cst_75 = arith.constant 0.307801336 : f32
    %239 = vector.broadcast %cst_75 : f32 to vector<16x16xf32>
    %240 = arith.mulf %238, %239 : vector<16x16xf32>
    %241 = vector.extract_strided_slice %17 {offsets = [2, 0, 0], sizes = [1, 16, 16], strides = [1, 1, 1]} : vector<4x16x16xf32> to vector<1x16x16xf32>
    %242 = vector.shape_cast %241 : vector<1x16x16xf32> to vector<16x16xf32>
    %cst_76 = arith.constant 0.384397328 : f32
    %243 = vector.broadcast %cst_76 : f32 to vector<16x16xf32>
    %244 = arith.mulf %242, %243 : vector<16x16xf32>
    %245 = arith.addf %240, %244 : vector<16x16xf32>
    %246 = vector.extract_strided_slice %17 {offsets = [3, 0, 0], sizes = [1, 16, 16], strides = [1, 1, 1]} : vector<4x16x16xf32> to vector<1x16x16xf32>
    %247 = vector.shape_cast %246 : vector<1x16x16xf32> to vector<16x16xf32>
    %cst_77 = arith.constant 0.307801336 : f32
    %248 = vector.broadcast %cst_77 : f32 to vector<16x16xf32>
    %249 = arith.mulf %247, %248 : vector<16x16xf32>
    %250 = arith.addf %245, %249 : vector<16x16xf32>
    %cst_78 = arith.constant dense<0.000000e+00> : vector<16x16xf32>
    %251 = tpu.matmul %4, %250, %cst_78 {dimension_numbers = #tpu.dot_dimension_numbers<[1], [0], [0], [1], [0, 0, 1, 1], [], []>} : vector<16x16xf32>, vector<16x16xf32>, vector<16x16xf32> -> vector<16x16xf32>
    %252 = vector.extract_strided_slice %20 {offsets = [1, 0, 0], sizes = [1, 16, 16], strides = [1, 1, 1]} : vector<4x16x16xf32> to vector<1x16x16xf32>
    %253 = vector.shape_cast %252 : vector<1x16x16xf32> to vector<16x16xf32>
    %cst_79 = arith.constant 0.307801336 : f32
    %254 = vector.broadcast %cst_79 : f32 to vector<16x16xf32>
    %255 = arith.mulf %253, %254 : vector<16x16xf32>
    %256 = vector.extract_strided_slice %20 {offsets = [2, 0, 0], sizes = [1, 16, 16], strides = [1, 1, 1]} : vector<4x16x16xf32> to vector<1x16x16xf32>
    %257 = vector.shape_cast %256 : vector<1x16x16xf32> to vector<16x16xf32>
    %cst_80 = arith.constant 0.384397328 : f32
    %258 = vector.broadcast %cst_80 : f32 to vector<16x16xf32>
    %259 = arith.mulf %257, %258 : vector<16x16xf32>
    %260 = arith.addf %255, %259 : vector<16x16xf32>
    %261 = vector.extract_strided_slice %20 {offsets = [3, 0, 0], sizes = [1, 16, 16], strides = [1, 1, 1]} : vector<4x16x16xf32> to vector<1x16x16xf32>
    %262 = vector.shape_cast %261 : vector<1x16x16xf32> to vector<16x16xf32>
    %cst_81 = arith.constant 0.307801336 : f32
    %263 = vector.broadcast %cst_81 : f32 to vector<16x16xf32>
    %264 = arith.mulf %262, %263 : vector<16x16xf32>
    %265 = arith.addf %260, %264 : vector<16x16xf32>
    %cst_82 = arith.constant dense<0.000000e+00> : vector<16x16xf32>
    %266 = tpu.matmul %4, %265, %cst_82 {dimension_numbers = #tpu.dot_dimension_numbers<[1], [0], [0], [1], [0, 0, 1, 1], [], []>} : vector<16x16xf32>, vector<16x16xf32>, vector<16x16xf32> -> vector<16x16xf32>
    %267 = vector.extract_strided_slice %23 {offsets = [1, 0, 0], sizes = [1, 16, 16], strides = [1, 1, 1]} : vector<4x16x16xf32> to vector<1x16x16xf32>
    %268 = vector.shape_cast %267 : vector<1x16x16xf32> to vector<16x16xf32>
    %cst_83 = arith.constant 0.307801336 : f32
    %269 = vector.broadcast %cst_83 : f32 to vector<16x16xf32>
    %270 = arith.mulf %268, %269 : vector<16x16xf32>
    %271 = vector.extract_strided_slice %23 {offsets = [2, 0, 0], sizes = [1, 16, 16], strides = [1, 1, 1]} : vector<4x16x16xf32> to vector<1x16x16xf32>
    %272 = vector.shape_cast %271 : vector<1x16x16xf32> to vector<16x16xf32>
    %cst_84 = arith.constant 0.384397328 : f32
    %273 = vector.broadcast %cst_84 : f32 to vector<16x16xf32>
    %274 = arith.mulf %272, %273 : vector<16x16xf32>
    %275 = arith.addf %270, %274 : vector<16x16xf32>
    %276 = vector.extract_strided_slice %23 {offsets = [3, 0, 0], sizes = [1, 16, 16], strides = [1, 1, 1]} : vector<4x16x16xf32> to vector<1x16x16xf32>
    %277 = vector.shape_cast %276 : vector<1x16x16xf32> to vector<16x16xf32>
    %cst_85 = arith.constant 0.307801336 : f32
    %278 = vector.broadcast %cst_85 : f32 to vector<16x16xf32>
    %279 = arith.mulf %277, %278 : vector<16x16xf32>
    %280 = arith.addf %275, %279 : vector<16x16xf32>
    %cst_86 = arith.constant dense<0.000000e+00> : vector<16x16xf32>
    %281 = tpu.matmul %4, %280, %cst_86 {dimension_numbers = #tpu.dot_dimension_numbers<[1], [0], [0], [1], [0, 0, 1, 1], [], []>} : vector<16x16xf32>, vector<16x16xf32>, vector<16x16xf32> -> vector<16x16xf32>
    %282 = arith.mulf %221, %221 : vector<16x16xf32>
    %283 = arith.mulf %236, %236 : vector<16x16xf32>
    %284 = arith.mulf %221, %236 : vector<16x16xf32>
    %285 = arith.subf %251, %282 : vector<16x16xf32>
    %286 = arith.subf %266, %283 : vector<16x16xf32>
    %287 = arith.subf %281, %284 : vector<16x16xf32>
    %cst_87 = arith.constant 2.000000e+00 : f32
    %288 = vector.broadcast %cst_87 : f32 to vector<16x16xf32>
    %289 = arith.mulf %288, %284 : vector<16x16xf32>
    %cst_88 = arith.constant 9.99999974E-5 : f32
    %290 = vector.broadcast %cst_88 : f32 to vector<16x16xf32>
    %291 = arith.addf %289, %290 : vector<16x16xf32>
    %cst_89 = arith.constant 2.000000e+00 : f32
    %292 = vector.broadcast %cst_89 : f32 to vector<16x16xf32>
    %293 = arith.mulf %292, %287 : vector<16x16xf32>
    %cst_90 = arith.constant 8.99999984E-4 : f32
    %294 = vector.broadcast %cst_90 : f32 to vector<16x16xf32>
    %295 = arith.addf %293, %294 : vector<16x16xf32>
    %296 = arith.mulf %291, %295 : vector<16x16xf32>
    %297 = arith.addf %282, %283 : vector<16x16xf32>
    %cst_91 = arith.constant 9.99999974E-5 : f32
    %298 = vector.broadcast %cst_91 : f32 to vector<16x16xf32>
    %299 = arith.addf %297, %298 : vector<16x16xf32>
    %300 = arith.addf %285, %286 : vector<16x16xf32>
    %cst_92 = arith.constant 8.99999984E-4 : f32
    %301 = vector.broadcast %cst_92 : f32 to vector<16x16xf32>
    %302 = arith.addf %300, %301 : vector<16x16xf32>
    %303 = arith.mulf %299, %302 : vector<16x16xf32>
    %304 = tpu.reciprocal %303 {approx = true} : vector<16x16xf32> -> vector<16x16xf32>
    %305 = arith.mulf %296, %304 : vector<16x16xf32>
    %306 = vector.shape_cast %305 : vector<16x16xf32> to vector<1x16x16xf32>
    %cst_93 = arith.constant dense<0.000000e+00> : vector<1xf32>
    %307 = vector.multi_reduction <add>, %306, %cst_93 [1, 2] : vector<1x16x16xf32> to vector<1xf32>
    %308 = vector.shape_cast %307 : vector<1xf32> to vector<1x1x1xf32>
    %309 = vector.extract %308[0, 0, 0] : f32 from vector<1x1x1xf32>
    %310 = arith.addf %206, %309 : f32
    %311 = vector.extract_strided_slice %11 {offsets = [2, 0, 0], sizes = [1, 16, 16], strides = [1, 1, 1]} : vector<4x16x16xf32> to vector<1x16x16xf32>
    %312 = vector.shape_cast %311 : vector<1x16x16xf32> to vector<16x16xf32>
    %cst_94 = arith.constant 0.307801336 : f32
    %313 = vector.broadcast %cst_94 : f32 to vector<16x16xf32>
    %314 = arith.mulf %312, %313 : vector<16x16xf32>
    %315 = vector.extract_strided_slice %11 {offsets = [3, 0, 0], sizes = [1, 16, 16], strides = [1, 1, 1]} : vector<4x16x16xf32> to vector<1x16x16xf32>
    %316 = vector.shape_cast %315 : vector<1x16x16xf32> to vector<16x16xf32>
    %cst_95 = arith.constant 0.384397328 : f32
    %317 = vector.broadcast %cst_95 : f32 to vector<16x16xf32>
    %318 = arith.mulf %316, %317 : vector<16x16xf32>
    %319 = arith.addf %314, %318 : vector<16x16xf32>
    %cst_96 = arith.constant dense<0.000000e+00> : vector<16x16xf32>
    %320 = tpu.matmul %4, %319, %cst_96 {dimension_numbers = #tpu.dot_dimension_numbers<[1], [0], [0], [1], [0, 0, 1, 1], [], []>} : vector<16x16xf32>, vector<16x16xf32>, vector<16x16xf32> -> vector<16x16xf32>
    %321 = vector.extract_strided_slice %14 {offsets = [2, 0, 0], sizes = [1, 16, 16], strides = [1, 1, 1]} : vector<4x16x16xf32> to vector<1x16x16xf32>
    %322 = vector.shape_cast %321 : vector<1x16x16xf32> to vector<16x16xf32>
    %cst_97 = arith.constant 0.307801336 : f32
    %323 = vector.broadcast %cst_97 : f32 to vector<16x16xf32>
    %324 = arith.mulf %322, %323 : vector<16x16xf32>
    %325 = vector.extract_strided_slice %14 {offsets = [3, 0, 0], sizes = [1, 16, 16], strides = [1, 1, 1]} : vector<4x16x16xf32> to vector<1x16x16xf32>
    %326 = vector.shape_cast %325 : vector<1x16x16xf32> to vector<16x16xf32>
    %cst_98 = arith.constant 0.384397328 : f32
    %327 = vector.broadcast %cst_98 : f32 to vector<16x16xf32>
    %328 = arith.mulf %326, %327 : vector<16x16xf32>
    %329 = arith.addf %324, %328 : vector<16x16xf32>
    %cst_99 = arith.constant dense<0.000000e+00> : vector<16x16xf32>
    %330 = tpu.matmul %4, %329, %cst_99 {dimension_numbers = #tpu.dot_dimension_numbers<[1], [0], [0], [1], [0, 0, 1, 1], [], []>} : vector<16x16xf32>, vector<16x16xf32>, vector<16x16xf32> -> vector<16x16xf32>
    %331 = vector.extract_strided_slice %17 {offsets = [2, 0, 0], sizes = [1, 16, 16], strides = [1, 1, 1]} : vector<4x16x16xf32> to vector<1x16x16xf32>
    %332 = vector.shape_cast %331 : vector<1x16x16xf32> to vector<16x16xf32>
    %cst_100 = arith.constant 0.307801336 : f32
    %333 = vector.broadcast %cst_100 : f32 to vector<16x16xf32>
    %334 = arith.mulf %332, %333 : vector<16x16xf32>
    %335 = vector.extract_strided_slice %17 {offsets = [3, 0, 0], sizes = [1, 16, 16], strides = [1, 1, 1]} : vector<4x16x16xf32> to vector<1x16x16xf32>
    %336 = vector.shape_cast %335 : vector<1x16x16xf32> to vector<16x16xf32>
    %cst_101 = arith.constant 0.384397328 : f32
    %337 = vector.broadcast %cst_101 : f32 to vector<16x16xf32>
    %338 = arith.mulf %336, %337 : vector<16x16xf32>
    %339 = arith.addf %334, %338 : vector<16x16xf32>
    %cst_102 = arith.constant dense<0.000000e+00> : vector<16x16xf32>
    %340 = tpu.matmul %4, %339, %cst_102 {dimension_numbers = #tpu.dot_dimension_numbers<[1], [0], [0], [1], [0, 0, 1, 1], [], []>} : vector<16x16xf32>, vector<16x16xf32>, vector<16x16xf32> -> vector<16x16xf32>
    %341 = vector.extract_strided_slice %20 {offsets = [2, 0, 0], sizes = [1, 16, 16], strides = [1, 1, 1]} : vector<4x16x16xf32> to vector<1x16x16xf32>
    %342 = vector.shape_cast %341 : vector<1x16x16xf32> to vector<16x16xf32>
    %cst_103 = arith.constant 0.307801336 : f32
    %343 = vector.broadcast %cst_103 : f32 to vector<16x16xf32>
    %344 = arith.mulf %342, %343 : vector<16x16xf32>
    %345 = vector.extract_strided_slice %20 {offsets = [3, 0, 0], sizes = [1, 16, 16], strides = [1, 1, 1]} : vector<4x16x16xf32> to vector<1x16x16xf32>
    %346 = vector.shape_cast %345 : vector<1x16x16xf32> to vector<16x16xf32>
    %cst_104 = arith.constant 0.384397328 : f32
    %347 = vector.broadcast %cst_104 : f32 to vector<16x16xf32>
    %348 = arith.mulf %346, %347 : vector<16x16xf32>
    %349 = arith.addf %344, %348 : vector<16x16xf32>
    %cst_105 = arith.constant dense<0.000000e+00> : vector<16x16xf32>
    %350 = tpu.matmul %4, %349, %cst_105 {dimension_numbers = #tpu.dot_dimension_numbers<[1], [0], [0], [1], [0, 0, 1, 1], [], []>} : vector<16x16xf32>, vector<16x16xf32>, vector<16x16xf32> -> vector<16x16xf32>
    %351 = vector.extract_strided_slice %23 {offsets = [2, 0, 0], sizes = [1, 16, 16], strides = [1, 1, 1]} : vector<4x16x16xf32> to vector<1x16x16xf32>
    %352 = vector.shape_cast %351 : vector<1x16x16xf32> to vector<16x16xf32>
    %cst_106 = arith.constant 0.307801336 : f32
    %353 = vector.broadcast %cst_106 : f32 to vector<16x16xf32>
    %354 = arith.mulf %352, %353 : vector<16x16xf32>
    %355 = vector.extract_strided_slice %23 {offsets = [3, 0, 0], sizes = [1, 16, 16], strides = [1, 1, 1]} : vector<4x16x16xf32> to vector<1x16x16xf32>
    %356 = vector.shape_cast %355 : vector<1x16x16xf32> to vector<16x16xf32>
    %cst_107 = arith.constant 0.384397328 : f32
    %357 = vector.broadcast %cst_107 : f32 to vector<16x16xf32>
    %358 = arith.mulf %356, %357 : vector<16x16xf32>
    %359 = arith.addf %354, %358 : vector<16x16xf32>
    %cst_108 = arith.constant dense<0.000000e+00> : vector<16x16xf32>
    %360 = tpu.matmul %4, %359, %cst_108 {dimension_numbers = #tpu.dot_dimension_numbers<[1], [0], [0], [1], [0, 0, 1, 1], [], []>} : vector<16x16xf32>, vector<16x16xf32>, vector<16x16xf32> -> vector<16x16xf32>
    %361 = arith.mulf %320, %320 : vector<16x16xf32>
    %362 = arith.mulf %330, %330 : vector<16x16xf32>
    %363 = arith.mulf %320, %330 : vector<16x16xf32>
    %364 = arith.subf %340, %361 : vector<16x16xf32>
    %365 = arith.subf %350, %362 : vector<16x16xf32>
    %366 = arith.subf %360, %363 : vector<16x16xf32>
    %cst_109 = arith.constant 2.000000e+00 : f32
    %367 = vector.broadcast %cst_109 : f32 to vector<16x16xf32>
    %368 = arith.mulf %367, %363 : vector<16x16xf32>
    %cst_110 = arith.constant 9.99999974E-5 : f32
    %369 = vector.broadcast %cst_110 : f32 to vector<16x16xf32>
    %370 = arith.addf %368, %369 : vector<16x16xf32>
    %cst_111 = arith.constant 2.000000e+00 : f32
    %371 = vector.broadcast %cst_111 : f32 to vector<16x16xf32>
    %372 = arith.mulf %371, %366 : vector<16x16xf32>
    %cst_112 = arith.constant 8.99999984E-4 : f32
    %373 = vector.broadcast %cst_112 : f32 to vector<16x16xf32>
    %374 = arith.addf %372, %373 : vector<16x16xf32>
    %375 = arith.mulf %370, %374 : vector<16x16xf32>
    %376 = arith.addf %361, %362 : vector<16x16xf32>
    %cst_113 = arith.constant 9.99999974E-5 : f32
    %377 = vector.broadcast %cst_113 : f32 to vector<16x16xf32>
    %378 = arith.addf %376, %377 : vector<16x16xf32>
    %379 = arith.addf %364, %365 : vector<16x16xf32>
    %cst_114 = arith.constant 8.99999984E-4 : f32
    %380 = vector.broadcast %cst_114 : f32 to vector<16x16xf32>
    %381 = arith.addf %379, %380 : vector<16x16xf32>
    %382 = arith.mulf %378, %381 : vector<16x16xf32>
    %383 = tpu.reciprocal %382 {approx = true} : vector<16x16xf32> -> vector<16x16xf32>
    %384 = arith.mulf %375, %383 : vector<16x16xf32>
    %385 = vector.shape_cast %384 : vector<16x16xf32> to vector<1x16x16xf32>
    %cst_115 = arith.constant dense<0.000000e+00> : vector<1xf32>
    %386 = vector.multi_reduction <add>, %385, %cst_115 [1, 2] : vector<1x16x16xf32> to vector<1xf32>
    %387 = vector.shape_cast %386 : vector<1xf32> to vector<1x1x1xf32>
    %388 = vector.extract %387[0, 0, 0] : f32 from vector<1x1x1xf32>
    %389 = arith.addf %310, %388 : f32
    %cst_116 = arith.constant 0.000000e+00 : f32
    %390 = vector.broadcast %cst_116 : f32 to vector<1x128xf32>
    %391 = vector.broadcast %389 : f32 to vector<1x128xf32>
    %392 = arith.addf %390, %391 : vector<1x128xf32>
    %c0_117 = arith.constant 0 : index
    %c0_118 = arith.constant 0 : index
    %c0_119 = arith.constant 0 : index
    %393 = vector.load %arg5[%c0_117, %c0_118, %c0_119] : memref<1x1x128xf32, #tpu.memory_space<vmem>>, vector<1x1x128xf32>
    %394 = vector.shape_cast %393 : vector<1x1x128xf32> to vector<1x128xf32>
    %395 = vector.shape_cast %392 : vector<1x128xf32> to vector<1x1x128xf32>
    tpu.vector_store %arg5[%c0_117, %c0_118, %c0_119], %395 {strides = array<i32>} : memref<1x1x128xf32, #tpu.memory_space<vmem>>, vector<1x1x128xf32>,
    return
  }
  func.func @transform_0(%arg0: i32) -> (i32, i32, i32, i32, i32) {
    %c4_i32 = arith.constant 4 : i32
    %c0_i32 = arith.constant 0 : i32
    %c0_i32_0 = arith.constant 0 : i32
    %c0_i32_1 = arith.constant 0 : i32
    %c0_i32_2 = arith.constant 0 : i32
    return %arg0, %c4_i32, %c0_i32, %c0_i32_0, %c0_i32_1 : i32, i32, i32, i32, i32
  }
  func.func @transform_1(%arg0: i32) -> (i32, i32, i32, i32, i32) {
    %c0_i32 = arith.constant 0 : i32
    %c0_i32_0 = arith.constant 0 : i32
    %c0_i32_1 = arith.constant 0 : i32
    %c0_i32_2 = arith.constant 0 : i32
    %c0_i32_3 = arith.constant 0 : i32
    return %arg0, %c0_i32, %c0_i32_0, %c0_i32_1, %c0_i32_2 : i32, i32, i32, i32, i32
  }
  func.func @transform_2(%arg0: i32) -> (i32, i32) {
    %c0_i32 = arith.constant 0 : i32
    %c0_i32_0 = arith.constant 0 : i32
    %c0_i32_1 = arith.constant 0 : i32
    return %c0_i32, %c0_i32_0 : i32, i32
  }
  func.func @transform_3(%arg0: i32) -> (i32, i32) {
    %c0_i32 = arith.constant 0 : i32
    %c0_i32_0 = arith.constant 0 : i32
    %c0_i32_1 = arith.constant 0 : i32
    return %c0_i32, %c0_i32_0 : i32, i32
  }
  func.func @transform_4(%arg0: i32) -> (i32, i32, i32) {
    %c0_i32 = arith.constant 0 : i32
    %c0_i32_0 = arith.constant 0 : i32
    %c0_i32_1 = arith.constant 0 : i32
    return %arg0, %c0_i32, %c0_i32_0 : i32, i32, i32
  }
}

</mosaic_0001>

<bundles_post_ra>
// kernel: flow_loss_forward.2
= control target key start
LH: loop header
LB: loop body
LE: loop exit
PB: predicated region body
PF: predicated region fallthrough
CT: control target
= control target key end

     0   :  { %s2605_s15 = smov 0   ;;  %s3017_s0 = inlined_call_operand.vmem [shape: f32[2,3,4,16,16], index: 0, kind: input, shape index: {}]   ;;  %s3018_s1 = inlined_call_operand.vmem [shape: f32[2,6,4,16,16], index: 1, kind: input, shape index: {}]   ;;  %s3019_s2 = inlined_call_operand.vmem [shape: f32[16,16], index: 2, kind: input, shape index: {}]   ;;  %s3020_s3 = inlined_call_operand.vmem [shape: f32[16,16], index: 3, kind: input, shape index: {}]   ;;  %s3021_s4 = inlined_call_operand.vmem [shape: f32[2,1,128], index: 4, kind: output, shape index: {}]  }
   0x1 LB: > { %s2153_s16 = sadd.s32 4294967295, %s2577_s15   ;;  %p2157_p0 = scmp.ge.s32.totalorder %s2577_s15, 1  ;;  %s2577_s15 = sphi %s2605_s15, %s14_s15  }
   0x2   : > { %p172_p1 = scmp.lt.s32.totalorder %s2577_s15, 3 }
   0x4   : > { %p173_p2 = pnand %p2157_p0, %p172_p1 }
   0x5   : > { %v216_v0 = vld [vmem:[%s3020_s3] sm:$0xff] (!%p173_p2)  ;;  %v217_v1 = vld [vmem:[%s3020_s3 + $0x8] sm:$0xff] (!%p173_p2)  ;;  %p201_p3 = scmp.lt.s32.totalorder (!%p173_p2), %s2153_s16, 1  ;;  %vm251_vm0 = vcmask (!%p173_p2), 130048  }
   0x6   : > { %176 = sbr.rel (%p173_p2) target bundleno = 725 (0x2d5), region = 36  ;;  %v2468_v2 = vpack.c.bf16 (!%p173_p2), %v217_v1, %v216_v0  ;;  %v2750_v27 = vld [vmem:[%s3019_s2] sm:$0xff] (!%p173_p2)  ;;  %v2757_v63 = vld [vmem:[%s3019_s2 + $0x8] sm:$0xff] (!%p173_p2) }
   0x7   : > { %2356 = vmatprep.mubr.msk.f32.mxu1 (!%p173_p2), %vm251_vm0, %v2750_v27 }
   0x8   : > { %2469 = vmatprep.subr.bf16.mxu0 (!%p173_p2), %v2468_v2 }
   0x9   : > { %2471 = vmatpush3.bf16.msra.mxu0 (!%p173_p2), %v2468_v2 }
   0xa   : > { %2489 = vmatprep.subr.bf16.mxu0 (!%p173_p2), %v2468_v2 }
   0xd   : > { %s3023_s16 = smov (!%p201_p3, %s2153_s16), 1 }
   0xe   : > { %s2528_s21 = smul.u32 192, %s3023_s16 }
   0xf   : > { %s2529_s29 = smul.u32 384, %s3023_s16 }
  0x10   : > { %s2625_s24 = scalar_lea.vmem %s3017_s0, %s2528_s21 }
  0x11   : > { %v2628_v3 = vld [vmem:[%s2625_s24] sm:$0xff]  ;;  %v2631_v4 = vld [vmem:[%s2625_s24 + $0x8] sm:$0xff]  ;;  %v2634_v5 = vld [vmem:[%s2625_s24 + $0x10] sm:$0xff]  ;;  %s2809_s6 = scalar_lea.vmem %s3018_s1, %s2529_s29 }
  0x12   : > { %2340 = vmatprep.mubr.msk.f32.mxu0 %vm251_vm0, %v2628_v3  ;;  %v2643_v6 = vld [vmem:[%s2625_s24 + $0x18] sm:$0xff]  ;;  %v2646_v7 = vld [vmem:[%s2625_s24 + $0x20] sm:$0xff]  ;;  %v2653_v8 = vld [vmem:[%s2625_s24 + $0x28] sm:$0xff] }
  0x13   : > { %2341 = vmatmul.mubr.msk.f32.vlgmr.msra.gmra.mrb[0].mxu0 %vm251_vm0, %v2631_v4  ;;  %v2656_v9 = vld [vmem:[%s2625_s24 + $0x30] sm:$0xff]  ;;  %v2663_v10 = vld [vmem:[%s2625_s24 + $0x38] sm:$0xff]  ;;  %v2666_v11 = vld [vmem:[%s2625_s24 + $0x40] sm:$0xff] }
  0x14   : > { %2491 = vmatpush3.bf16.msra.mxu0 %v2468_v2  ;;  %2343 = vmatprep.mubr.msk.f32.mxu0 %vm251_vm0, %v2634_v5  ;;  %v2673_v12 = vld [vmem:[%s2625_s24 + $0x48] sm:$0xff]  ;;  %v2676_v13 = vld [vmem:[%s2625_s24 + $0x50] sm:$0xff]  ;;  %v2683_v14 = vld [vmem:[%s2625_s24 + $0x58] sm:$0xff] }
  0x15   : > { %2509 = vmatprep.subr.bf16.mxu0 %v2468_v2  ;;  %v2686_v15 = vld [vmem:[%s2625_s24 + $0x60] sm:$0xff]  ;;  %v2693_v16 = vld [vmem:[%s2625_s24 + $0x68] sm:$0xff]  ;;  %v2696_v17 = vld [vmem:[%s2625_s24 + $0x70] sm:$0xff] }
  0x16   : > { %v2703_v18 = vld [vmem:[%s2625_s24 + $0x78] sm:$0xff]  ;;  %v2706_v19 = vld [vmem:[%s2625_s24 + $0x80] sm:$0xff]  ;;  %v2713_v20 = vld [vmem:[%s2625_s24 + $0x88] sm:$0xff] }
  0x17   : > { %2344 = vmatmul.mubr.msk.f32.gmra.mrb[2].mxu0 %vm251_vm0, %v2643_v6  ;;  %v2716_v21 = vld [vmem:[%s2625_s24 + $0x90] sm:$0xff]  ;;  %v2723_v22 = vld [vmem:[%s2625_s24 + $0x98] sm:$0xff]  ;;  %v2726_v23 = vld [vmem:[%s2625_s24 + $0xa0] sm:$0xff] }
  0x18   : > { %2346 = vmatprep.mubr.msk.f32.mxu0 %vm251_vm0, %v2646_v7  ;;  %v2733_v24 = vld [vmem:[%s2625_s24 + $0xa8] sm:$0xff]  ;;  %v2736_v25 = vld [vmem:[%s2625_s24 + $0xb0] sm:$0xff]  ;;  %v2743_v26 = vld [vmem:[%s2625_s24 + $0xb8] sm:$0xff] }
  0x1b   : > { %2347 = vmatmul.mubr.msk.f32.gmra.mrb[4].mxu0 %vm251_vm0, %v2653_v8 }
  0x1c   : > { %2349 = vmatprep.mubr.msk.f32.mxu0 %vm251_vm0, %v2656_v9 }
  0x1f   : > { %2350 = vmatmul.mubr.msk.f32.gmra.mrb[6].mxu0 %vm251_vm0, %v2663_v10 }
  0x20   : > { %2384 = vmatprep.mubr.msk.f32.mxu0 %vm251_vm0, %v2666_v11 }
  0x23   : > { %2385 = vmatmul.mubr.msk.f32.vlgmr.msra.gmra.mrb[8].mxu0 %vm251_vm0, %v2673_v12 }
  0x24   : > { %2511 = vmatpush3.bf16.msra.mxu0 %v2468_v2  ;;  %2387 = vmatprep.mubr.msk.f32.mxu0 %vm251_vm0, %v2676_v13 }
  0x27   : > { %2388 = vmatmul.mubr.msk.f32.gmra.mrb[10].mxu0 %vm251_vm0, %v2683_v14 }
  0x28   : > { %2390 = vmatprep.mubr.msk.f32.mxu0 %vm251_vm0, %v2686_v15 }
  0x2b   : > { %2391 = vmatmul.mubr.msk.f32.gmra.mrb[12].mxu0 %vm251_vm0, %v2693_v16 }
  0x2c   : > { %2393 = vmatprep.mubr.msk.f32.mxu0 %vm251_vm0, %v2696_v17 }
  0x2f   : > { %2394 = vmatmul.mubr.msk.f32.gmra.mrb[14].mxu0 %vm251_vm0, %v2703_v18 }
  0x30   : > { %2428 = vmatprep.mubr.msk.f32.mxu0 %vm251_vm0, %v2706_v19 }
  0x33   : > { %2429 = vmatmul.mubr.msk.f32.vlgmr.msra.gmra.mrb[16].mxu0 %vm251_vm0, %v2713_v20 }
  0x34   : > { %2431 = vmatprep.mubr.msk.f32.mxu0 %vm251_vm0, %v2716_v21 }
  0x37   : > { %2432 = vmatmul.mubr.msk.f32.gmra.mrb[18].mxu0 %vm251_vm0, %v2723_v22 }
  0x38   : > { %2434 = vmatprep.mubr.msk.f32.mxu0 %vm251_vm0, %v2726_v23 }
  0x3b   : > { %2435 = vmatmul.mubr.msk.f32.gmra.mrb[20].mxu0 %vm251_vm0, %v2733_v24 }
  0x3c   : > { %2437 = vmatprep.mubr.msk.f32.mxu0 %vm251_vm0, %v2736_v25 }
  0x3f   : > { %2438 = vmatmul.mubr.msk.f32.gmra.mrb[22].mxu0 %vm251_vm0, %v2743_v26 }
  0xe6   : > { %v2342_v28 = vpop.f32.mrb[0].mxu0 }
  0xe7   : > { %v430_v29 = vpop.f32.mrb[1].mxu0  ;;  %v470_v30 = vmul.f32 0.32802135, %v2342_v28  ;;  %v678_v31 = vmul.f32 0.123841405, %v2342_v28 }
  0xe8   : > { %v469_v32 = vmul.f32 0.32802135, %v430_v29  ;;  %v677_v37 = vmul.f32 0.123841405, %v430_v29 }
  0xea   : > { %v2345_v33 = vpop.f32.mrb[2].mxu0 }
  0xeb   : > { %v472_v34 = vmul.f32 0.19895501, %v2345_v33  ;;  %v574_v35 = vmul.f32 0.27406862, %v2345_v33  ;;  %v440_v36 = vpop.f32.mrb[3].mxu0 }
  0xec   : > { %v471_v38 = vmul.f32 0.19895501, %v440_v36  ;;  %v573_v39 = vmul.f32 0.27406862, %v440_v36 }
  0xed   : > { %v576_v40 = vadd.f32 %v574_v35, %v470_v30  ;;  %v680_v41 = vadd.f32 %v678_v31, %v574_v35  ;;  %v474_v42 = vadd.f32 %v472_v34, %v470_v30 }
  0xee   : > { %v575_v43 = vadd.f32 %v573_v39, %v469_v32  ;;  %v679_v44 = vadd.f32 %v677_v37, %v573_v39  ;;  %v2348_v45 = vpop.f32.mrb[4].mxu0  ;;  %v473_v46 = vadd.f32 %v471_v38, %v469_v32 }
  0xef   : > { %v578_v47 = vmul.f32 0.123841405, %v2348_v45  ;;  %v682_v48 = vmul.f32 0.32802135, %v2348_v45  ;;  %v450_v49 = vpop.f32.mrb[5].mxu0 }
  0xf0   : > { %v577_v50 = vmul.f32 0.123841405, %v450_v49  ;;  %v681_v51 = vmul.f32 0.32802135, %v450_v49  ;;  %v2472_v52 = vpack.c.bf16 %v474_v42, %v473_v46 }
  0xf1   : > { %v580_v53 = vadd.f32 %v578_v47, %v576_v40  ;;  %v684_v54 = vadd.f32 %v682_v48, %v680_v41  ;;  %v782_v55 = vadd.f32 %v682_v48, %v472_v34 }
  0xf2   : > { %v579_v56 = vadd.f32 %v577_v50, %v575_v43  ;;  %v683_v57 = vadd.f32 %v681_v51, %v679_v44  ;;  %v781_v58 = vadd.f32 %v681_v51, %v471_v38  ;;  %v2351_v59 = vpop.f32.mrb[6].mxu0  ;;  %2473 = vmatprep.subr.bf16.mxu1 %v2472_v52 }
  0xf3   : > { %v582_v60 = vmul.f32 0.07511361, %v2351_v59  ;;  %v686_v61 = vmul.f32 0.19895501, %v2351_v59  ;;  %v460_v62 = vpop.f32.mrb[7].mxu0  ;;  %2475 = vmatpush3.bf16.msra.mxu1 %v2472_v52 }
  0xf4   : > { %v581_v0 = vmul.f32 0.07511361, %v460_v62  ;;  %v685_v1 = vmul.f32 0.19895501, %v460_v62 }
  0xf5   : > { %v584_v2 = vadd.f32 %v582_v60, %v580_v53  ;;  %v688_v28 = vadd.f32 %v686_v61, %v684_v54  ;;  %v784_v29 = vadd.f32 %v782_v55, %v686_v61 }
  0xf6   : > { %v583_v30 = vadd.f32 %v581_v0, %v579_v56  ;;  %v687_v31 = vadd.f32 %v685_v1, %v683_v57  ;;  %v783_v32 = vadd.f32 %v781_v58, %v685_v1  ;;  %2357 = vmatmul.mubr.msk.f32.vlgmr.msra.gmra.mrb[0].mxu1 %vm251_vm0, %v2757_v63  ;;  %v2386_v33 = vpop.f32.mrb[8].mxu0 }
  0xf7   : > { %v1033_v34 = vpop.f32.mrb[9].mxu0  ;;  %2363 = vmatprep.mubr.msk.f32.mxu1 %vm251_vm0, %v2750_v27  ;;  %v1073_v37 = vmul.f32 0.32802135, %v2386_v33  ;;  %v1275_v39 = vmul.f32 0.123841405, %v2386_v33 }
  0xf8   : > { %v2476_v35 = vpack.c.bf16 %v584_v2, %v583_v30  ;;  %v2480_v36 = vpack.c.bf16 %v688_v28, %v687_v31  ;;  %v2484_v38 = vpack.c.bf16 %v784_v29, %v783_v32  ;;  %v1072_v40 = vmul.f32 0.32802135, %v1033_v34 }
  0xf9   : > { %v1274_v45 = vmul.f32 0.123841405, %v1033_v34 }
  0xfa   : > { %2477 = vmatprep.subr.bf16.mxu1 %v2476_v35  ;;  %v2389_v41 = vpop.f32.mrb[10].mxu0 }
  0xfb   : > { %v1075_v42 = vmul.f32 0.19895501, %v2389_v41  ;;  %v1171_v43 = vmul.f32 0.27406862, %v2389_v41  ;;  %2479 = vmatpush3.bf16.msra.mxu1 %v2476_v35  ;;  %v1043_v44 = vpop.f32.mrb[11].mxu0 }
  0xfc   : > { %v1074_v46 = vmul.f32 0.19895501, %v1043_v44  ;;  %v1170_v47 = vmul.f32 0.27406862, %v1043_v44  ;;  %2481 = vmatprep.subr.bf16.mxu1 %v2480_v36 }
  0xfd   : > { %v1077_v48 = vadd.f32 %v1075_v42, %v1073_v37  ;;  %v1173_v49 = vadd.f32 %v1171_v43, %v1073_v37  ;;  %v1277_v50 = vadd.f32 %v1275_v39, %v1171_v43 }
  0xfe   : > { %v1076_v51 = vadd.f32 %v1074_v46, %v1072_v40  ;;  %v1172_v52 = vadd.f32 %v1170_v47, %v1072_v40  ;;  %v1276_v53 = vadd.f32 %v1274_v45, %v1170_v47  ;;  %2364 = vmatmul.mubr.msk.f32.vlgmr.msra.gmra.mrb[2].mxu1 %vm251_vm0, %v2757_v63  ;;  %v2392_v54 = vpop.f32.mrb[12].mxu0 }
  0xff   : > { %v1175_v55 = vmul.f32 0.123841405, %v2392_v54  ;;  %v1279_v56 = vmul.f32 0.32802135, %v2392_v54  ;;  %2483 = vmatpush3.bf16.msra.mxu1 %v2480_v36  ;;  %v1053_v57 = vpop.f32.mrb[13].mxu0  ;;  %2370 = vmatprep.mubr.msk.f32.mxu1 %vm251_vm0, %v2750_v27 }
 0x100   : > { %v1174_v58 = vmul.f32 0.123841405, %v1053_v57  ;;  %v1278_v59 = vmul.f32 0.32802135, %v1053_v57  ;;  %2485 = vmatprep.subr.bf16.mxu1 %v2484_v38  ;;  %v2492_v60 = vpack.c.bf16 %v1077_v48, %v1076_v51 }
 0x101   : > { %v1177_v61 = vadd.f32 %v1175_v55, %v1173_v49  ;;  %v1281_v62 = vadd.f32 %v1279_v56, %v1277_v50  ;;  %v1379_v0 = vadd.f32 %v1279_v56, %v1075_v42 }
 0x102   : > { %v1176_v1 = vadd.f32 %v1174_v58, %v1172_v52  ;;  %v1280_v2 = vadd.f32 %v1278_v59, %v1276_v53  ;;  %v1378_v28 = vadd.f32 %v1278_v59, %v1074_v46  ;;  %2371 = vmatmul.mubr.msk.f32.vlgmr.msra.gmra.mrb[4].mxu1 %vm251_vm0, %v2757_v63  ;;  %v2395_v29 = vpop.f32.mrb[14].mxu0 }
 0x103   : > { %v1179_v30 = vmul.f32 0.07511361, %v2395_v29  ;;  %v1283_v31 = vmul.f32 0.19895501, %v2395_v29  ;;  %2487 = vmatpush3.bf16.msra.mxu1 %v2484_v38  ;;  %v1063_v32 = vpop.f32.mrb[15].mxu0  ;;  %2377 = vmatprep.mubr.msk.f32.mxu1 %vm251_vm0, %v2750_v27 }
 0x104   : > { %v1178_v33 = vmul.f32 0.07511361, %v1063_v32  ;;  %v1282_v34 = vmul.f32 0.19895501, %v1063_v32  ;;  %2493 = vmatprep.subr.bf16.mxu1 %v2492_v60 }
 0x105   : > { %v1181_v35 = vadd.f32 %v1179_v30, %v1177_v61  ;;  %v1285_v36 = vadd.f32 %v1283_v31, %v1281_v62  ;;  %v1381_v37 = vadd.f32 %v1379_v0, %v1283_v31 }
 0x106   : > { %v1180_v39 = vadd.f32 %v1178_v33, %v1176_v1  ;;  %v1284_v40 = vadd.f32 %v1282_v34, %v1280_v2  ;;  %v1380_v41 = vadd.f32 %v1378_v28, %v1282_v34  ;;  %2378 = vmatmul.mubr.msk.f32.vlgmr.msra.gmra.mrb[6].mxu1 %vm251_vm0, %v2757_v63  ;;  %v2430_v42 = vpop.f32.mrb[16].mxu0 }
 0x107   : > { %2495 = vmatpush3.bf16.msra.mxu1 %v2492_v60  ;;  %v1630_v43 = vpop.f32.mrb[17].mxu0  ;;  %2400 = vmatprep.mubr.msk.f32.mxu1 %vm251_vm0, %v2750_v27  ;;  %v1670_v45 = vmul.f32 0.32802135, %v2430_v42  ;;  %v1872_v47 = vmul.f32 0.123841405, %v2430_v42 }
 0x108   : > { %v2496_v38 = vpack.c.bf16 %v1181_v35, %v1180_v39  ;;  %v2500_v44 = vpack.c.bf16 %v1285_v36, %v1284_v40  ;;  %v2504_v46 = vpack.c.bf16 %v1381_v37, %v1380_v41  ;;  %v1669_v48 = vmul.f32 0.32802135, %v1630_v43 }
 0x109   : > { %v1871_v53 = vmul.f32 0.123841405, %v1630_v43 }
 0x10a   : > { %2401 = vmatmul.mubr.msk.f32.vlgmr.msra.gmra.mrb[8].mxu1 %vm251_vm0, %v2757_v63  ;;  %2497 = vmatprep.subr.bf16.mxu1 %v2496_v38  ;;  %v2433_v49 = vpop.f32.mrb[18].mxu0 }
 0x10b   : > { %v1672_v50 = vmul.f32 0.19895501, %v2433_v49  ;;  %v1768_v51 = vmul.f32 0.27406862, %v2433_v49  ;;  %2499 = vmatpush3.bf16.msra.mxu1 %v2496_v38  ;;  %v1640_v52 = vpop.f32.mrb[19].mxu0  ;;  %2407 = vmatprep.mubr.msk.f32.mxu1 %vm251_vm0, %v2750_v27 }
 0x10c   : > { %v1671_v54 = vmul.f32 0.19895501, %v1640_v52  ;;  %v1767_v55 = vmul.f32 0.27406862, %v1640_v52  ;;  %2501 = vmatprep.subr.bf16.mxu1 %v2500_v44  ;;  %v284_v52 = vld [vmem:[%s2809_s6] sm:$0xff] }
 0x10d   : > { %v1674_v56 = vadd.f32 %v1672_v50, %v1670_v45  ;;  %v1770_v57 = vadd.f32 %v1768_v51, %v1670_v45  ;;  %v1874_v58 = vadd.f32 %v1872_v47, %v1768_v51 }
 0x10e   : > { %v1673_v59 = vadd.f32 %v1671_v54, %v1669_v48  ;;  %v1769_v60 = vadd.f32 %v1767_v55, %v1669_v48  ;;  %v1873_v61 = vadd.f32 %v1871_v53, %v1767_v55  ;;  %2408 = vmatmul.mubr.msk.f32.vlgmr.msra.gmra.mrb[10].mxu1 %vm251_vm0, %v2757_v63  ;;  %v2436_v62 = vpop.f32.mrb[20].mxu0  ;;  %v292_v53 = vsub.f32 %v2628_v3, %v284_v52  ;;  %v286_v55 = vld [vmem:[%s2809_s6 + $0x10] sm:$0xff] }
 0x10f   : > { %v1772_v0 = vmul.f32 0.123841405, %v2436_v62  ;;  %v1876_v1 = vmul.f32 0.32802135, %v2436_v62  ;;  %2503 = vmatpush3.bf16.msra.mxu1 %v2500_v44  ;;  %v1650_v2 = vpop.f32.mrb[21].mxu0  ;;  %2414 = vmatprep.mubr.msk.f32.mxu1 %vm251_vm0, %v2750_v27  ;;  %v2200_v62 = vld [vmem:[%s2809_s6 + $0x40] sm:$0xff] }
 0x110   : > { %v1771_v28 = vmul.f32 0.123841405, %v1650_v2  ;;  %v1875_v29 = vmul.f32 0.32802135, %v1650_v2  ;;  %2505 = vmatprep.subr.bf16.mxu1 %v2504_v46  ;;  %v2512_v30 = vpack.c.bf16 %v1674_v56, %v1673_v59  ;;  %v2161_v56 = vld [vmem:[%s2809_s6 + $0xc8] sm:$0xff]  ;;  %v287_v59 = vld [vmem:[%s2809_s6 + $0x18] sm:$0xff] }
 0x111   : > { %v1774_v31 = vadd.f32 %v1772_v0, %v1770_v57  ;;  %v1878_v32 = vadd.f32 %v1876_v1, %v1874_v58  ;;  %v1976_v33 = vadd.f32 %v1876_v1, %v1672_v50  ;;  %v300_v57 = vand.u32 2147483647, %v292_v53  ;;  %v2201_v0 = vld [vmem:[%s2809_s6 + $0x48] sm:$0xff] }
 0x112   : > { %v1773_v34 = vadd.f32 %v1771_v28, %v1769_v60  ;;  %v1877_v35 = vadd.f32 %v1875_v29, %v1873_v61  ;;  %v1975_v36 = vadd.f32 %v1875_v29, %v1671_v54  ;;  %2415 = vmatmul.mubr.msk.f32.vlgmr.msra.gmra.mrb[12].mxu1 %vm251_vm0, %v2757_v63  ;;  %v2439_v37 = vpop.f32.mrb[22].mxu0  ;;  %v294_v58 = vsub.f32 %v2634_v5, %v286_v55  ;;  %v2162_v61 = vld [vmem:[%s2809_s6 + $0xd0] sm:$0xff]  ;;  %v288_v29 = vld [vmem:[%s2809_s6 + $0x20] sm:$0xff]  ;;  %v291_v55 = vld [vmem:[%s2809_s6 + $0x38] sm:$0xff] }
 0x113   : > { %v1776_v39 = vmul.f32 0.07511361, %v2439_v37  ;;  %v1880_v40 = vmul.f32 0.19895501, %v2439_v37  ;;  %2507 = vmatpush3.bf16.msra.mxu1 %v2504_v46  ;;  %v1660_v41 = vpop.f32.mrb[23].mxu0  ;;  %2421 = vmatprep.mubr.msk.f32.mxu1 %vm251_vm0, %v2750_v27  ;;  %vm228_vm2 = vcmp.gt.f32.partialorder %v2161_v56, 0.0  ;;  %v295_v28 = vsub.f32 %v2643_v6, %v287_v59 }
 0x114   : > { %v1775_v42 = vmul.f32 0.07511361, %v1660_v41  ;;  %v1879_v43 = vmul.f32 0.19895501, %v1660_v41  ;;  %2513 = vmatprep.subr.bf16.mxu1 %v2512_v30  ;;  %v2579_v1 = vmov 0.0   ;;  %vm229_vm3 = vcmp.gt.f32.partialorder %v2162_v61, 0.0 }
 0x115   : > { %v1778_v38 = vadd.f32 %v1776_v39, %v1774_v31  ;;  %v1882_v44 = vadd.f32 %v1880_v40, %v1878_v32  ;;  %v1978_v45 = vadd.f32 %v1976_v33, %v1880_v40  ;;  %v2830_v31 = vsel %vm228_vm2, 1.0, %v2579_v1  ;;  %v2163_v33 = vld [vmem:[%s2809_s6 + $0xd8] sm:$0xff]  ;;  %v2202_v41 = vld [vmem:[%s2809_s6 + $0x50] sm:$0xff] }
 0x116   : > { %v1777_v47 = vadd.f32 %v1775_v42, %v1773_v34  ;;  %v1881_v48 = vadd.f32 %v1879_v43, %v1877_v35  ;;  %v1977_v49 = vadd.f32 %v1975_v36, %v1879_v43  ;;  %2422 = vmatmul.mubr.msk.f32.vlgmr.msra.gmra.mrb[14].mxu1 %vm251_vm0, %v2757_v63  ;;  %v302_v32 = vand.u32 2147483647, %v294_v58  ;;  %v2164_v34 = vld [vmem:[%s2809_s6 + $0xe0] sm:$0xff]  ;;  %v289_v36 = vld [vmem:[%s2809_s6 + $0x28] sm:$0xff] }
 0x117   : > { %2515 = vmatpush3.bf16.msra.mxu1 %v2512_v30  ;;  %2444 = vmatprep.mubr.msk.f32.mxu1 %vm251_vm0, %v2750_v27  ;;  %v895_v37 = vsub.f32 %v2666_v11, %v2200_v62  ;;  %v896_v39 = vsub.f32 %v2673_v12, %v2201_v0  ;;  %v296_v40 = vsub.f32 %v2646_v7, %v288_v29  ;;  %v2841_v42 = vsel %vm229_vm3, 1.0, %v2579_v1  ;;  %v2204_v62 = vld [vmem:[%s2809_s6 + $0x60] sm:$0xff] }
 0x118   : > { %v2516_v46 = vpack.c.bf16 %v1778_v38, %v1777_v47  ;;  %v2520_v50 = vpack.c.bf16 %v1882_v44, %v1881_v48  ;;  %v2524_v51 = vpack.c.bf16 %v1978_v45, %v1977_v49  ;;  %vm230_vm4 = vcmp.gt.f32.partialorder %v2163_v33, 0.0  ;;  %v2165_v38 = vld [vmem:[%s2809_s6 + $0xe8] sm:$0xff]  ;;  %v2203_v48 = vld [vmem:[%s2809_s6 + $0x58] sm:$0xff] }
 0x119   : > { %v303_v43 = vand.u32 2147483647, %v295_v28  ;;  %vm231_vm5 = vcmp.gt.f32.partialorder %v2164_v34, 0.0  ;;  %v310_v45 = vmul.f32 %v2841_v42, %v302_v32  ;;  %v297_v47 = vsub.f32 %v2653_v8, %v289_v36 }
 0x11a   : > { %2445 = vmatmul.mubr.msk.f32.vlgmr.msra.gmra.mrb[16].mxu1 %vm251_vm0, %v2757_v63  ;;  %2517 = vmatprep.subr.bf16.mxu1 %v2516_v46  ;;  %v2851_v52 = vsel %vm230_vm4, 1.0, %v2579_v1  ;;  %v304_v53 = vand.u32 2147483647, %v296_v40  ;;  %vm232_vm6 = vcmp.gt.f32.partialorder %v2165_v38, 0.0  ;;  %v898_v56 = vsub.f32 %v2683_v14, %v2203_v48 }
 0x11b   : > { %2519 = vmatpush3.bf16.msra.mxu1 %v2516_v46  ;;  %2451 = vmatprep.mubr.msk.f32.mxu1 %vm251_vm0, %v2750_v27  ;;  %v903_v46 = vand.u32 2147483647, %v895_v37  ;;  %v253_v58 = vsel %vm251_vm0, %v2830_v31, 0.0  ;;  %v305_v61 = vand.u32 2147483647, %v297_v47  ;;  %v255_v32 = vsel %vm251_vm0, %v2841_v42, 0.0 }
 0x11c   : > { %2521 = vmatprep.subr.bf16.mxu1 %v2520_v50  ;;  %v2872_v33 = vsel %vm232_vm6, 1.0, %v2579_v1  ;;  %v899_v40 = vsub.f32 %v2686_v15, %v2204_v62 }
 0x11e   : > { %2452 = vmatmul.mubr.msk.f32.vlgmr.msra.gmra.mrb[18].mxu1 %vm251_vm0, %v2757_v63 }
 0x11f   : > { %2523 = vmatpush3.bf16.msra.mxu1 %v2520_v50  ;;  %2458 = vmatprep.mubr.msk.f32.mxu1 %vm251_vm0, %v2750_v27  ;;  %v904_v50 = vand.u32 2147483647, %v896_v39  ;;  %v906_v39 = vand.u32 2147483647, %v898_v56 }
 0x120   : > { %2525 = vmatprep.subr.bf16.mxu1 %v2524_v51 }
 0x121   : > { %v912_v29 = vmul.f32 %v2830_v31, %v904_v50  ;;  %v914_v56 = vmul.f32 %v2851_v52, %v906_v39 }
 0x122   : > { %2459 = vmatmul.mubr.msk.f32.vlgmr.msra.gmra.mrb[20].mxu1 %vm251_vm0, %v2757_v63 }
 0x123   : > { %2527 = vmatpush3.bf16.msra.mxu1 %v2524_v51  ;;  %2465 = vmatprep.mubr.msk.f32.mxu1 %vm251_vm0, %v2750_v27  ;;  %v285_v27 = vld [vmem:[%s2809_s6 + $0x8] sm:$0xff]  ;;  %v897_v51 = vsub.f32 %v2676_v13, %v2202_v41 }
 0x124   : > { %v293_v54 = vsub.f32 %v2631_v4, %v285_v27  ;;  %v2854_v27 = vsel %vm231_vm5, 1.0, %v2579_v1  ;;  %v2205_v41 = vld [vmem:[%s2809_s6 + $0x68] sm:$0xff] }
 0x125   : > { %v312_v37 = vmul.f32 %v2854_v27, %v304_v53  ;;  %v259_v50 = vsel %vm251_vm0, %v2854_v27, 0.0 }
 0x126   : > { %2466 = vmatmul.mubr.msk.f32.vlgmr.msra.gmra.mrb[22].mxu1 %vm251_vm0, %v2757_v63  ;;  %v2160_v63 = vld [vmem:[%s2809_s6 + $0xc0] sm:$0xff]  ;;  %v301_v60 = vand.u32 2147483647, %v293_v54  ;;  %v290_v54 = vld [vmem:[%s2809_s6 + $0x30] sm:$0xff] }
 0x127   : > { %vm227_vm1 = vcmp.gt.f32.partialorder %v2160_v63, 0.0  ;;  %v311_v63 = vmul.f32 %v2851_v52, %v303_v43  ;;  %v298_v34 = vsub.f32 %v2656_v9, %v290_v54  ;;  %v257_v43 = vsel %vm251_vm0, %v2851_v52, 0.0 }
 0x128   : > { %v2824_v2 = vsel %vm227_vm1, 1.0, %v2579_v1  ;;  %v309_v35 = vmul.f32 %v2830_v31, %v301_v60  ;;  %v319_v60 = vsel %vm251_vm0, %v310_v45, 0.0  ;;  %v313_v45 = vmul.f32 %v2872_v33, %v305_v61  ;;  %v2167_v61 = vld [vmem:[%s2809_s6 + $0xf8] sm:$0xff] }
 0x129   : > { %v308_v30 = vmul.f32 %v2824_v2, %v300_v57  ;;  %v252_v57 = vsel %vm251_vm0, %v2824_v2, 0.0  ;;  %v911_v28 = vmul.f32 %v2824_v2, %v903_v46  ;;  %v321_v38 = vsel %vm251_vm0, %v311_v63, 0.0 }
 0x12a   : > { %v317_v49 = vsel %vm251_vm0, %v309_v35, 0.0  ;;  %v254_v0 = vadd.f32 %v253_v58, %v252_v57  ;;  %v299_v35 = vsub.f32 %v2663_v10, %v291_v55  ;;  %v920_v46 = vsel %vm251_vm0, %v912_v29, 0.0  ;;  %v2166_v55 = vld [vmem:[%s2809_s6 + $0xf0] sm:$0xff] }
 0x12b   : > { %v316_v44 = vsel %vm251_vm0, %v308_v30, 0.0  ;;  %v905_v30 = vand.u32 2147483647, %v897_v51  ;;  %v919_v48 = vsel %vm251_vm0, %v911_v28, 0.0  ;;  %v306_v51 = vand.u32 2147483647, %v298_v34 }
 0x12c   : > { %v318_v59 = vadd.f32 %v317_v49, %v316_v44  ;;  %v256_v36 = vadd.f32 %v255_v32, %v254_v0  ;;  %v307_v53 = vand.u32 2147483647, %v299_v35  ;;  %v900_v54 = vsub.f32 %v2693_v16, %v2205_v41  ;;  %v2206_v58 = vld [vmem:[%s2809_s6 + $0x70] sm:$0xff] }
 0x12d   : > { %v913_v49 = vmul.f32 %v2841_v42, %v905_v30  ;;  %v907_v57 = vand.u32 2147483647, %v899_v40  ;;  %vm233_vm7 = vcmp.gt.f32.partialorder %v2166_v55, 0.0  ;;  %v2207_v30 = vld [vmem:[%s2809_s6 + $0x78] sm:$0xff]  ;;  %vm234_vm8 = vcmp.gt.f32.partialorder %v2167_v61, 0.0  ;;  %v2232_v55 = vld [vmem:[%s2809_s6 + $0x80] sm:$0xff] }
 0x12e   : > { %v320_v44 = vadd.f32 %v319_v60, %v318_v59  ;;  %v258_v47 = vadd.f32 %v257_v43, %v256_v36  ;;  %v261_v59 = vsel %vm251_vm0, %v2872_v33, 0.0  ;;  %v921_v60 = vadd.f32 %v920_v46, %v919_v48 }
 0x12f   : > { %v2896_v62 = vsel %vm233_vm7, 1.0, %v2579_v1  ;;  %v922_v29 = vsel %vm251_vm0, %v913_v49, 0.0  ;;  %v323_v34 = vsel %vm251_vm0, %v312_v37, 0.0  ;;  %v901_v35 = vsub.f32 %v2696_v17, %v2206_v58 }
 0x130   : > { %v260_v63 = vadd.f32 %v259_v50, %v258_v47  ;;  %v322_v28 = vadd.f32 %v321_v38, %v320_v44  ;;  %v263_v32 = vsel %vm251_vm0, %v2896_v62, 0.0  ;;  %v2905_v36 = vsel %vm234_vm8, 1.0, %v2579_v1 }
 0x131   : > { %v908_v41 = vand.u32 2147483647, %v900_v54  ;;  %v265_v43 = vsel %vm251_vm0, %v2905_v36, 0.0  ;;  %v314_v44 = vmul.f32 %v2896_v62, %v306_v51  ;;  %v325_v38 = vsel %vm251_vm0, %v313_v45, 0.0 }
 0x132   : > { %v262_v0 = vadd.f32 %v261_v59, %v260_v63  ;;  %v324_v40 = vadd.f32 %v323_v34, %v322_v28  ;;  %v923_v47 = vadd.f32 %v922_v29, %v921_v60  ;;  %v902_v37 = vsub.f32 %v2703_v18, %v2207_v30  ;;  %v2233_v63 = vld [vmem:[%s2809_s6 + $0x88] sm:$0xff] }
 0x133   : > { %v924_v46 = vsel %vm251_vm0, %v914_v56, 0.0  ;;  %v915_v1 = vmul.f32 %v2854_v27, %v907_v57  ;;  %v315_v50 = vmul.f32 %v2905_v36, %v307_v53  ;;  %v327_v54 = vsel %vm251_vm0, %v314_v44, 0.0  ;;  %v2234_v53 = vld [vmem:[%s2809_s6 + $0x90] sm:$0xff]  ;;  %v2235_v44 = vld [vmem:[%s2809_s6 + $0x98] sm:$0xff] }
 0x134   : > { %v264_v39 = vadd.f32 %v263_v32, %v262_v0  ;;  %v326_v49 = vadd.f32 %v325_v38, %v324_v40  ;;  %v916_v45 = vmul.f32 %v2872_v33, %v908_v41  ;;  %v909_v58 = vand.u32 2147483647, %v901_v35 }
 0x135   : > { %v329_v59 = vsel %vm251_vm0, %v315_v50, 0.0  ;;  %v925_v61 = vadd.f32 %v924_v46, %v923_v47  ;;  %v910_v56 = vand.u32 2147483647, %v902_v37  ;;  %v1492_v0 = vsub.f32 %v2706_v19, %v2232_v55  ;;  %v2236_v50 = vld [vmem:[%s2809_s6 + $0xa0] sm:$0xff]  ;;  %v2237_v55 = vld [vmem:[%s2809_s6 + $0xa8] sm:$0xff] }
 0x136   : > { %v266_v48 = vadd.f32 %v265_v43, %v264_v39  ;;  %v328_v51 = vadd.f32 %v327_v54, %v326_v49  ;;  %v1493_v57 = vsub.f32 %v2713_v20, %v2233_v63  ;;  %v926_v28 = vsel %vm251_vm0, %v915_v1, 0.0 }
 0x137   : > { %v927_v29 = vadd.f32 %v926_v28, %v925_v61  ;;  %v917_v30 = vmul.f32 %v2896_v62, %v909_v58  ;;  %v928_v32 = vsel %vm251_vm0, %v916_v45, 0.0  ;;  %v1494_v34 = vsub.f32 %v2716_v21, %v2234_v53 }
 0x138   : > { %267 = vadd.xlane.f32.xlu0 %v266_v48  ;;  %v330_v60 = vadd.f32 %v329_v59, %v328_v51  ;;  %v1500_v39 = vand.u32 2147483647, %v1492_v0  ;;  %v1501_v40 = vand.u32 2147483647, %v1493_v57  ;;  %v918_v41 = vmul.f32 %v2905_v36, %v910_v56  ;;  %v2239_v0 = vld [vmem:[%s2809_s6 + $0xb8] sm:$0xff] }
 0x139   : > { %v929_v35 = vadd.f32 %v928_v32, %v927_v29  ;;  %v930_v43 = vsel %vm251_vm0, %v917_v30, 0.0  ;;  %v1502_v46 = vand.u32 2147483647, %v1494_v34  ;;  %v1495_v1 = vsub.f32 %v2723_v22, %v2235_v44 }
 0x13a   : > { %v932_v47 = vsel %vm251_vm0, %v918_v41, 0.0  ;;  %v1508_v48 = vmul.f32 %v2824_v2, %v1500_v39  ;;  %v1509_v49 = vmul.f32 %v2830_v31, %v1501_v40  ;;  %v1496_v54 = vsub.f32 %v2726_v23, %v2236_v50  ;;  %v2238_v31 = vld [vmem:[%s2809_s6 + $0xb0] sm:$0xff] }
 0x13b   : > { %v931_v38 = vadd.f32 %v930_v43, %v929_v35  ;;  %v1510_v51 = vmul.f32 %v2841_v42, %v1502_v46  ;;  %v1503_v58 = vand.u32 2147483647, %v1495_v1  ;;  %v1497_v2 = vsub.f32 %v2733_v24, %v2237_v55 }
 0x13c   : > { %331 = vadd.xlane.f32.xlu0 %v330_v60  ;;  %v1516_v63 = vsel %vm251_vm0, %v1508_v48, 0.0  ;;  %v1517_v45 = vsel %vm251_vm0, %v1509_v49, 0.0  ;;  %v1504_v56 = vand.u32 2147483647, %v1496_v54  ;;  %v1498_v53 = vsub.f32 %v2736_v25, %v2238_v31 }
 0x13d   : > { %v933_v37 = vadd.f32 %v932_v47, %v931_v38  ;;  %v1518_v59 = vadd.f32 %v1517_v45, %v1516_v63  ;;  %v1519_v60 = vsel %vm251_vm0, %v1510_v51, 0.0  ;;  %v1511_v61 = vmul.f32 %v2851_v52, %v1503_v58 }
 0x13e   : > { %v1505_v57 = vand.u32 2147483647, %v1497_v2  ;;  %v1512_v42 = vmul.f32 %v2854_v27, %v1504_v56  ;;  %v1499_v30 = vsub.f32 %v2743_v26, %v2239_v0  ;;  %v1506_v34 = vand.u32 2147483647, %v1498_v53 }
 0x13f   : > { %v1520_v28 = vadd.f32 %v1519_v60, %v1518_v59  ;;  %v1521_v29 = vsel %vm251_vm0, %v1511_v61, 0.0 }
 0x140   : > { %934 = vadd.xlane.f32.xlu0 %v933_v37  ;;  %v1513_v32 = vmul.f32 %v2872_v33, %v1505_v57  ;;  %v1507_v39 = vand.u32 2147483647, %v1499_v30  ;;  %v1523_v40 = vsel %vm251_vm0, %v1512_v42, 0.0  ;;  %v1514_v41 = vmul.f32 %v2896_v62, %v1506_v34 }
 0x141   : > { %v1522_v35 = vadd.f32 %v1521_v29, %v1520_v28 }
 0x142   : > { %v1525_v43 = vsel %vm251_vm0, %v1513_v32, 0.0  ;;  %v1515_v38 = vmul.f32 %v2905_v36, %v1507_v39  ;;  %v1527_v47 = vsel %vm251_vm0, %v1514_v41, 0.0 }
 0x143   : > { %v1524_v52 = vadd.f32 %v1523_v40, %v1522_v35 }
 0x144   : > { %v1529_v37 = vsel %vm251_vm0, %v1515_v38, 0.0 }
 0x145   : > { %v1526_v44 = vadd.f32 %v1525_v43, %v1524_v52 }
 0x147   : > { %v1528_v27 = vadd.f32 %v1527_v47, %v1526_v44 }
 0x149   : > { %v2956_v48 = vadd.f32 %v1529_v37, %v1528_v27 }
 0x1c5   : > { %v268_v34 = vpop.xlane.xlu0 %267 }
 0x1c6   : > { %v269_v39 = vrot.slane %v268_v34, 4 }
 0x1c8   : > { %v270_v44 = vadd.f32 %v269_v39, %v268_v34 }
 0x1c9   : > { %v2358_v33 = vpop.f32.mrb[0].mxu1  ;;  %v332_v47 = vpop.xlane.xlu0 %331 }
 0x1ca   : > { %v557_v49 = vsub.f32 %v2631_v4, %v2358_v33  ;;  %v547_v46 = vpop.f32.mrb[1].mxu1  ;;  %v333_v33 = vrot.slane %v332_v47, 4 }
 0x1cb   : > { %v556_v1 = vsub.f32 %v2628_v3, %v547_v46 }
 0x1cc   : > { %v559_v50 = vand.u32 2147483647, %v557_v49 }
 0x1cd   : > { %v558_v62 = vand.u32 2147483647, %v556_v1 }
 0x1ce   : > { %v561_v54 = vsel %vm251_vm0, %v559_v50, 0.0 }
 0x1cf   : > { %v560_v55 = vsel %vm251_vm0, %v558_v62, 0.0  ;;  %v334_v62 = vadd.f32 %v333_v33, %v332_v47 }
 0x1d0   : > { %v562_v36 = vadd.f32 %v561_v54, %v560_v55 }
 0x1d1   : > { %v2365_v63 = vpop.f32.mrb[2].mxu1 }
 0x1d2   : > { %v661_v51 = vsub.f32 %v2643_v6, %v2365_v63  ;;  %563 = vadd.xlane.f32.xlu1 %v562_v36  ;;  %v651_v45 = vpop.f32.mrb[3].mxu1 }
 0x1d3   : > { %v660_v58 = vsub.f32 %v2634_v5, %v651_v45 }
 0x1d4   : > { %v663_v2 = vand.u32 2147483647, %v661_v51  ;;  %v335_v51 = vrot.slane %v334_v62, 2 }
 0x1d5   : > { %v662_v59 = vand.u32 2147483647, %v660_v58  ;;  %v2372_v4 = vpop.f32.mrb[4].mxu1 }
 0x1d6   : > { %v765_v31 = vsub.f32 %v2653_v8, %v2372_v4  ;;  %v755_v3 = vpop.f32.mrb[5].mxu1  ;;  %v665_v60 = vsel %vm251_vm0, %v663_v2, 0.0  ;;  %v336_v4 = vadd.f32 %v335_v51, %v334_v62 }
 0x1d7   : > { %v764_v61 = vsub.f32 %v2646_v7, %v755_v3  ;;  %v664_v56 = vsel %vm251_vm0, %v662_v59, 0.0 }
 0x1d8   : > { %v767_v0 = vand.u32 2147483647, %v765_v31  ;;  %v666_v57 = vadd.f32 %v665_v60, %v664_v56 }
 0x1d9   : > { %v766_v53 = vand.u32 2147483647, %v764_v61  ;;  %v2379_v6 = vpop.f32.mrb[6].mxu1 }
 0x1da   : > { %v861_v28 = vsub.f32 %v2663_v10, %v2379_v6  ;;  %v851_v29 = vpop.f32.mrb[7].mxu1  ;;  %667 = vadd.xlane.f32.xlu1 %v666_v57  ;;  %v769_v5 = vsel %vm251_vm0, %v767_v0, 0.0  ;;  %v337_v0 = vrot.slane %v336_v4, 1 }
 0x1db   : > { %v860_v42 = vsub.f32 %v2656_v9, %v851_v29  ;;  %v768_v8 = vsel %vm251_vm0, %v766_v53, 0.0 }
 0x1dc   : > { %v863_v30 = vand.u32 2147483647, %v861_v28  ;;  %v770_v32 = vadd.f32 %v769_v5, %v768_v8  ;;  %v338_v29 = vadd.f32 %v337_v0, %v336_v4 }
 0x1dd   : > { %v862_v7 = vand.u32 2147483647, %v860_v42  ;;  %v2402_v35 = vpop.f32.mrb[8].mxu1 }
 0x1de   : > { %v1154_v40 = vsub.f32 %v2673_v12, %v2402_v35  ;;  %v1144_v52 = vpop.f32.mrb[9].mxu1  ;;  %771 = vadd.xlane.f32.xlu0 %v770_v32  ;;  %v865_v10 = vsel %vm251_vm0, %v863_v30, 0.0 }
 0x1df   : > { %v1153_v41 = vsub.f32 %v2666_v11, %v1144_v52  ;;  %v864_v43 = vsel %vm251_vm0, %v862_v7, 0.0  ;;  %v271_v11 = vrot.slane %v270_v44, 2 }
 0x1e0   : > { %v1156_v9 = vand.u32 2147483647, %v1154_v40  ;;  %v866_v38 = vadd.f32 %v865_v10, %v864_v43 }
 0x1e1   : > { %v1155_v27 = vand.u32 2147483647, %v1153_v41  ;;  %v2409_v37 = vpop.f32.mrb[10].mxu1 }
 0x1e2   : > { %v1258_v49 = vsub.f32 %v2683_v14, %v2409_v37  ;;  %v1248_v46 = vpop.f32.mrb[11].mxu1  ;;  %867 = vadd.xlane.f32.xlu1 %v866_v38  ;;  %v1158_v12 = vsel %vm251_vm0, %v1156_v9, 0.0 }
 0x1e3   : > { %v1257_v1 = vsub.f32 %v2676_v13, %v1248_v46  ;;  %v1157_v50 = vsel %vm251_vm0, %v1155_v27, 0.0  ;;  %v272_v13 = vadd.f32 %v271_v11, %v270_v44 }
 0x1e4   : > { %v1260_v54 = vand.u32 2147483647, %v1258_v49  ;;  %v1159_v55 = vadd.f32 %v1158_v12, %v1157_v50 }
 0x1e5   : > { %v1259_v36 = vand.u32 2147483647, %v1257_v1  ;;  %v2416_v63 = vpop.f32.mrb[12].mxu1  ;;  %v273_v56 = vrot.slane %v272_v13, 1 }
 0x1e6   : > { %v1362_v45 = vsub.f32 %v2693_v16, %v2416_v63  ;;  %v1352_v58 = vpop.f32.mrb[13].mxu1  ;;  %1160 = vadd.xlane.f32.xlu1 %v1159_v55  ;;  %v1262_v14 = vsel %vm251_vm0, %v1260_v54, 0.0 }
 0x1e7   : > { %v1361_v2 = vsub.f32 %v2686_v15, %v1352_v58  ;;  %v1261_v59 = vsel %vm251_vm0, %v1259_v36, 0.0  ;;  %v274_v28 = vadd.f32 %v273_v56, %v272_v13 }
 0x1e8   : > { %v1364_v31 = vand.u32 2147483647, %v1362_v45  ;;  %v1263_v3 = vadd.f32 %v1262_v14, %v1261_v59 }
 0x1e9   : > { %v1363_v60 = vand.u32 2147483647, %v1361_v2  ;;  %v2423_v61 = vpop.f32.mrb[14].mxu1  ;;  %2530 = vpush %v274_v28  ;;  %v935_v2 = vpop.xlane.xlu0 %934 }
 0x1ea   : > { %v1458_v57 = vsub.f32 %v2703_v18, %v2423_v61  ;;  %v1448_v53 = vpop.f32.mrb[15].mxu1  ;;  %1264 = vadd.xlane.f32.xlu0 %v1263_v3  ;;  %v1366_v16 = vsel %vm251_vm0, %v1364_v31, 0.0  ;;  %2532 = vpush %v338_v29  ;;  %v936_v59 = vrot.slane %v935_v2, 4 }
 0x1eb   : > { %v1457_v6 = vsub.f32 %v2696_v17, %v1448_v53  ;;  %v1365_v15 = vsel %vm251_vm0, %v1363_v60, 0.0 }
 0x1ec   : > { %v1460_v5 = vand.u32 2147483647, %v1458_v57  ;;  %v1367_v42 = vadd.f32 %v1366_v16, %v1365_v15  ;;  %v937_v3 = vadd.f32 %v936_v59, %v935_v2 }
 0x1ed   : > { %v1459_v8 = vand.u32 2147483647, %v1457_v6  ;;  %v2446_v30 = vpop.f32.mrb[16].mxu1 }
 0x1ee   : > { %v1751_v32 = vsub.f32 %v2713_v20, %v2446_v30  ;;  %v1741_v34 = vpop.f32.mrb[17].mxu1  ;;  %1368 = vadd.xlane.f32.xlu1 %v1367_v42  ;;  %v1462_v18 = vsel %vm251_vm0, %v1460_v5, 0.0  ;;  %v938_v53 = vrot.slane %v937_v3, 2 }
 0x1ef   : > { %v1750_v7 = vsub.f32 %v2706_v19, %v1741_v34  ;;  %v1461_v17 = vsel %vm251_vm0, %v1459_v8, 0.0 }
 0x1f0   : > { %v1753_v35 = vand.u32 2147483647, %v1751_v32  ;;  %v1463_v39 = vadd.f32 %v1462_v18, %v1461_v17  ;;  %v939_v42 = vadd.f32 %v938_v53, %v937_v3 }
 0x1f1   : > { %v1752_v40 = vand.u32 2147483647, %v1750_v7  ;;  %v2453_v52 = vpop.f32.mrb[18].mxu1 }
 0x1f2   : > { %v1855_v10 = vsub.f32 %v2723_v22, %v2453_v52  ;;  %v1845_v41 = vpop.f32.mrb[19].mxu1  ;;  %1531 = vadd.xlane.f32.xlu1 %v2956_v48  ;;  %1464 = vadd.xlane.f32.xlu0 %v1463_v39  ;;  %v1755_v20 = vsel %vm251_vm0, %v1753_v35, 0.0  ;;  %v940_v35 = vrot.slane %v939_v42, 1 }
 0x1f3   : > { %v1854_v43 = vsub.f32 %v2716_v21, %v1845_v41  ;;  %v1754_v44 = vsel %vm251_vm0, %v1752_v40, 0.0 }
 0x1f4   : > { %v1857_v9 = vand.u32 2147483647, %v1855_v10  ;;  %v1756_v19 = vadd.f32 %v1755_v20, %v1754_v44  ;;  %v941_v44 = vadd.f32 %v940_v35, %v939_v42 }
 0x1f5   : > { %v1856_v38 = vand.u32 2147483647, %v1854_v43  ;;  %v2460_v47 = vpop.f32.mrb[20].mxu1 }
 0x1f6   : > { %v1959_v27 = vsub.f32 %v2733_v24, %v2460_v47  ;;  %v1949_v37 = vpop.f32.mrb[21].mxu1  ;;  %1757 = vadd.xlane.f32.xlu0 %v1756_v19  ;;  %v1859_v22 = vsel %vm251_vm0, %v1857_v9, 0.0 }
 0x1f7   : > { %v1958_v33 = vsub.f32 %v2726_v23, %v1949_v37  ;;  %v1858_v48 = vsel %vm251_vm0, %v1856_v38, 0.0 }
 0x1f8   : > { %v1961_v49 = vand.u32 2147483647, %v1959_v27  ;;  %v1860_v46 = vadd.f32 %v1859_v22, %v1858_v48 }
 0x1f9   : > { %v1960_v12 = vand.u32 2147483647, %v1958_v33  ;;  %v2467_v21 = vpop.f32.mrb[22].mxu1 }
 0x1fa   : > { %v2055_v1 = vsub.f32 %v2743_v26, %v2467_v21  ;;  %v2045_v50 = vpop.f32.mrb[23].mxu1  ;;  %1861 = vadd.xlane.f32.xlu1 %v1860_v46  ;;  %v1963_v11 = vsel %vm251_vm0, %v1961_v49, 0.0 }
 0x1fb   : > { %v2054_v24 = vsub.f32 %v2736_v25, %v2045_v50  ;;  %v1962_v62 = vsel %vm251_vm0, %v1960_v12, 0.0 }
 0x1fc   : > { %v2057_v54 = vand.u32 2147483647, %v2055_v1  ;;  %v1964_v55 = vadd.f32 %v1963_v11, %v1962_v62 }
 0x1fd   : > { %v2056_v36 = vand.u32 2147483647, %v2054_v24 }
 0x1fe   : > { %1965 = vadd.xlane.f32.xlu0 %v1964_v55  ;;  %v2059_v23 = vsel %vm251_vm0, %v2057_v54, 0.0 }
 0x1ff   : > { %v2058_v63 = vsel %vm251_vm0, %v2056_v36, 0.0 }
 0x200   : > { %v2060_v51 = vadd.f32 %v2059_v23, %v2058_v63 }
 0x202   : > { %2061 = vadd.xlane.f32.xlu1 %v2060_v51 }
 0x21a   : > { %s3007_s7 = spop %2530 }
 0x21b   : > { %s2533_s8 = spop %2532 }
 0x25f   : > { %v564_v45 = vpop.xlane.xlu1 %563 }
 0x260   : > { %v565_v26 = vrot.slane %v564_v45, 4 }
 0x262   : > { %v566_v58 = vadd.f32 %v565_v26, %v564_v45 }
 0x264   : > { %v567_v14 = vrot.slane %v566_v58, 2 }
 0x266   : > { %v568_v13 = vadd.f32 %v567_v14, %v566_v58 }
 0x267   : > { %v668_v25 = vpop.xlane.xlu1 %667 }
 0x268   : > { %v669_v4 = vrot.slane %v668_v25, 4  ;;  %v569_v31 = vrot.slane %v568_v13, 1 }
 0x26a   : > { %v670_v60 = vadd.f32 %v669_v4, %v668_v25  ;;  %v570_v61 = vadd.f32 %v569_v31, %v568_v13 }
 0x26b   : > { %v772_v56 = vpop.xlane.xlu0 %771 }
 0x26c   : > { %v671_v0 = vrot.slane %v670_v60, 2  ;;  %v773_v57 = vrot.slane %v772_v56, 4  ;;  %2534 = vpush %v570_v61 }
 0x26e   : > { %v774_v16 = vadd.f32 %v773_v57, %v772_v56  ;;  %v672_v6 = vadd.f32 %v671_v0, %v670_v60 }
 0x26f   : > { %v868_v15 = vpop.xlane.xlu1 %867 }
 0x270   : > { %v775_v28 = vrot.slane %v774_v16, 2  ;;  %v869_v29 = vrot.slane %v868_v15, 4  ;;  %v673_v5 = vrot.slane %v672_v6, 1 }
 0x272   : > { %v870_v8 = vadd.f32 %v869_v29, %v868_v15  ;;  %v674_v30 = vadd.f32 %v673_v5, %v672_v6  ;;  %v776_v32 = vadd.f32 %v775_v28, %v774_v16 }
 0x273   : > { %v1161_v34 = vpop.xlane.xlu1 %1160 }
 0x274   : > { %v871_v18 = vrot.slane %v870_v8, 2  ;;  %v1162_v7 = vrot.slane %v1161_v34, 4  ;;  %2536 = vpush %v674_v30  ;;  %v777_v17 = vrot.slane %v776_v32, 1 }
 0x276   : > { %v1163_v39 = vadd.f32 %v1162_v7, %v1161_v34  ;;  %v778_v40 = vadd.f32 %v777_v17, %v776_v32  ;;  %v872_v52 = vadd.f32 %v871_v18, %v870_v8 }
 0x277   : > { %v1265_v10 = vpop.xlane.xlu0 %1264 }
 0x278   : > { %v1164_v41 = vrot.slane %v1163_v39, 2  ;;  %v1266_v20 = vrot.slane %v1265_v10, 4  ;;  %2538 = vpush %v778_v40  ;;  %v873_v43 = vrot.slane %v872_v52, 1 }
 0x27a   : > { %v1267_v9 = vadd.f32 %v1266_v20, %v1265_v10  ;;  %v874_v19 = vadd.f32 %v873_v43, %v872_v52  ;;  %v1165_v38 = vadd.f32 %v1164_v41, %v1163_v39  ;;  %v2071_v52 = vlaneseq }
 0x27b   : > { %v1369_v47 = vpop.xlane.xlu1 %1368  ;;  %v2074_v41 = vstv %s2533_s8 }
 0x27c   : > { %v1268_v27 = vrot.slane %v1267_v9, 2  ;;  %v1370_v37 = vrot.slane %v1369_v47, 4  ;;  %2540 = vpush %v874_v19  ;;  %v1166_v22 = vrot.slane %v1165_v38, 1  ;;  %v2072_v10 = vand.u32 127, %v2071_v52 }
 0x27d   : > { %2542 = vpush %v941_v44 }
 0x27e   : > { %v1371_v33 = vadd.f32 %v1370_v37, %v1369_v47  ;;  %v1167_v48 = vadd.f32 %v1166_v22, %v1165_v38  ;;  %v1269_v49 = vadd.f32 %v1268_v27, %v1267_v9  ;;  %vm2073_vm9 = vcmp.eq.s32.totalorder %v2072_v10, 0 }
 0x27f   : > { %v1532_v46 = vpop.xlane.xlu1 %1531  ;;  %v1465_v12 = vpop.xlane.xlu0 %1464  ;;  %vm2077_vm10 = vcmp.eq.s32.totalorder %v2072_v10, 1  ;;  %vm2081_vm11 = vcmp.eq.s32.totalorder %v2072_v10, 2  ;;  %v2075_v44 = vsel %vm2073_vm9, %v2074_v41, 0.0  ;;  %vm2085_vm12 = vcmp.eq.s32.totalorder %v2072_v10, 3 }
 0x280   : > { %v1372_v21 = vrot.slane %v1371_v33, 2  ;;  %v1533_v1 = vrot.slane %v1532_v46, 4  ;;  %v1466_v50 = vrot.slane %v1465_v12, 4  ;;  %2544 = vpush %v1167_v48  ;;  %v1270_v11 = vrot.slane %v1269_v49, 1 }
 0x281   : > { %v2086_v47 = vstv %s3007_s7  ;;  %vm2089_vm13 = vcmp.eq.s32.totalorder %v2072_v10, 4 }
 0x282   : > { %v1534_v24 = vadd.f32 %v1533_v1, %v1532_v46  ;;  %v1467_v62 = vadd.f32 %v1466_v50, %v1465_v12  ;;  %v1271_v54 = vadd.f32 %v1270_v11, %v1269_v49  ;;  %v1373_v55 = vadd.f32 %v1372_v21, %v1371_v33 }
 0x283   : > { %v1758_v36 = vpop.xlane.xlu0 %1757  ;;  %v2087_v37 = vsel %vm2085_vm12, %v2086_v47, 0.0 }
 0x284   : > { %v1535_v23 = vrot.slane %v1534_v24, 2  ;;  %v1468_v63 = vrot.slane %v1467_v62, 2  ;;  %v1759_v51 = vrot.slane %v1758_v36, 4  ;;  %2546 = vpush %v1271_v54  ;;  %v1374_v45 = vrot.slane %v1373_v55, 1 }
 0x286   : > { %v1760_v26 = vadd.f32 %v1759_v51, %v1758_v36  ;;  %v1375_v58 = vadd.f32 %v1374_v45, %v1373_v55  ;;  %v1469_v14 = vadd.f32 %v1468_v63, %v1467_v62  ;;  %v1536_v2 = vadd.f32 %v1535_v23, %v1534_v24 }
 0x287   : > { %v1862_v59 = vpop.xlane.xlu1 %1861 }
 0x288   : > { %v1761_v13 = vrot.slane %v1760_v26, 2  ;;  %v1863_v25 = vrot.slane %v1862_v59, 4  ;;  %2548 = vpush %v1375_v58  ;;  %v1470_v4 = vrot.slane %v1469_v14, 1  ;;  %v1537_v31 = vrot.slane %v1536_v2, 1 }
 0x28a   : > { %v1864_v3 = vadd.f32 %v1863_v25, %v1862_v59  ;;  %v1471_v60 = vadd.f32 %v1470_v4, %v1469_v14  ;;  %v1538_v61 = vadd.f32 %v1537_v31, %v1536_v2  ;;  %v1762_v56 = vadd.f32 %v1761_v13, %v1760_v26 }
 0x28b   : > { %v1966_v0 = vpop.xlane.xlu0 %1965 }
 0x28c   : > { %v1865_v57 = vrot.slane %v1864_v3, 2  ;;  %v1967_v53 = vrot.slane %v1966_v0, 4  ;;  %2550 = vpush %v1471_v60  ;;  %v1763_v16 = vrot.slane %v1762_v56, 1 }
 0x28d   : > { %2552 = vpush %v1538_v61 }
 0x28e   : > { %v1968_v6 = vadd.f32 %v1967_v53, %v1966_v0  ;;  %v1764_v15 = vadd.f32 %v1763_v16, %v1762_v56  ;;  %v1866_v28 = vadd.f32 %v1865_v57, %v1864_v3 }
 0x28f   : > { %v2062_v29 = vpop.xlane.xlu1 %2061 }
 0x290   : > { %v1969_v5 = vrot.slane %v1968_v6, 2  ;;  %v2063_v42 = vrot.slane %v2062_v29, 4  ;;  %2554 = vpush %v1764_v15  ;;  %v1867_v8 = vrot.slane %v1866_v28, 1 }
 0x292   : > { %v1970_v30 = vadd.f32 %v1969_v5, %v1968_v6  ;;  %v2064_v32 = vadd.f32 %v2063_v42, %v2062_v29  ;;  %v1868_v34 = vadd.f32 %v1867_v8, %v1866_v28 }
 0x294   : > { %v2065_v18 = vrot.slane %v2064_v32, 2  ;;  %2556 = vpush %v1868_v34  ;;  %v1971_v7 = vrot.slane %v1970_v30, 1 }
 0x296   : > { %v2066_v17 = vadd.f32 %v2065_v18, %v2064_v32  ;;  %v1972_v35 = vadd.f32 %v1971_v7, %v1970_v30 }
 0x298   : > { %2558 = vpush %v1972_v35  ;;  %v2067_v39 = vrot.slane %v2066_v17, 1 }
 0x29a   : > { %v2068_v40 = vadd.f32 %v2067_v39, %v2066_v17 }
 0x29c   : > { %2560 = vpush %v2068_v40 }
 0x29d   : > { %s2535_s9 = spop %2534 }
 0x2a5   : > { %s2537_s10 = spop %2536 }
 0x2a6   : > { %s676_s12 = sadd.f32 %s2537_s10, %s2535_s9 }
 0x2a9   : > { %s2539_s11 = spop %2538 }
 0x2aa   : > { %s780_s14 = sadd.f32 %s2539_s11, %s676_s12 }
 0x2ad   : > { %s2541_s13 = spop %2540 }
 0x2ae   : > { %s2543_s17 = spop %2542  ;;  %s876_s19 = sadd.f32 %s2541_s13, %s780_s14 }
 0x2af   : > { %v2078_v20 = vstv %s2543_s17  ;;  %s213_s13 = scalar_lea.vmem %s3021_s4, %s3023_s16 }
 0x2b0   : > { %v2079_v9 = vsel %vm2077_vm10, %v2078_v20, 0.0 }
 0x2b1   : > { %s2545_s18 = spop %2544  ;;  %v2080_v38 = vadd.f32 %v2079_v9, %v2075_v44 }
 0x2b2   : > { %s1169_s21 = sadd.f32 %s2545_s18, %s876_s19 }
 0x2b5   : > { %s2547_s20 = spop %2546 }
 0x2b6   : > { %s1273_s24 = sadd.f32 %s2547_s20, %s1169_s21 }
 0x2b9   : > { %s2549_s22 = spop %2548 }
 0x2ba   : > { %s1377_s26 = sadd.f32 %s2549_s22, %s1273_s24 }
 0x2bd   : > { %s2551_s23 = spop %2550 }
 0x2be   : > { %s2553_s25 = spop %2552  ;;  %s1473_s28 = sadd.f32 %s2551_s23, %s1377_s26 }
 0x2bf   : > { %v2082_v43 = vstv %s2553_s25 }
 0x2c0   : > { %v2083_v19 = vsel %vm2081_vm11, %v2082_v43, 0.0 }
 0x2c1   : > { %s2555_s27 = spop %2554  ;;  %v2084_v27 = vadd.f32 %v2083_v19, %v2080_v38 }
 0x2c2   : > { %s1766_s30 = sadd.f32 %s2555_s27, %s1473_s28 }
 0x2c3   : > { %v2088_v22 = vadd.f32 %v2087_v37, %v2084_v27 }
 0x2c5   : > { %s2557_s29 = spop %2556 }
 0x2c6   : > { %s1870_s6 = sadd.f32 %s2557_s29, %s1766_s30 }
 0x2c9   : > { %s2559_s5 = spop %2558 }
 0x2ca   : > { %s1974_s8 = sadd.f32 %s2559_s5, %s1870_s6 }
 0x2cd   : > { %s2561_s9 = spop %2560 }
 0x2ce   : > { %s2070_s10 = sadd.f32 %s2561_s9, %s1974_s8 }
 0x2d0   : > { %v2090_v33 = vstv %s2070_s10 }
 0x2d1   : > { %v2091_v48 = vsel %vm2089_vm13, %v2090_v33, 0.0 }
 0x2d2   : > { %v2092_v49 = vadd.f32 %v2091_v48, %v2088_v22 }
 0x2d4   : > { %2093 = vst [vmem:[%s213_s13] sm:$0x1] %v2092_v49 }
 0x2d5 PF: > { %s14_s15 = sadd.s32 1, %s2577_s15  }
 0x2d6   : > { %p11_p4 = scmp.ge.s32.totalorder %s14_s15, 4  }
 0x2d8   :  { %13 = sbr.rel (!%p11_p4) target bundleno = 1 (0x1), region = 74 }

// kernel: flow_loss_forward.3
= control target key start
LH: loop header
LB: loop body
LE: loop exit
PB: predicated region body
PF: predicated region fallthrough
CT: control target
= control target key end

     0   :  { %s3431_s15 = smov 0   ;;  %s3708_s0 = inlined_call_operand.vmem [shape: f32[2,6,4,16,16], index: 0, kind: input, shape index: {}]   ;;  %s3709_s1 = inlined_call_operand.vmem [shape: f32[2,1,4,16,16], index: 1, kind: input, shape index: {}]   ;;  %s3710_s2 = inlined_call_operand.vmem [shape: f32[16,16], index: 2, kind: input, shape index: {}, may-alias: {2,3}]   ;;  %s3711_s3 = inlined_call_operand.vmem [shape: f32[16,16], index: 3, kind: input, shape index: {}, may-alias: {2,3}]   ;;  %s3712_s4 = inlined_call_operand.vmem [shape: f32[2,1,128], index: 4, kind: output, shape index: {}]  }
   0x1 LB: > { %s2817_s16 = sadd.s32 4294967295, %s3404_s15   ;;  %p2821_p0 = scmp.ge.s32.totalorder %s3404_s15, 1  ;;  %s3404_s15 = sphi %s3431_s15, %s14_s15  }
   0x2   : > { %p173_p1 = scmp.lt.s32.totalorder %s3404_s15, 3 }
   0x4   : > { %p174_p2 = pnand %p2821_p0, %p173_p1 }
   0x5   : > { %v235_v0 = vld [vmem:[%s3711_s3] sm:$0xff] (!%p174_p2)  ;;  %v236_v1 = vld [vmem:[%s3711_s3 + $0x8] sm:$0xff] (!%p174_p2)  ;;  %p203_p3 = scmp.lt.s32.totalorder (!%p174_p2), %s2817_s16, 1  ;;  %vm261_vm0 = vcmask (!%p174_p2), 130048  }
   0x6   : > { %177 = sbr.rel (%p174_p2) target bundleno = 751 (0x2ef), region = 36  ;;  %v3445_v2 = vpack.c.bf16 (!%p174_p2), %v236_v1, %v235_v0  ;;  %v3560_v43 = vld [vmem:[%s3710_s2] sm:$0xff] (!%p174_p2) }
   0x8   : > { %3267 = vmatprep.subr.bf16.mxu0 (!%p174_p2), %v3445_v2  ;;  %3271 = vmatprep.subr.bf16.mxu1 (!%p174_p2), %v3445_v2 }
   0x9   : > { %3269 = vmatpush3.bf16.msra.mxu0 (!%p174_p2), %v3445_v2  ;;  %3273 = vmatpush3.bf16.msra.mxu1 (!%p174_p2), %v3445_v2 }
   0xa   : > { %3275 = vmatprep.subr.bf16.mxu0 (!%p174_p2), %v3445_v2  ;;  %3279 = vmatprep.subr.bf16.mxu1 (!%p174_p2), %v3445_v2 }
   0xd   : > { %s3714_s16 = smov (!%p203_p3, %s2817_s16), 1 }
   0xe   : > { %s2822_s21 = smul.u32 384, %s3714_s16  ;;  %s2915_s22 = sshll.u32 %s3714_s16, 6 }
   0xf   : > { %s3458_s25 = scalar_lea.vmem %s3709_s1, %s2915_s22  ;;  %s216_s17 = scalar_lea.vmem %s3712_s4, %s3714_s16 }
  0x10   : > { %s3465_s28 = scalar_lea.vmem %s3708_s0, %s2822_s21  ;;  %v3468_v3 = vld [vmem:[%s3458_s25] sm:$0xff]  ;;  %v3471_v4 = vld [vmem:[%s3458_s25 + $0x8] sm:$0xff]  ;;  %v3474_v5 = vld [vmem:[%s3458_s25 + $0x10] sm:$0xff] }
  0x11   : > { %v2825_v6 = vld [vmem:[%s3465_s28 + $0x100] sm:$0xff]  ;;  %v3478_v7 = vld [vmem:[%s3465_s28 + $0x108] sm:$0xff]  ;;  %v3481_v8 = vld [vmem:[%s3465_s28 + $0x110] sm:$0xff]  ;;  %3066 = vmatprep.mubr.msk.f32.mxu1 %vm261_vm0, %v3468_v3  ;;  %v245_v18 = vmul.f32 %v3468_v3, %v3468_v3  ;;  %v246_v22 = vmul.f32 %v3471_v4, %v3471_v4  ;;  %v247_v24 = vmul.f32 %v3474_v5, %v3474_v5 }
  0x12   : > { %3050 = vmatprep.mubr.msk.f32.mxu0 %vm261_vm0, %v2825_v6  ;;  %3067 = vmatmul.mubr.msk.f32.vlgmr.msra.gmra.mrb[0].mxu1 %vm261_vm0, %v3471_v4  ;;  %v2828_v9 = vld [vmem:[%s3465_s28 + $0x118] sm:$0xff]  ;;  %v2829_v11 = vld [vmem:[%s3465_s28 + $0x120] sm:$0xff]  ;;  %v2830_v13 = vld [vmem:[%s3465_s28 + $0x128] sm:$0xff]  ;;  %v237_v17 = vmul.f32 %v2825_v6, %v2825_v6  ;;  %v238_v21 = vmul.f32 %v3478_v7, %v3478_v7  ;;  %v239_v23 = vmul.f32 %v3481_v8, %v3481_v8 }
  0x13   : > { %3051 = vmatmul.mubr.msk.f32.vlgmr.msra.gmra.mrb[0].mxu0 %vm261_vm0, %v3478_v7  ;;  %3069 = vmatprep.mubr.msk.f32.mxu1 %vm261_vm0, %v3474_v5  ;;  %v228_v10 = vld [vmem:[%s3458_s25 + $0x18] sm:$0xff]  ;;  %v229_v12 = vld [vmem:[%s3458_s25 + $0x20] sm:$0xff]  ;;  %v230_v14 = vld [vmem:[%s3458_s25 + $0x28] sm:$0xff]  ;;  %v240_v25 = vmul.f32 %v2828_v9, %v2828_v9  ;;  %v241_v27 = vmul.f32 %v2829_v11, %v2829_v11  ;;  %v242_v29 = vmul.f32 %v2830_v13, %v2830_v13 }
  0x14   : > { %3053 = vmatprep.mubr.msk.f32.mxu0 %vm261_vm0, %v3481_v8  ;;  %3277 = vmatpush3.bf16.msra.mxu0 %v3445_v2  ;;  %v2831_v15 = vld [vmem:[%s3465_s28 + $0x130] sm:$0xff]  ;;  %v2832_v19 = vld [vmem:[%s3465_s28 + $0x138] sm:$0xff]  ;;  %v248_v26 = vmul.f32 %v228_v10, %v228_v10  ;;  %v249_v28 = vmul.f32 %v229_v12, %v229_v12  ;;  %v250_v30 = vmul.f32 %v230_v14, %v230_v14 }
  0x15   : > { %3281 = vmatpush3.bf16.msra.mxu1 %v3445_v2  ;;  %v231_v16 = vld [vmem:[%s3458_s25 + $0x30] sm:$0xff]  ;;  %3283 = vmatprep.subr.bf16.mxu0 %v3445_v2  ;;  %v232_v20 = vld [vmem:[%s3458_s25 + $0x38] sm:$0xff]  ;;  %v243_v31 = vmul.f32 %v2831_v15, %v2831_v15  ;;  %v244_v33 = vmul.f32 %v2832_v19, %v2832_v19  ;;  %v253_v35 = vmul.f32 %v2825_v6, %v3468_v3 }
  0x16   : > { %3070 = vmatmul.mubr.msk.f32.gmra.mrb[2].mxu1 %vm261_vm0, %v228_v10  ;;  %v251_v32 = vmul.f32 %v231_v16, %v231_v16  ;;  %v252_v34 = vmul.f32 %v232_v20, %v232_v20  ;;  %v254_v36 = vmul.f32 %v3478_v7, %v3471_v4  ;;  %v255_v37 = vmul.f32 %v3481_v8, %v3474_v5 }
  0x17   : > { %3054 = vmatmul.mubr.msk.f32.gmra.mrb[2].mxu0 %vm261_vm0, %v2828_v9  ;;  %3072 = vmatprep.mubr.msk.f32.mxu1 %vm261_vm0, %v229_v12  ;;  %v256_v38 = vmul.f32 %v2828_v9, %v228_v10  ;;  %v257_v39 = vmul.f32 %v2829_v11, %v229_v12  ;;  %v258_v40 = vmul.f32 %v2830_v13, %v230_v14 }
  0x18   : > { %3056 = vmatprep.mubr.msk.f32.mxu0 %vm261_vm0, %v2829_v11  ;;  %v259_v41 = vmul.f32 %v2831_v15, %v231_v16  ;;  %v260_v42 = vmul.f32 %v2832_v19, %v232_v20 }
  0x1a   : > { %3073 = vmatmul.mubr.msk.f32.gmra.mrb[4].mxu1 %vm261_vm0, %v230_v14 }
  0x1b   : > { %3057 = vmatmul.mubr.msk.f32.gmra.mrb[4].mxu0 %vm261_vm0, %v2830_v13  ;;  %3075 = vmatprep.mubr.msk.f32.mxu1 %vm261_vm0, %v231_v16 }
  0x1c   : > { %3059 = vmatprep.mubr.msk.f32.mxu0 %vm261_vm0, %v2831_v15 }
  0x1e   : > { %3076 = vmatmul.mubr.msk.f32.gmra.mrb[6].mxu1 %vm261_vm0, %v232_v20 }
  0x1f   : > { %3060 = vmatmul.mubr.msk.f32.gmra.mrb[6].mxu0 %vm261_vm0, %v2832_v19  ;;  %3098 = vmatprep.mubr.msk.f32.mxu1 %vm261_vm0, %v245_v18 }
  0x20   : > { %3082 = vmatprep.mubr.msk.f32.mxu0 %vm261_vm0, %v237_v17 }
  0x22   : > { %3099 = vmatmul.mubr.msk.f32.vlgmr.msra.gmra.mrb[8].mxu1 %vm261_vm0, %v246_v22 }
  0x23   : > { %3083 = vmatmul.mubr.msk.f32.vlgmr.msra.gmra.mrb[8].mxu0 %vm261_vm0, %v238_v21  ;;  %3101 = vmatprep.mubr.msk.f32.mxu1 %vm261_vm0, %v247_v24 }
  0x24   : > { %3085 = vmatprep.mubr.msk.f32.mxu0 %vm261_vm0, %v239_v23  ;;  %3285 = vmatpush3.bf16.msra.mxu0 %v3445_v2 }
  0x26   : > { %3102 = vmatmul.mubr.msk.f32.gmra.mrb[10].mxu1 %vm261_vm0, %v248_v26 }
  0x27   : > { %3086 = vmatmul.mubr.msk.f32.gmra.mrb[10].mxu0 %vm261_vm0, %v240_v25  ;;  %3104 = vmatprep.mubr.msk.f32.mxu1 %vm261_vm0, %v249_v28  ;;  %v3569_v25 = vld [vmem:[%s3710_s2 + $0x8] sm:$0xff] }
  0x28   : > { %3088 = vmatprep.mubr.msk.f32.mxu0 %vm261_vm0, %v241_v27 }
  0x2a   : > { %3105 = vmatmul.mubr.msk.f32.gmra.mrb[12].mxu1 %vm261_vm0, %v250_v30 }
  0x2b   : > { %3089 = vmatmul.mubr.msk.f32.gmra.mrb[12].mxu0 %vm261_vm0, %v242_v29  ;;  %3107 = vmatprep.mubr.msk.f32.mxu1 %vm261_vm0, %v251_v32 }
  0x2c   : > { %3091 = vmatprep.mubr.msk.f32.mxu0 %vm261_vm0, %v243_v31 }
  0x2e   : > { %3108 = vmatmul.mubr.msk.f32.gmra.mrb[14].mxu1 %vm261_vm0, %v252_v34 }
  0x2f   : > { %3092 = vmatmul.mubr.msk.f32.gmra.mrb[14].mxu0 %vm261_vm0, %v244_v33  ;;  %3130 = vmatprep.mubr.msk.f32.mxu1 %vm261_vm0, %v3560_v43 }
  0x30   : > { %3114 = vmatprep.mubr.msk.f32.mxu0 %vm261_vm0, %v253_v35 }
  0x33   : > { %3115 = vmatmul.mubr.msk.f32.vlgmr.msra.gmra.mrb[16].mxu0 %vm261_vm0, %v254_v36 }
  0x34   : > { %3117 = vmatprep.mubr.msk.f32.mxu0 %vm261_vm0, %v255_v37 }
  0x37   : > { %3118 = vmatmul.mubr.msk.f32.gmra.mrb[18].mxu0 %vm261_vm0, %v256_v38 }
  0x38   : > { %3120 = vmatprep.mubr.msk.f32.mxu0 %vm261_vm0, %v257_v39 }
  0x3b   : > { %3121 = vmatmul.mubr.msk.f32.gmra.mrb[20].mxu0 %vm261_vm0, %v258_v40 }
  0x3c   : > { %3123 = vmatprep.mubr.msk.f32.mxu0 %vm261_vm0, %v259_v41 }
  0x3f   : > { %3124 = vmatmul.mubr.msk.f32.gmra.mrb[22].mxu0 %vm261_vm0, %v260_v42 }
  0x40   : > { %3158 = vmatprep.mubr.msk.f32.mxu0 %vm261_vm0, %v3560_v43 }
  0xe5   : > { %v3068_v45 = vpop.f32.mrb[0].mxu1 }
  0xe6   : > { %v3052_v44 = vpop.f32.mrb[0].mxu0  ;;  %v481_v47 = vpop.f32.mrb[1].mxu1  ;;  %v995_v52 = vmul.f32 0.38439733, %v3068_v45  ;;  %v1453_v53 = vmul.f32 0.30780134, %v3068_v45 }
  0xe7   : > { %v352_v46 = vpop.f32.mrb[1].mxu0  ;;  %v908_v48 = vmul.f32 0.38439733, %v3052_v44  ;;  %v1368_v49 = vmul.f32 0.30780134, %v3052_v44 }
  0xe8   : > { %v907_v50 = vmul.f32 0.38439733, %v352_v46  ;;  %v1367_v51 = vmul.f32 0.30780134, %v352_v46  ;;  %v994_v55 = vmul.f32 0.38439733, %v481_v47 }
  0xe9   : > { %v1452_v56 = vmul.f32 0.30780134, %v481_v47  ;;  %v3071_v57 = vpop.f32.mrb[2].mxu1 }
  0xea   : > { %v3055_v54 = vpop.f32.mrb[2].mxu0  ;;  %v491_v61 = vpop.f32.mrb[3].mxu1  ;;  %v997_v0 = vmul.f32 0.30780134, %v3071_v57  ;;  %v1455_v3 = vmul.f32 0.38439733, %v3071_v57 }
  0xeb   : > { %v910_v58 = vmul.f32 0.30780134, %v3055_v54  ;;  %v1370_v59 = vmul.f32 0.38439733, %v3055_v54  ;;  %v362_v60 = vpop.f32.mrb[3].mxu0 }
  0xec   : > { %v909_v62 = vmul.f32 0.30780134, %v362_v60  ;;  %v1369_v63 = vmul.f32 0.38439733, %v362_v60  ;;  %v996_v4 = vmul.f32 0.30780134, %v491_v61  ;;  %v999_v8 = vadd.f32 %v997_v0, %v995_v52 }
  0xed   : > { %v912_v1 = vadd.f32 %v910_v58, %v908_v48  ;;  %v1372_v2 = vadd.f32 %v1370_v59, %v1368_v49  ;;  %v1454_v9 = vmul.f32 0.38439733, %v491_v61  ;;  %v3074_v10 = vpop.f32.mrb[4].mxu1  ;;  %v1457_v14 = vadd.f32 %v1455_v3, %v1453_v53 }
  0xee   : > { %v911_v5 = vadd.f32 %v909_v62, %v907_v50  ;;  %v1371_v6 = vadd.f32 %v1369_v63, %v1367_v51  ;;  %v3058_v7 = vpop.f32.mrb[4].mxu0  ;;  %v998_v15 = vadd.f32 %v996_v4, %v994_v55  ;;  %v501_v16 = vpop.f32.mrb[5].mxu1  ;;  %v1459_v23 = vmul.f32 0.30780134, %v3074_v10 }
  0xef   : > { %v1374_v11 = vmul.f32 0.30780134, %v3058_v7  ;;  %v1842_v12 = vmul.f32 0.38439733, %v3058_v7  ;;  %v372_v13 = vpop.f32.mrb[5].mxu0  ;;  %v1456_v20 = vadd.f32 %v1454_v9, %v1452_v56 }
  0xf0   : > { %v1373_v17 = vmul.f32 0.30780134, %v372_v13  ;;  %v1841_v18 = vmul.f32 0.38439733, %v372_v13  ;;  %v3286_v19 = vpack.c.bf16 %v912_v1, %v911_v5  ;;  %v1925_v24 = vmul.f32 0.38439733, %v3074_v10 }
  0xf1   : > { %v1376_v21 = vadd.f32 %v1374_v11, %v1372_v2  ;;  %v1844_v22 = vadd.f32 %v1842_v12, %v910_v58  ;;  %v1458_v29 = vmul.f32 0.30780134, %v501_v16  ;;  %v1924_v30 = vmul.f32 0.38439733, %v501_v16  ;;  %v3077_v31 = vpop.f32.mrb[6].mxu1 }
  0xf2   : > { %v1375_v26 = vadd.f32 %v1373_v17, %v1371_v6  ;;  %v1843_v27 = vadd.f32 %v1841_v18, %v909_v62  ;;  %v3061_v28 = vpop.f32.mrb[6].mxu0  ;;  %3287 = vmatprep.subr.bf16.mxu1 %v3286_v19  ;;  %v1461_v35 = vadd.f32 %v1459_v23, %v1457_v14  ;;  %v1927_v36 = vadd.f32 %v1925_v24, %v997_v0  ;;  %v511_v37 = vpop.f32.mrb[7].mxu1 }
  0xf3   : > { %v1846_v32 = vmul.f32 0.30780134, %v3061_v28  ;;  %v2306_v33 = vmul.f32 0.38439733, %v3061_v28  ;;  %v382_v34 = vpop.f32.mrb[7].mxu0  ;;  %3289 = vmatpush3.bf16.msra.mxu1 %v3286_v19  ;;  %v1460_v40 = vadd.f32 %v1458_v29, %v1456_v20  ;;  %v1926_v41 = vadd.f32 %v1924_v30, %v996_v4 }
  0xf4   : > { %v1845_v38 = vmul.f32 0.30780134, %v382_v34  ;;  %v2305_v39 = vmul.f32 0.38439733, %v382_v34  ;;  %v1929_v45 = vmul.f32 0.30780134, %v3077_v31  ;;  %v3290_v2 = vpack.c.bf16 %v999_v8, %v998_v15 }
  0xf5   : > { %v1848_v42 = vadd.f32 %v1846_v32, %v1844_v22  ;;  %v2308_v44 = vadd.f32 %v2306_v33, %v1374_v11  ;;  %v2385_v46 = vmul.f32 0.38439733, %v3077_v31  ;;  %v1928_v50 = vmul.f32 0.30780134, %v511_v37  ;;  %v3100_v52 = vpop.f32.mrb[8].mxu1 }
  0xf6   : > { %v1847_v47 = vadd.f32 %v1845_v38, %v1843_v27  ;;  %v2307_v48 = vadd.f32 %v2305_v39, %v1373_v17  ;;  %v3084_v49 = vpop.f32.mrb[8].mxu0  ;;  %v2384_v51 = vmul.f32 0.38439733, %v511_v37  ;;  %3131 = vmatmul.mubr.msk.f32.vlgmr.msra.gmra.mrb[16].mxu1 %vm261_vm0, %v3569_v25  ;;  %v1931_v56 = vadd.f32 %v1929_v45, %v1927_v36  ;;  %v739_v58 = vpop.f32.mrb[9].mxu1  ;;  %3291 = vmatprep.subr.bf16.mxu1 %v3290_v2 }
  0xf7   : > { %v1076_v53 = vmul.f32 0.38439733, %v3084_v49  ;;  %v1538_v54 = vmul.f32 0.30780134, %v3084_v49  ;;  %v610_v55 = vpop.f32.mrb[9].mxu0  ;;  %v2387_v57 = vadd.f32 %v2385_v46, %v1459_v23  ;;  %3137 = vmatprep.mubr.msk.f32.mxu1 %vm261_vm0, %v3560_v43  ;;  %v1930_v61 = vadd.f32 %v1928_v50, %v1926_v41  ;;  %3293 = vmatpush3.bf16.msra.mxu1 %v3290_v2 }
  0xf8   : > { %v1075_v59 = vmul.f32 0.38439733, %v610_v55  ;;  %v1537_v60 = vmul.f32 0.30780134, %v610_v55  ;;  %v2386_v62 = vadd.f32 %v2384_v51, %v1458_v29  ;;  %v1157_v63 = vmul.f32 0.38439733, %v3100_v52 }
  0xf9   : > { %v1623_v0 = vmul.f32 0.30780134, %v3100_v52  ;;  %v1156_v1 = vmul.f32 0.38439733, %v739_v58  ;;  %v1622_v4 = vmul.f32 0.30780134, %v739_v58  ;;  %v3575_v6 = vpack.c.bf16 %v1376_v21, %v1375_v26 }
  0xfa   : > { %v3087_v3 = vpop.f32.mrb[10].mxu0  ;;  %v3103_v5 = vpop.f32.mrb[10].mxu1  ;;  %v3577_v7 = vpack.c.bf16 %v1461_v35, %v1460_v40  ;;  %v3579_v9 = vpack.c.bf16 %v1931_v56, %v1930_v61  ;;  %v3581_v14 = vpack.c.bf16 %v1848_v42, %v1847_v47  ;;  %v3583_v16 = vpack.c.bf16 %v2308_v44, %v2307_v48  ;;  %3138 = vmatmul.mubr.msk.f32.vlgmr.msra.gmra.mrb[18].mxu1 %vm261_vm0, %v3569_v25 }
  0xfb   : > { %v1078_v10 = vmul.f32 0.30780134, %v3087_v3  ;;  %v1540_v11 = vmul.f32 0.38439733, %v3087_v3  ;;  %v620_v12 = vpop.f32.mrb[11].mxu0  ;;  %v749_v13 = vpop.f32.mrb[11].mxu1  ;;  %v3585_v18 = vpack.c.bf16 %v2387_v57, %v2386_v62  ;;  %3144 = vmatprep.mubr.msk.f32.mxu1 %vm261_vm0, %v3560_v43 }
  0xfc   : > { %v1077_v17 = vmul.f32 0.30780134, %v620_v12  ;;  %v1539_v8 = vmul.f32 0.38439733, %v620_v12  ;;  %v1159_v15 = vmul.f32 0.30780134, %v3103_v5 }
  0xfd   : > { %v1080_v19 = vadd.f32 %v1078_v10, %v1076_v53  ;;  %v1542_v20 = vadd.f32 %v1540_v11, %v1538_v54  ;;  %v1625_v21 = vmul.f32 0.38439733, %v3103_v5  ;;  %v1158_v22 = vmul.f32 0.30780134, %v749_v13  ;;  %v3106_v29 = vpop.f32.mrb[12].mxu1 }
  0xfe   : > { %v1079_v23 = vadd.f32 %v1077_v17, %v1075_v59  ;;  %v1541_v24 = vadd.f32 %v1539_v8, %v1537_v60  ;;  %v3090_v26 = vpop.f32.mrb[12].mxu0  ;;  %v1161_v27 = vadd.f32 %v1159_v15, %v1157_v63  ;;  %v1624_v28 = vmul.f32 0.38439733, %v749_v13  ;;  %v759_v35 = vpop.f32.mrb[13].mxu1 }
  0xff   : > { %v1544_v30 = vmul.f32 0.30780134, %v3090_v26  ;;  %v2008_v31 = vmul.f32 0.38439733, %v3090_v26  ;;  %v1627_v32 = vadd.f32 %v1625_v21, %v1623_v0  ;;  %v630_v33 = vpop.f32.mrb[13].mxu0  ;;  %v1160_v34 = vadd.f32 %v1158_v22, %v1156_v1 }
 0x100   : > { %v1543_v36 = vmul.f32 0.30780134, %v630_v33  ;;  %v2007_v37 = vmul.f32 0.38439733, %v630_v33  ;;  %v1626_v38 = vadd.f32 %v1624_v28, %v1622_v4  ;;  %v3294_v39 = vpack.c.bf16 %v1080_v19, %v1079_v23 }
 0x101   : > { %v1546_v40 = vadd.f32 %v1544_v30, %v1542_v20  ;;  %v2010_v41 = vadd.f32 %v2008_v31, %v1078_v10  ;;  %v3298_v42 = vpack.c.bf16 %v1161_v27, %v1160_v34  ;;  %v1629_v44 = vmul.f32 0.30780134, %v3106_v29  ;;  %v3109_v50 = vpop.f32.mrb[14].mxu1 }
 0x102   : > { %v1545_v45 = vadd.f32 %v1543_v36, %v1541_v24  ;;  %v2009_v46 = vadd.f32 %v2007_v37, %v1077_v17  ;;  %v3093_v47 = vpop.f32.mrb[14].mxu0  ;;  %3295 = vmatprep.subr.bf16.mxu1 %v3294_v39  ;;  %v2091_v48 = vmul.f32 0.38439733, %v3106_v29  ;;  %v1628_v49 = vmul.f32 0.30780134, %v759_v35  ;;  %v769_v55 = vpop.f32.mrb[15].mxu1 }
 0x103   : > { %v2012_v51 = vmul.f32 0.30780134, %v3093_v47  ;;  %v2464_v52 = vmul.f32 0.38439733, %v3093_v47  ;;  %v640_v53 = vpop.f32.mrb[15].mxu0  ;;  %3297 = vmatpush3.bf16.msra.mxu1 %v3294_v39  ;;  %v1631_v54 = vadd.f32 %v1629_v44, %v1627_v32 }
 0x104   : > { %v2011_v56 = vmul.f32 0.30780134, %v640_v53  ;;  %v2463_v57 = vmul.f32 0.38439733, %v640_v53  ;;  %3299 = vmatprep.subr.bf16.mxu1 %v3298_v42  ;;  %v3314_v58 = vpack.c.bf16 %v1546_v40, %v1545_v45  ;;  %v2093_v59 = vadd.f32 %v2091_v48, %v1159_v15 }
 0x105   : > { %v2014_v60 = vadd.f32 %v2012_v51, %v2010_v41  ;;  %v2466_v61 = vadd.f32 %v2464_v52, %v1544_v30  ;;  %v1630_v62 = vadd.f32 %v1628_v49, %v1626_v38  ;;  %v2090_v63 = vmul.f32 0.38439733, %v759_v35 }
 0x106   : > { %v2013_v0 = vadd.f32 %v2011_v56, %v2009_v46  ;;  %v2465_v1 = vadd.f32 %v2463_v57, %v1543_v36  ;;  %v3116_v2 = vpop.f32.mrb[16].mxu0  ;;  %3145 = vmatmul.mubr.msk.f32.vlgmr.msra.gmra.mrb[20].mxu1 %vm261_vm0, %v3569_v25  ;;  %v2095_v3 = vmul.f32 0.30780134, %v3109_v50  ;;  %v2543_v4 = vmul.f32 0.38439733, %v3109_v50 }
 0x107   : > { %v868_v5 = vpop.f32.mrb[17].mxu0  ;;  %3301 = vmatpush3.bf16.msra.mxu1 %v3298_v42  ;;  %3151 = vmatprep.mubr.msk.f32.mxu1 %vm261_vm0, %v3560_v43  ;;  %v2092_v10 = vadd.f32 %v2090_v63, %v1158_v22  ;;  %v3595_v11 = vpack.c.bf16 %v1631_v54, %v1630_v62  ;;  %v1238_v12 = vmul.f32 0.38439733, %v3116_v2  ;;  %v2094_v8 = vmul.f32 0.30780134, %v769_v55 }
 0x108   : > { %3307 = vmatprep.subr.bf16.mxu1 %v3575_v6  ;;  %v2097_v13 = vadd.f32 %v2095_v3, %v2093_v59  ;;  %v2545_v17 = vadd.f32 %v2543_v4, %v1629_v44  ;;  %v2542_v15 = vmul.f32 0.38439733, %v769_v55  ;;  %v3598_v19 = vpack.c.bf16 %v2014_v60, %v2013_v0 }
 0x109   : > { %v3600_v20 = vpack.c.bf16 %v2466_v61, %v2465_v1  ;;  %v1708_v21 = vmul.f32 0.30780134, %v3116_v2  ;;  %v1237_v23 = vmul.f32 0.38439733, %v868_v5  ;;  %v2096_v28 = vadd.f32 %v2094_v8, %v2092_v10 }
 0x10a   : > { %v3119_v24 = vpop.f32.mrb[18].mxu0  ;;  %3152 = vmatmul.mubr.msk.f32.vlgmr.msra.gmra.mrb[22].mxu1 %vm261_vm0, %v3569_v25  ;;  %v2544_v29 = vadd.f32 %v2542_v15, %v1628_v49  ;;  %v1707_v30 = vmul.f32 0.30780134, %v868_v5 }
 0x10b   : > { %v1240_v22 = vmul.f32 0.30780134, %v3119_v24  ;;  %v1710_v26 = vmul.f32 0.38439733, %v3119_v24  ;;  %v878_v27 = vpop.f32.mrb[19].mxu0  ;;  %3309 = vmatpush3.bf16.msra.mxu1 %v3575_v6  ;;  %3165 = vmatprep.mubr.msk.f32.mxu1 %vm261_vm0, %v3560_v43  ;;  %v3338_v35 = vpack.c.bf16 %v2097_v13, %v2096_v28 }
 0x10c   : > { %v1239_v31 = vmul.f32 0.30780134, %v878_v27  ;;  %v1709_v32 = vmul.f32 0.38439733, %v878_v27  ;;  %3315 = vmatprep.subr.bf16.mxu1 %v3314_v58  ;;  %v3607_v36 = vpack.c.bf16 %v2545_v17, %v2544_v29 }
 0x10d   : > { %v1242_v33 = vadd.f32 %v1240_v22, %v1238_v12  ;;  %v1712_v34 = vadd.f32 %v1710_v26, %v1708_v21 }
 0x10e   : > { %v1241_v37 = vadd.f32 %v1239_v31, %v1237_v23  ;;  %v1711_v38 = vadd.f32 %v1709_v32, %v1707_v30  ;;  %v3122_v39 = vpop.f32.mrb[20].mxu0  ;;  %3166 = vmatmul.mubr.msk.f32.vlgmr.msra.gmra.mrb[24].mxu1 %vm261_vm0, %v3569_v25 }
 0x10f   : > { %v1714_v6 = vmul.f32 0.30780134, %v3122_v39  ;;  %v2174_v40 = vmul.f32 0.38439733, %v3122_v39  ;;  %v888_v41 = vpop.f32.mrb[21].mxu0  ;;  %3317 = vmatpush3.bf16.msra.mxu1 %v3314_v58  ;;  %3179 = vmatprep.mubr.msk.f32.mxu1 %vm261_vm0, %v3560_v43 }
 0x110   : > { %v1713_v42 = vmul.f32 0.30780134, %v888_v41  ;;  %v2173_v44 = vmul.f32 0.38439733, %v888_v41  ;;  %v3302_v45 = vpack.c.bf16 %v1242_v33, %v1241_v37 }
 0x111   : > { %v1716_v46 = vadd.f32 %v1714_v6, %v1712_v34  ;;  %v2176_v47 = vadd.f32 %v2174_v40, %v1240_v22 }
 0x112   : > { %v1715_v48 = vadd.f32 %v1713_v42, %v1711_v38  ;;  %v2175_v49 = vadd.f32 %v2173_v44, %v1239_v31  ;;  %v3125_v50 = vpop.f32.mrb[22].mxu0  ;;  %3303 = vmatprep.subr.bf16.mxu0 %v3302_v45  ;;  %3180 = vmatmul.mubr.msk.f32.vlgmr.msra.gmra.mrb[26].mxu1 %vm261_vm0, %v3569_v25 }
 0x113   : > { %v2178_v51 = vmul.f32 0.30780134, %v3125_v50  ;;  %v2622_v52 = vmul.f32 0.38439733, %v3125_v50  ;;  %v898_v53 = vpop.f32.mrb[23].mxu0  ;;  %3305 = vmatpush3.bf16.msra.mxu0 %v3302_v45  ;;  %3193 = vmatprep.mubr.msk.f32.mxu1 %vm261_vm0, %v3560_v43 }
 0x114   : > { %v2177_v54 = vmul.f32 0.30780134, %v898_v53  ;;  %v2621_v55 = vmul.f32 0.38439733, %v898_v53  ;;  %3311 = vmatprep.subr.bf16.mxu0 %v3577_v7  ;;  %v3322_v56 = vpack.c.bf16 %v1716_v46, %v1715_v48 }
 0x115   : > { %v2180_v57 = vadd.f32 %v2178_v51, %v2176_v47  ;;  %v2624_v58 = vadd.f32 %v2622_v52, %v1714_v6 }
 0x116   : > { %v2179_v59 = vadd.f32 %v2177_v54, %v2175_v49  ;;  %v2623_v60 = vadd.f32 %v2621_v55, %v1713_v42  ;;  %3159 = vmatmul.mubr.msk.f32.vlgmr.msra.gmra.mrb[24].mxu0 %vm261_vm0, %v3569_v25  ;;  %3323 = vmatprep.subr.bf16.mxu1 %v3322_v56 }
 0x117   : > { %3313 = vmatpush3.bf16.msra.mxu0 %v3577_v7  ;;  %3325 = vmatpush3.bf16.msra.mxu1 %v3322_v56 }
 0x118   : > { %3331 = vmatprep.subr.bf16.mxu1 %v3579_v9  ;;  %3172 = vmatprep.mubr.msk.f32.mxu0 %vm261_vm0, %v3560_v43  ;;  %v3342_v61 = vpack.c.bf16 %v2180_v57, %v2179_v59  ;;  %v3362_v62 = vpack.c.bf16 %v2624_v58, %v2623_v60 }
 0x119   : > { %3319 = vmatprep.subr.bf16.mxu0 %v3595_v11 }
 0x11a   : > { %3173 = vmatmul.mubr.msk.f32.vlgmr.msra.gmra.mrb[26].mxu0 %vm261_vm0, %v3569_v25  ;;  %3194 = vmatmul.mubr.msk.f32.vlgmr.msra.gmra.mrb[28].mxu1 %vm261_vm0, %v3569_v25 }
 0x11b   : > { %3321 = vmatpush3.bf16.msra.mxu0 %v3595_v11  ;;  %3333 = vmatpush3.bf16.msra.mxu1 %v3579_v9 }
 0x11c   : > { %3327 = vmatprep.subr.bf16.mxu0 %v3581_v14  ;;  %3186 = vmatprep.mubr.msk.f32.mxu0 %vm261_vm0, %v3560_v43 }
 0x11d   : > { %3207 = vmatprep.mubr.msk.f32.mxu1 %vm261_vm0, %v3560_v43  ;;  %3339 = vmatprep.subr.bf16.mxu1 %v3338_v35 }
 0x11e   : > { %3187 = vmatmul.mubr.msk.f32.vlgmr.msra.gmra.mrb[28].mxu0 %vm261_vm0, %v3569_v25  ;;  %3208 = vmatmul.mubr.msk.f32.vlgmr.msra.gmra.mrb[30].mxu1 %vm261_vm0, %v3569_v25 }
 0x11f   : > { %3329 = vmatpush3.bf16.msra.mxu0 %v3581_v14  ;;  %3341 = vmatpush3.bf16.msra.mxu1 %v3338_v35 }
 0x120   : > { %3335 = vmatprep.subr.bf16.mxu0 %v3598_v19  ;;  %3347 = vmatprep.subr.bf16.mxu1 %v3583_v16 }
 0x121   : > { %3200 = vmatprep.mubr.msk.f32.mxu0 %vm261_vm0, %v3560_v43  ;;  %3221 = vmatprep.mubr.msk.f32.mxu1 %vm261_vm0, %v3560_v43 }
 0x122   : > { %3201 = vmatmul.mubr.msk.f32.vlgmr.msra.gmra.mrb[30].mxu0 %vm261_vm0, %v3569_v25  ;;  %3222 = vmatmul.mubr.msk.f32.vlgmr.msra.gmra.mrb[32].mxu1 %vm261_vm0, %v3569_v25 }
 0x123   : > { %3337 = vmatpush3.bf16.msra.mxu0 %v3598_v19  ;;  %3349 = vmatpush3.bf16.msra.mxu1 %v3583_v16 }
 0x124   : > { %3343 = vmatprep.subr.bf16.mxu0 %v3342_v61  ;;  %3355 = vmatprep.subr.bf16.mxu1 %v3600_v20 }
 0x125   : > { %3214 = vmatprep.mubr.msk.f32.mxu0 %vm261_vm0, %v3560_v43  ;;  %3235 = vmatprep.mubr.msk.f32.mxu1 %vm261_vm0, %v3560_v43 }
 0x126   : > { %3215 = vmatmul.mubr.msk.f32.vlgmr.msra.gmra.mrb[32].mxu0 %vm261_vm0, %v3569_v25  ;;  %3236 = vmatmul.mubr.msk.f32.vlgmr.msra.gmra.mrb[34].mxu1 %vm261_vm0, %v3569_v25 }
 0x127   : > { %3345 = vmatpush3.bf16.msra.mxu0 %v3342_v61  ;;  %3357 = vmatpush3.bf16.msra.mxu1 %v3600_v20 }
 0x128   : > { %3351 = vmatprep.subr.bf16.mxu0 %v3585_v18  ;;  %3228 = vmatprep.mubr.msk.f32.mxu0 %vm261_vm0, %v3560_v43 }
 0x129   : > { %3363 = vmatprep.subr.bf16.mxu1 %v3362_v62  ;;  %3249 = vmatprep.mubr.msk.f32.mxu1 %vm261_vm0, %v3560_v43 }
 0x12a   : > { %3229 = vmatmul.mubr.msk.f32.vlgmr.msra.gmra.mrb[34].mxu0 %vm261_vm0, %v3569_v25  ;;  %3250 = vmatmul.mubr.msk.f32.vlgmr.msra.gmra.mrb[36].mxu1 %vm261_vm0, %v3569_v25 }
 0x12b   : > { %3353 = vmatpush3.bf16.msra.mxu0 %v3585_v18  ;;  %3365 = vmatpush3.bf16.msra.mxu1 %v3362_v62 }
 0x12c   : > { %3359 = vmatprep.subr.bf16.mxu0 %v3607_v36  ;;  %3242 = vmatprep.mubr.msk.f32.mxu0 %vm261_vm0, %v3560_v43 }
 0x12d   : > { %3263 = vmatprep.mubr.msk.f32.mxu1 %vm261_vm0, %v3560_v43 }
 0x12e   : > { %3243 = vmatmul.mubr.msk.f32.vlgmr.msra.gmra.mrb[36].mxu0 %vm261_vm0, %v3569_v25  ;;  %3264 = vmatmul.mubr.msk.f32.vlgmr.msra.gmra.mrb[38].mxu1 %vm261_vm0, %v3569_v25 }
 0x12f   : > { %3361 = vmatpush3.bf16.msra.mxu0 %v3607_v36  ;;  %3256 = vmatprep.mubr.msk.f32.mxu0 %vm261_vm0, %v3560_v43 }
 0x132   : > { %3257 = vmatmul.mubr.msk.f32.vlgmr.msra.gmra.mrb[38].mxu0 %vm261_vm0, %v3569_v25 }
 0x1c9   : > { %v3132_v7 = vpop.f32.mrb[16].mxu1 }
 0x1ca   : > { %v985_v9 = vpop.f32.mrb[17].mxu1  ;;  %v1319_v18 = vmul.f32 %v3132_v7, %v3132_v7 }
 0x1cb   : > { %v1318_v14 = vmul.f32 %v985_v9, %v985_v9 }
 0x1cd   : > { %v3139_v16 = vpop.f32.mrb[18].mxu1 }
 0x1ce   : > { %v1321_v63 = vmul.f32 %v3139_v16, %v3139_v16  ;;  %v1323_v0 = vmul.f32 %v3139_v16, %v3132_v7  ;;  %v1066_v1 = vpop.f32.mrb[19].mxu1 }
 0x1cf   : > { %v1320_v2 = vmul.f32 %v1066_v1, %v1066_v1  ;;  %v1322_v3 = vmul.f32 %v1066_v1, %v985_v9 }
 0x1d0   : > { %v1341_v4 = vadd.f32 %v1321_v63, %v1319_v18  ;;  %v1331_v36 = vmul.f32 2.0, %v1323_v0 }
 0x1d1   : > { %v1340_v5 = vadd.f32 %v1320_v2, %v1318_v14  ;;  %v1330_v39 = vmul.f32 2.0, %v1322_v3 }
 0x1d2   : > { %v1343_v15 = vadd.f32 0.0001, %v1341_v4  ;;  %v1333_v45 = vadd.f32 0.0001, %v1331_v36 }
 0x1d3   : > { %v1342_v20 = vadd.f32 0.0001, %v1340_v5  ;;  %v1332_v51 = vadd.f32 0.0001, %v1330_v39 }
 0x1d9   : > { %v3146_v10 = vpop.f32.mrb[20].mxu1 }
 0x1da   : > { %v1325_v11 = vsub.f32 %v3146_v10, %v1319_v18  ;;  %v1147_v12 = vpop.f32.mrb[21].mxu1 }
 0x1db   : > { %v1324_v13 = vsub.f32 %v1147_v12, %v1318_v14 }
 0x1dd   : > { %v3153_v43 = vpop.f32.mrb[22].mxu1 }
 0x1de   : > { %v1327_v17 = vsub.f32 %v3153_v43, %v1321_v63  ;;  %v1228_v8 = vpop.f32.mrb[23].mxu1 }
 0x1df   : > { %v1326_v25 = vsub.f32 %v1228_v8, %v1320_v2 }
 0x1e0   : > { %v1345_v19 = vadd.f32 %v1327_v17, %v1325_v11 }
 0x1e1   : > { %v1344_v21 = vadd.f32 %v1326_v25, %v1324_v13  ;;  %v3167_v23 = vpop.f32.mrb[24].mxu1 }
 0x1e2   : > { %v1347_v24 = vadd.f32 0.0009, %v1345_v19  ;;  %v1793_v22 = vmul.f32 %v3167_v23, %v3167_v23  ;;  %v1443_v26 = vpop.f32.mrb[25].mxu1 }
 0x1e3   : > { %v1346_v27 = vadd.f32 0.0009, %v1344_v21  ;;  %v1792_v28 = vmul.f32 %v1443_v26, %v1443_v26 }
 0x1e4   : > { %v1349_v29 = vmul.f32 %v1347_v24, %v1343_v15 }
 0x1e5   : > { %v1348_v30 = vmul.f32 %v1346_v27, %v1342_v20  ;;  %v3181_v31 = vpop.f32.mrb[26].mxu1 }
 0x1e6   : > { %v1799_v32 = vsub.f32 %v3181_v31, %v1793_v22  ;;  %v1613_v33 = vpop.f32.mrb[27].mxu1  ;;  %3382 = vrcp.f32 %v1349_v29 }
 0x1e7   : > { %v1798_v34 = vsub.f32 %v1613_v33, %v1792_v28  ;;  %3384 = vrcp.f32 %v1348_v30 }
 0x1e9   : > { %v3160_v35 = vpop.f32.mrb[24].mxu0 }
 0x1ea   : > { %v1329_v37 = vsub.f32 %v3160_v35, %v1323_v0  ;;  %v1309_v38 = vpop.f32.mrb[25].mxu0 }
 0x1eb   : > { %v1328_v6 = vsub.f32 %v1309_v38, %v1322_v3 }
 0x1ec   : > { %v1335_v40 = vmul.f32 2.0, %v1329_v37 }
 0x1ed   : > { %v1334_v41 = vmul.f32 2.0, %v1328_v6  ;;  %v3174_v42 = vpop.f32.mrb[26].mxu0  ;;  %v3195_v44 = vpop.f32.mrb[28].mxu1 }
 0x1ee   : > { %v1337_v46 = vadd.f32 0.0009, %v1335_v40  ;;  %v1795_v47 = vmul.f32 %v3174_v42, %v3174_v42  ;;  %v1797_v48 = vmul.f32 %v3174_v42, %v3167_v23  ;;  %v1528_v49 = vpop.f32.mrb[27].mxu0  ;;  %v1783_v50 = vpop.f32.mrb[29].mxu1 }
 0x1ef   : > { %v1336_v52 = vadd.f32 0.0009, %v1334_v41  ;;  %v1794_v53 = vmul.f32 %v1528_v49, %v1528_v49  ;;  %v1796_v54 = vmul.f32 %v1528_v49, %v1443_v26 }
 0x1f0   : > { %v1339_v55 = vmul.f32 %v1337_v46, %v1333_v45  ;;  %v1805_v56 = vmul.f32 2.0, %v1797_v48  ;;  %v1815_v57 = vadd.f32 %v1795_v47, %v1793_v22  ;;  %v1803_v58 = vsub.f32 %v3195_v44, %v1797_v48  ;;  %v3383_v59 = vpop.eup %3382 }
 0x1f1   : > { %v1338_v60 = vmul.f32 %v1336_v52, %v1332_v51  ;;  %v1804_v61 = vmul.f32 2.0, %v1796_v54  ;;  %v1814_v62 = vadd.f32 %v1794_v53, %v1792_v28  ;;  %v3188_v7 = vpop.f32.mrb[28].mxu0  ;;  %v1802_v9 = vsub.f32 %v1783_v50, %v1796_v54  ;;  %v3209_v14 = vpop.f32.mrb[30].mxu1 }
 0x1f2   : > { %v3385_v16 = vpop.eup %3384  ;;  %v1807_v18 = vadd.f32 0.0001, %v1805_v56  ;;  %v1817_v63 = vadd.f32 0.0001, %v1815_v57  ;;  %v1801_v0 = vsub.f32 %v3188_v7, %v1795_v47  ;;  %v1698_v1 = vpop.f32.mrb[29].mxu0  ;;  %v1809_v2 = vmul.f32 2.0, %v1803_v58 }
 0x1f3   : > { %v1806_v3 = vadd.f32 0.0001, %v1804_v61  ;;  %v1816_v4 = vadd.f32 0.0001, %v1814_v62  ;;  %v1800_v5 = vsub.f32 %v1698_v1, %v1794_v53  ;;  %v1808_v10 = vmul.f32 2.0, %v1802_v9  ;;  %v1998_v11 = vpop.f32.mrb[31].mxu1 }
 0x1f4   : > { %v1819_v12 = vadd.f32 %v1801_v0, %v1799_v32  ;;  %v1811_v13 = vadd.f32 0.0009, %v1809_v2  ;;  %v2259_v43 = vmul.f32 %v3209_v14, %v3209_v14  ;;  %v2258_v17 = vmul.f32 %v1998_v11, %v1998_v11 }
 0x1f5   : > { %v1818_v8 = vadd.f32 %v1800_v5, %v1798_v34  ;;  %v1810_v25 = vadd.f32 0.0009, %v1808_v10  ;;  %v3202_v15 = vpop.f32.mrb[30].mxu0  ;;  %v1352_v19 = vmul.f32 %v3385_v16, %v1338_v60  ;;  %v1353_v20 = vmul.f32 %v3383_v59, %v1339_v55  ;;  %v3223_v21 = vpop.f32.mrb[32].mxu1 }
 0x1f6   : > { %v1821_v23 = vadd.f32 0.0009, %v1819_v12  ;;  %v3687_v24 = vmul.f32 %v1811_v13, %v1807_v18  ;;  %v2257_v22 = vmul.f32 %v3202_v15, %v3202_v15  ;;  %v2261_v26 = vmul.f32 %v3209_v14, %v3202_v15  ;;  %v1915_v27 = vpop.f32.mrb[31].mxu0  ;;  %v2164_v28 = vpop.f32.mrb[33].mxu1 }
 0x1f7   : > { %v1820_v29 = vadd.f32 0.0009, %v1818_v8  ;;  %v3689_v30 = vmul.f32 %v1810_v25, %v1806_v3  ;;  %v2256_v31 = vmul.f32 %v1915_v27, %v1915_v27  ;;  %v2260_v32 = vmul.f32 %v1998_v11, %v1915_v27 }
 0x1f8   : > { %v1823_v33 = vmul.f32 %v1821_v23, %v1817_v63  ;;  %v2279_v35 = vadd.f32 %v2259_v43, %v2257_v22  ;;  %v1354_v34 = vsel %vm261_vm0, %v1352_v19, 0.0  ;;  %v2269_v37 = vmul.f32 2.0, %v2261_v26 }
 0x1f9   : > { %v1822_v36 = vmul.f32 %v1820_v29, %v1816_v4  ;;  %v2278_v38 = vadd.f32 %v2258_v17, %v2256_v31  ;;  %v1355_v39 = vsel %vm261_vm0, %v1353_v20, 0.0  ;;  %v3216_v6 = vpop.f32.mrb[32].mxu0  ;;  %v3237_v40 = vpop.f32.mrb[34].mxu1  ;;  %v2265_v46 = vsub.f32 %v3223_v21, %v2259_v43 }
 0x1fa   : > { %3386 = vrcp.f32 %v1823_v33  ;;  %v1356_v41 = vadd.f32 %v1355_v39, %v1354_v34  ;;  %v2081_v42 = vpop.f32.mrb[33].mxu0  ;;  %v2375_v44 = vpop.f32.mrb[35].mxu1  ;;  %v2263_v45 = vsub.f32 %v3216_v6, %v2257_v22  ;;  %v2264_v48 = vsub.f32 %v2164_v28, %v2258_v17 }
 0x1fb   : > { %3388 = vrcp.f32 %v1822_v36  ;;  %v2262_v47 = vsub.f32 %v2081_v42, %v2256_v31  ;;  %v2701_v49 = vmul.f32 %v3237_v40, %v3237_v40  ;;  %v2271_v50 = vadd.f32 0.0001, %v2269_v37 }
 0x1fc   : > { %1357 = vadd.xlane.f32.xlu0 %v1356_v41  ;;  %v2268_v51 = vmul.f32 2.0, %v2260_v32  ;;  %v2700_v53 = vmul.f32 %v2375_v44, %v2375_v44  ;;  %v2283_v55 = vadd.f32 %v2265_v46, %v2263_v45  ;;  %v2281_v61 = vadd.f32 0.0001, %v2279_v35 }
 0x1fd   : > { %v3230_v52 = vpop.f32.mrb[34].mxu0  ;;  %v3251_v54 = vpop.f32.mrb[36].mxu1  ;;  %v2282_v56 = vadd.f32 %v2264_v48, %v2262_v47  ;;  %v2280_v62 = vadd.f32 0.0001, %v2278_v38 }
 0x1fe   : > { %v2267_v57 = vsub.f32 %v3230_v52, %v2261_v26  ;;  %v2247_v58 = vpop.f32.mrb[35].mxu0  ;;  %v2707_v59 = vsub.f32 %v3251_v54, %v2701_v49  ;;  %v2533_v60 = vpop.f32.mrb[37].mxu1  ;;  %v2285_v14 = vadd.f32 0.0009, %v2283_v55  ;;  %v2270_v63 = vadd.f32 0.0001, %v2268_v51 }
 0x1ff   : > { %v2266_v7 = vsub.f32 %v2247_v58, %v2260_v32  ;;  %v2706_v9 = vsub.f32 %v2533_v60, %v2700_v53  ;;  %v2284_v16 = vadd.f32 0.0009, %v2282_v56 }
 0x200   : > { %v2273_v18 = vmul.f32 2.0, %v2267_v57  ;;  %v2287_v3 = vmul.f32 %v2285_v14, %v2281_v61 }
 0x201   : > { %v2272_v0 = vmul.f32 2.0, %v2266_v7  ;;  %v3244_v1 = vpop.f32.mrb[36].mxu0  ;;  %v3265_v2 = vpop.f32.mrb[38].mxu1  ;;  %v2286_v4 = vmul.f32 %v2284_v16, %v2280_v62 }
 0x202   : > { %v2275_v5 = vadd.f32 0.0009, %v2273_v18  ;;  %v2703_v10 = vmul.f32 %v3244_v1, %v3244_v1  ;;  %v2454_v11 = vpop.f32.mrb[37].mxu0  ;;  %v2691_v12 = vpop.f32.mrb[39].mxu1  ;;  %v2705_v43 = vmul.f32 %v3244_v1, %v3237_v40  ;;  %3390 = vrcp.f32 %v2287_v3 }
 0x203   : > { %v2274_v13 = vadd.f32 0.0009, %v2272_v0  ;;  %v2702_v17 = vmul.f32 %v2454_v11, %v2454_v11  ;;  %v2704_v8 = vmul.f32 %v2454_v11, %v2375_v44  ;;  %3392 = vrcp.f32 %v2286_v4 }
 0x204   : > { %v3387_v25 = vpop.eup %3386  ;;  %v2277_v15 = vmul.f32 %v2275_v5, %v2271_v50  ;;  %v2723_v19 = vadd.f32 %v2703_v10, %v2701_v49  ;;  %v2713_v32 = vmul.f32 2.0, %v2705_v43  ;;  %v2711_v34 = vsub.f32 %v3265_v2, %v2705_v43 }
 0x205   : > { %v3389_v20 = vpop.eup %3388  ;;  %v2276_v21 = vmul.f32 %v2274_v13, %v2270_v63  ;;  %v3258_v23 = vpop.f32.mrb[38].mxu0  ;;  %v2722_v22 = vadd.f32 %v2702_v17, %v2700_v53  ;;  %v1827_v31 = vmul.f32 %v3387_v25, %v3687_v24  ;;  %v2712_v36 = vmul.f32 2.0, %v2704_v8 }
 0x206   : > { %v2709_v26 = vsub.f32 %v3258_v23, %v2703_v10  ;;  %v2612_v27 = vpop.f32.mrb[39].mxu0  ;;  %v1826_v28 = vmul.f32 %v3389_v20, %v3689_v30  ;;  %v2710_v39 = vsub.f32 %v2691_v12, %v2704_v8  ;;  %v2725_v6 = vadd.f32 0.0001, %v2723_v19 }
 0x207   : > { %v2708_v29 = vsub.f32 %v2612_v27, %v2702_v17  ;;  %v1829_v38 = vsel %vm261_vm0, %v1827_v31, 0.0  ;;  %v2717_v42 = vmul.f32 2.0, %v2711_v34  ;;  %v2724_v44 = vadd.f32 0.0001, %v2722_v22 }
 0x208   : > { %v2727_v33 = vadd.f32 %v2709_v26, %v2707_v59  ;;  %v1828_v35 = vsel %vm261_vm0, %v1826_v28, 0.0  ;;  %v2716_v30 = vmul.f32 2.0, %v2710_v39  ;;  %v2715_v46 = vadd.f32 0.0001, %v2713_v32 }
 0x209   : > { %v2726_v37 = vadd.f32 %v2708_v29, %v2706_v9  ;;  %v1830_v41 = vadd.f32 %v1829_v38, %v1828_v35  ;;  %v2719_v24 = vadd.f32 0.0009, %v2717_v42  ;;  %v2714_v48 = vadd.f32 0.0001, %v2712_v36 }
 0x20a   : > { %v2729_v40 = vadd.f32 0.0009, %v2727_v33  ;;  %v2718_v50 = vadd.f32 0.0009, %v2716_v30 }
 0x20b   : > { %v2728_v45 = vadd.f32 0.0009, %v2726_v37  ;;  %1831 = vadd.xlane.f32.xlu0 %v1830_v41  ;;  %v2721_v52 = vmul.f32 %v2719_v24, %v2715_v46 }
 0x20c   : > { %v2731_v47 = vmul.f32 %v2729_v40, %v2725_v6  ;;  %v3391_v51 = vpop.eup %3390  ;;  %v2720_v54 = vmul.f32 %v2718_v50, %v2714_v48 }
 0x20d   : > { %v2730_v49 = vmul.f32 %v2728_v45, %v2724_v44  ;;  %v3393_v53 = vpop.eup %3392  ;;  %v2291_v55 = vmul.f32 %v3391_v51, %v2277_v15 }
 0x20e   : > { %3394 = vrcp.f32 %v2731_v47  ;;  %v2290_v56 = vmul.f32 %v3393_v53, %v2276_v21 }
 0x20f   : > { %3396 = vrcp.f32 %v2730_v49  ;;  %v2293_v57 = vsel %vm261_vm0, %v2291_v55, 0.0 }
 0x210   : > { %v2292_v58 = vsel %vm261_vm0, %v2290_v56, 0.0 }
 0x211   : > { %v2294_v59 = vadd.f32 %v2293_v57, %v2292_v58 }
 0x213   : > { %2295 = vadd.xlane.f32.xlu1 %v2294_v59 }
 0x218   : > { %v3395_v60 = vpop.eup %3394 }
 0x219   : > { %v3397_v61 = vpop.eup %3396  ;;  %v2735_v62 = vmul.f32 %v3395_v60, %v2721_v52 }
 0x21a   : > { %v2734_v7 = vmul.f32 %v3397_v61, %v2720_v54 }
 0x21b   : > { %v2737_v9 = vsel %vm261_vm0, %v2735_v62, 0.0 }
 0x21c   : > { %v2736_v14 = vsel %vm261_vm0, %v2734_v7, 0.0 }
 0x21d   : > { %v2738_v16 = vadd.f32 %v2737_v9, %v2736_v14 }
 0x21f   : > { %2739 = vadd.xlane.f32.xlu1 %v2738_v16 }
 0x289   : > { %v1358_v18 = vpop.xlane.xlu0 %1357 }
 0x28a   : > { %v1359_v63 = vrot.slane %v1358_v18, 4 }
 0x28c   : > { %v1360_v0 = vadd.f32 %v1359_v63, %v1358_v18 }
 0x28e   : > { %v1361_v1 = vrot.slane %v1360_v0, 2 }
 0x290   : > { %v1362_v2 = vadd.f32 %v1361_v1, %v1360_v0 }
 0x292   : > { %v1363_v3 = vrot.slane %v1362_v2, 1 }
 0x294   : > { %v1364_v4 = vadd.f32 %v1363_v3, %v1362_v2 }
 0x296   : > { %3366 = vpush %v1364_v4 }
 0x298   : > { %v1832_v5 = vpop.xlane.xlu0 %1831 }
 0x299   : > { %v1833_v10 = vrot.slane %v1832_v5, 4 }
 0x29b   : > { %v1834_v11 = vadd.f32 %v1833_v10, %v1832_v5 }
 0x29d   : > { %v1835_v12 = vrot.slane %v1834_v11, 2 }
 0x29f   : > { %v1836_v13 = vadd.f32 %v1835_v12, %v1834_v11 }
 0x2a0   : > { %v2296_v43 = vpop.xlane.xlu1 %2295 }
 0x2a1   : > { %v1837_v17 = vrot.slane %v1836_v13, 1  ;;  %v2297_v8 = vrot.slane %v2296_v43, 4 }
 0x2a3   : > { %v1838_v25 = vadd.f32 %v1837_v17, %v1836_v13  ;;  %v2298_v15 = vadd.f32 %v2297_v8, %v2296_v43 }
 0x2a5   : > { %3368 = vpush %v1838_v25  ;;  %v2299_v19 = vrot.slane %v2298_v15, 2 }
 0x2a7   : > { %v2300_v20 = vadd.f32 %v2299_v19, %v2298_v15 }
 0x2a9   : > { %v2301_v21 = vrot.slane %v2300_v20, 1 }
 0x2ab   : > { %v2302_v26 = vadd.f32 %v2301_v21, %v2300_v20 }
 0x2ac   : > { %v2740_v23 = vpop.xlane.xlu1 %2739 }
 0x2ad   : > { %v2741_v22 = vrot.slane %v2740_v23, 4  ;;  %3370 = vpush %v2302_v26 }
 0x2af   : > { %v2742_v27 = vadd.f32 %v2741_v22, %v2740_v23 }
 0x2b1   : > { %v2743_v28 = vrot.slane %v2742_v27, 2 }
 0x2b3   : > { %v2744_v29 = vadd.f32 %v2743_v28, %v2742_v27 }
 0x2b5   : > { %v2745_v31 = vrot.slane %v2744_v29, 1 }
 0x2b7   : > { %v2746_v32 = vadd.f32 %v2745_v31, %v2744_v29 }
 0x2b9   : > { %3372 = vpush %v2746_v32 }
 0x2c7   : > { %s3367_s7 = spop %3366 }
 0x2d6   : > { %s3369_s8 = spop %3368 }
 0x2d7   : > { %s1840_s10 = sadd.f32 %s3369_s8, %s3367_s7 }
 0x2de   : > { %s3371_s9 = spop %3370 }
 0x2df   : > { %s2304_s11 = sadd.f32 %s3371_s9, %s1840_s10 }
 0x2ea   : > { %s3373_s12 = spop %3372 }
 0x2eb   : > { %s2748_s18 = sadd.f32 %s3373_s12, %s2304_s11 }
 0x2ed   : > { %v2749_v33 = vstv %s2748_s18 }
 0x2ee   : > { %2751 = vst [vmem:[%s216_s17] sm:$0x1] %v2749_v33 }
 0x2ef PF: > { %s14_s15 = sadd.s32 1, %s3404_s15  }
 0x2f0   : > { %p11_p4 = scmp.ge.s32.totalorder %s14_s15, 4  }
 0x2f2   :  { %13 = sbr.rel (!%p11_p4) target bundleno = 1 (0x1), region = 69 }

</bundles_post_ra>
